<compile_context>
chip_gen: v5e
topology: v5e:2x2
jax: 0.10.0
libtpu: 0.0.40
codegen_flags: <defaults>
</compile_context>

<pallas_src>
import jax
import jax.numpy as jnp
from jax import lax
from jax.experimental import pallas as pl
from jax.experimental.pallas import tpu as pltpu


def _round_up(a, b):
    return ((a + b - 1) // b) * b


# ---------------------------------------------------------------------------
# Pallas kernel: one (Cout_g, tile_l) output tile of a grouped conv
# ---------------------------------------------------------------------------
def _make_conv_kernel(*, tile_l, halo, n_taps, neg_slope):
    """Refs seen by the kernel:
      w_ref : (n_taps, Cout_g, Cin_g*S)  bf16  (resident per group)
      b_ref : (Cout_g, 1)                f32   (resident per group)
      x_ref : (Cin_g*S, tile_l)          bf16  main activation tile (phase layout)
      h_ref : (Cin_g*S, halo)            bf16  right halo of the tile
      o_ref : (Cout_g, tile_l)           f32
      xbuf  : (Cin_g*S, tile_l + halo)   bf16  VMEM scratch
    """

    def kernel(w_ref, b_ref, x_ref, h_ref, o_ref, xbuf):
        # Assemble main tile + halo in VMEM (single pass, bf16).
        xbuf[:, :tile_l] = x_ref[...]
        if halo > 0:
            xbuf[:, tile_l:tile_l + halo] = h_ref[...]

        acc = jnp.zeros(o_ref.shape, jnp.float32)
        # ceil(K/stride) shifted sub-slices, each an MXU matmul, f32 accumulate.
        for q in range(n_taps):
            acc = acc + jnp.dot(
                w_ref[q], xbuf[:, q:q + tile_l],
                preferred_element_type=jnp.float32)

        acc = acc + b_ref[...]
        if neg_slope is not None:
            acc = jnp.where(acc >= 0.0, acc, neg_slope * acc)
        o_ref[...] = acc.astype(o_ref.dtype)

    return kernel


# ---------------------------------------------------------------------------
# Grouped Conv1d (PyTorch semantics) via the Pallas kernel
# ---------------------------------------------------------------------------
def conv1d_pallas(x, w, b, *, stride, padding, groups, neg_slope=None, tile_l=None):
    """x: (N, Cin, L) f32, w: (Cout, Cin//groups, K), b: (Cout,) -> (N, Cout, Lout) f32."""
    N, Cin, L = x.shape
    Cout, Cin_g, K = w.shape
    G, S = groups, stride
    assert Cin == G * Cin_g and Cout % G == 0
    Cout_g = Cout // G
    # lane/sublane tiling constraint of the output BlockSpec
    assert G == 1 or Cout_g % 8 == 0, "per-group Cout must be a multiple of 8"
    assert K > S, "kernel size must exceed stride"

    Lout = (L + 2 * padding - K) // S + 1
    if tile_l is None:
        tile_l = min(1024, _round_up(max(Lout, 1), 128))
    T = tile_l                                  # 128-multiple -> lane-dense stores
    Mt = -(-Lout // T)
    Lout_pad = Mt * T

    n_taps = -(-K // S)                         # ceil(K/S): taps per stride-phase
    halo = n_taps - 1                           # extra phase-domain samples per tile
    CinS = Cin_g * S                            # contraction width per tap
    K_pad = n_taps * S

    # -- activations: pad + split into stride phases (1x bytes, no im2col) ----
    Lph = Lout_pad + halo                       # phase-domain length
    Ltot = Lph * S                              # padded time-domain length
    keep = min(L, Ltot - padding)
    xp = jnp.pad(x[:, :, :keep].astype(jnp.bfloat16),
                 ((0, 0), (0, 0), (padding, Ltot - padding - keep)))
    # xph[n, g, ci*S + p, j] == xp[n, g*Cin_g + ci, j*S + p]
    xph = xp.reshape(N, G, Cin_g, Lph, S).transpose(0, 1, 2, 4, 3)
    xph = xph.reshape(N, G, CinS, Lph)

    # -- right halo of every tile (tiny: ~halo/T of the activation bytes) -----
    offs = (jnp.arange(Mt)[:, None] + 1) * T + jnp.arange(halo)[None, :]   # (Mt, halo)
    xhalo = jnp.moveaxis(xph[:, :, :, offs], 3, 2)      # (N, G, Mt, CinS, halo)

    # -- weights / bias: tap-major layout, zero-padded to n_taps*S taps -------
    wp = jnp.pad(w, ((0, 0), (0, 0), (0, K_pad - K))).astype(jnp.bfloat16)
    wt = wp.reshape(G, Cout_g, Cin_g, n_taps, S).transpose(0, 3, 1, 2, 4)
    wt = wt.reshape(G, n_taps, Cout_g, CinS)            # contraction index = ci*S + p
    bt = b.reshape(G, Cout_g, 1).astype(jnp.float32)

    flops = 2 * G * N * Mt * n_taps * Cout_g * CinS * T
    bytes_accessed = (2 * (xph.size + xhalo.size + wt.size)
                      + 4 * (bt.size + N * Cout * Lout_pad))

    out = pl.pallas_call(
        _make_conv_kernel(tile_l=T, halo=halo, n_taps=n_taps, neg_slope=neg_slope),
        out_shape=jax.ShapeDtypeStruct((N, Cout, Lout_pad), jnp.float32),
        grid=(G, N, Mt),
        in_specs=[
            # weights / bias: block index depends only on g -> stay resident
            pl.BlockSpec((None, n_taps, Cout_g, CinS), lambda g, n, m: (g, 0, 0, 0)),
            pl.BlockSpec((None, Cout_g, 1), lambda g, n, m: (g, 0, 0)),
            # activation main tile and its halo (auto-pipelined per M tile)
            pl.BlockSpec((None, None, CinS, T), lambda g, n, m: (n, g, 0, m)),
            pl.BlockSpec((None, None, None, CinS, halo), lambda g, n, m: (n, g, m, 0, 0)),
        ],
        out_specs=pl.BlockSpec((None, Cout_g, T), lambda g, n, m: (n, g, m)),
        scratch_shapes=[pltpu.VMEM((CinS, T + halo), jnp.bfloat16)],
        compiler_params=pltpu.CompilerParams(
            dimension_semantics=("parallel", "parallel", "arbitrary"),
            vmem_limit_bytes=32 * 1024 * 1024,
        ),
        cost_estimate=pl.CostEstimate(
            flops=flops, transcendentals=0, bytes_accessed=bytes_accessed),
    )(wt, bt, xph, xhalo)

    return out[:, :, :Lout]


# ---------------------------------------------------------------------------
# Parameter construction (deterministic, synthetic) — arrays only (jit-friendly)
# ---------------------------------------------------------------------------
def init_discriminator_s(key, channels, num_layers, max_channels, max_groups):
    keys = jax.random.split(key, 2 * (num_layers + 2))
    ki = iter(range(len(keys)))

    def mk(shape, k):
        return 0.1 * jax.random.normal(keys[k], shape, jnp.float32)

    convs = []
    c = channels
    # Conv1d(1, c, 15, 1, 7)
    convs.append(dict(w=mk((c, 1, 15), next(ki)), b=mk((c,), next(ki))))
    g = 1
    for _ in range(num_layers):
        g = min(g * 2, max_groups)  # computed by the reference module, but Conv1d uses groups=2
        c_next = min(c * 2, max_channels)
        # Conv1d(c, c_next, 41, 2, 20, groups=2)
        convs.append(dict(w=mk((c_next, c // 2, 41), next(ki)), b=mk((c_next,), next(ki))))
        c = c_next
    # Conv1d(c, 1, 3, 1, 1)
    post = dict(w=mk((1, c, 3), next(ki)), b=mk((1,), next(ki)))
    return dict(convs=convs, post=post)


# ---------------------------------------------------------------------------
# Forward passes
# ---------------------------------------------------------------------------
def avg_pool1d(x, scale):
    # TODO(synk): AvgPool1d downsampling stays in plain JAX (single reshape+mean);
    # it is trivially memory-bound and not worth a dedicated Pallas kernel.
    if scale == 1:
        return x
    N, C, L = x.shape
    Lp = (L // scale) * scale
    return x[:, :, :Lp].reshape(N, C, Lp // scale, scale).mean(axis=-1)


def discriminator_s_forward(params, x, scale):
    fmap = []
    x = avg_pool1d(x, scale)
    fmap.append(x)
    for i, lyr in enumerate(params["convs"]):
        stride, padding, groups = (1, 7, 1) if i == 0 else (2, 20, 2)
        x = conv1d_pallas(x, lyr["w"], lyr["b"], stride=stride, padding=padding,
                          groups=groups, neg_slope=0.1)
        fmap.append(x)
    x = conv1d_pallas(x, params["post"]["w"], params["post"]["b"],
                      stride=1, padding=1, groups=1, neg_slope=None)
    fmap.append(x)
    return x, fmap


def multi_scale_discriminator_forward(params_list, scales, x):
    logits, feats = [], []
    for p, s in zip(params_list, scales):
        logit, fmap = discriminator_s_forward(p, x, s)
        logits.append(logit)
        feats += fmap
    return logits, feats


# ---------------------------------------------------------------------------
# Reference conv (same bf16-operand / f32-accumulation numerics)
# ---------------------------------------------------------------------------
def conv1d_ref(x, w, b, *, stride, padding, groups, neg_slope=None):
    y = lax.conv_general_dilated(
        x.astype(jnp.bfloat16), w.astype(jnp.bfloat16),
        window_strides=(stride,), padding=[(padding, padding)],
        feature_group_count=groups,
        dimension_numbers=("NCH", "OIH", "NCH"),
        preferred_element_type=jnp.float32,
    ) + b[None, :, None].astype(jnp.float32)
    if neg_slope is not None:
        y = jnp.where(y >= 0.0, y, neg_slope * y)
    return y


if __name__ == "__main__":
    # Small config consistent with the module's constructor
    scales = [1, 2]
    channels = 8
    max_channels = 16
    max_groups = 4
    num_layers = 2

    key = jax.random.PRNGKey(0)
    kx, *pkeys = jax.random.split(key, 1 + len(scales))
    x = jax.random.normal(kx, (2, 1, 64), jnp.float32)  # (N, 1, L) audio-like

    params_list = [
        init_discriminator_s(pk, channels, num_layers, max_channels, max_groups)
        for pk in pkeys
    ]

    fwd = jax.jit(lambda ps, inp: multi_scale_discriminator_forward(ps, scales, inp))
    logits, feats = fwd(params_list, x)
    jax.block_until_ready(logits)
    jax.block_until_ready(feats)

    # Sanity checks against the lax reference (same bf16/f32 numerics).
    l0 = params_list[0]["convs"][0]
    y0 = conv1d_pallas(x, l0["w"], l0["b"], stride=1, padding=7, groups=1, neg_slope=0.1)
    r0 = conv1d_ref(x, l0["w"], l0["b"], stride=1, padding=7, groups=1, neg_slope=0.1)
    assert y0.shape == r0.shape
    assert jnp.allclose(y0, r0, atol=3e-2, rtol=3e-2), float(jnp.max(jnp.abs(y0 - r0)))

    l1 = params_list[0]["convs"][1]
    x1 = jax.random.normal(jax.random.PRNGKey(1), (2, channels, 64), jnp.float32)
    y1 = conv1d_pallas(x1, l1["w"], l1["b"], stride=2, padding=20, groups=2, neg_slope=0.1)
    r1 = conv1d_ref(x1, l1["w"], l1["b"], stride=2, padding=20, groups=2, neg_slope=0.1)
    assert y1.shape == r1.shape
    assert jnp.allclose(y1, r1, atol=3e-2, rtol=3e-2), float(jnp.max(jnp.abs(y1 - r1)))

    print("KERNEL_OK")
</pallas_src>

<mosaic_0001>
module attributes {stable_mosaic.version = 11 : i64} {
  func.func @kernel(%arg0: i32, %arg1: i32, %arg2: i32, %arg3: memref<1x15x8x1xbf16, #tpu.memory_space<vmem>>, %arg4: memref<1x8x1xf32, #tpu.memory_space<vmem>>, %arg5: memref<1x1x1x128xbf16, #tpu.memory_space<vmem>>, %arg6: memref<1x1x1x1x14xbf16, #tpu.memory_space<vmem>>, %arg7: memref<1x8x128xf32, #tpu.memory_space<vmem>>, %arg8: memref<1x142xbf16, #tpu.memory_space<vmem>>) attributes {dimension_semantics = [#tpu.dimension_semantics<parallel>, #tpu.dimension_semantics<parallel>, #tpu.dimension_semantics<arbitrary>], iteration_bounds = array<i64: 1, 2, 1>, scalar_prefetch = 0 : i64, scratch_operands = 1 : i64, tpu.core_type = #tpu.core_type<tc>, window_params = [{transform_indices = @transform_0, window_bounds = array<i64: 1, 15, 8, 1>}, {transform_indices = @transform_1, window_bounds = array<i64: 1, 8, 1>}, {transform_indices = @transform_2, window_bounds = array<i64: 1, 1, 1, 128>}, {transform_indices = @transform_3, window_bounds = array<i64: 1, 1, 1, 1, 14>}, {transform_indices = @transform_4, window_bounds = array<i64: 1, 8, 128>}]} {
    %c0 = arith.constant 0 : index
    %c0_0 = arith.constant 0 : index
    %c0_1 = arith.constant 0 : index
    %c0_2 = arith.constant 0 : index
    %0 = vector.load %arg5[%c0, %c0_0, %c0_1, %c0_2] : memref<1x1x1x128xbf16, #tpu.memory_space<vmem>>, vector<1x1x1x128xbf16>
    %1 = vector.shape_cast %0 : vector<1x1x1x128xbf16> to vector<1x128xbf16>
    %c0_3 = arith.constant 0 : index
    %c0_4 = arith.constant 0 : index
    %2 = vector.load %arg8[%c0_3, %c0_4] : memref<1x142xbf16, #tpu.memory_space<vmem>>, vector<1x128xbf16>
    tpu.vector_store %arg8[%c0_3, %c0_4], %1 {strides = array<i32>} : memref<1x142xbf16, #tpu.memory_space<vmem>>, vector<1x128xbf16>,
    %c0_5 = arith.constant 0 : index
    %c0_6 = arith.constant 0 : index
    %c0_7 = arith.constant 0 : index
    %c0_8 = arith.constant 0 : index
    %c0_9 = arith.constant 0 : index
    %3 = vector.load %arg6[%c0_5, %c0_6, %c0_7, %c0_8, %c0_9] : memref<1x1x1x1x14xbf16, #tpu.memory_space<vmem>>, vector<1x1x1x1x14xbf16>
    %4 = vector.shape_cast %3 : vector<1x1x1x1x14xbf16> to vector<1x14xbf16>
    %c0_10 = arith.constant 0 : index
    %c128 = arith.constant 128 : index
    %5 = vector.load %arg8[%c0_10, %c128] : memref<1x142xbf16, #tpu.memory_space<vmem>>, vector<1x14xbf16>
    tpu.vector_store %arg8[%c0_10, %c128], %4 {strides = array<i32>} : memref<1x142xbf16, #tpu.memory_space<vmem>>, vector<1x14xbf16>,
    %cst = arith.constant 0.000000e+00 : f32
    %6 = vector.broadcast %cst : f32 to vector<8x128xf32>
    %c0_11 = arith.constant 0 : index
    %c0_12 = arith.constant 0 : index
    %c0_13 = arith.constant 0 : index
    %c0_14 = arith.constant 0 : index
    %7 = vector.load %arg3[%c0_11, %c0_12, %c0_13, %c0_14] : memref<1x15x8x1xbf16, #tpu.memory_space<vmem>>, vector<1x1x8x1xbf16>
    %8 = vector.shape_cast %7 : vector<1x1x8x1xbf16> to vector<8x1xbf16>
    %c0_15 = arith.constant 0 : index
    %c0_16 = arith.constant 0 : index
    %9 = vector.load %arg8[%c0_15, %c0_16] : memref<1x142xbf16, #tpu.memory_space<vmem>>, vector<1x128xbf16>
    %cst_17 = arith.constant dense<0.000000e+00> : vector<8x128xf32>
    %10 = tpu.matmul %8, %9, %cst_17 {dimension_numbers = #tpu.dot_dimension_numbers<[1], [0], [0], [1], [0, 0, 1, 1], [], []>} : vector<8x1xbf16>, vector<1x128xbf16>, vector<8x128xf32> -> vector<8x128xf32>
    %11 = arith.addf %6, %10 : vector<8x128xf32>
    %c0_18 = arith.constant 0 : index
    %c1 = arith.constant 1 : index
    %c0_19 = arith.constant 0 : index
    %c0_20 = arith.constant 0 : index
    %12 = vector.load %arg3[%c0_18, %c1, %c0_19, %c0_20] : memref<1x15x8x1xbf16, #tpu.memory_space<vmem>>, vector<1x1x8x1xbf16>
    %13 = vector.shape_cast %12 : vector<1x1x8x1xbf16> to vector<8x1xbf16>
    %c0_21 = arith.constant 0 : index
    %c1_22 = arith.constant 1 : index
    %14 = vector.load %arg8[%c0_21, %c1_22] : memref<1x142xbf16, #tpu.memory_space<vmem>>, vector<1x128xbf16>
    %cst_23 = arith.constant dense<0.000000e+00> : vector<8x128xf32>
    %15 = tpu.matmul %13, %14, %cst_23 {dimension_numbers = #tpu.dot_dimension_numbers<[1], [0], [0], [1], [0, 0, 1, 1], [], []>} : vector<8x1xbf16>, vector<1x128xbf16>, vector<8x128xf32> -> vector<8x128xf32>
    %16 = arith.addf %11, %15 : vector<8x128xf32>
    %c0_24 = arith.constant 0 : index
    %c2 = arith.constant 2 : index
    %c0_25 = arith.constant 0 : index
    %c0_26 = arith.constant 0 : index
    %17 = vector.load %arg3[%c0_24, %c2, %c0_25, %c0_26] : memref<1x15x8x1xbf16, #tpu.memory_space<vmem>>, vector<1x1x8x1xbf16>
    %18 = vector.shape_cast %17 : vector<1x1x8x1xbf16> to vector<8x1xbf16>
    %c0_27 = arith.constant 0 : index
    %c2_28 = arith.constant 2 : index
    %19 = vector.load %arg8[%c0_27, %c2_28] : memref<1x142xbf16, #tpu.memory_space<vmem>>, vector<1x128xbf16>
    %cst_29 = arith.constant dense<0.000000e+00> : vector<8x128xf32>
    %20 = tpu.matmul %18, %19, %cst_29 {dimension_numbers = #tpu.dot_dimension_numbers<[1], [0], [0], [1], [0, 0, 1, 1], [], []>} : vector<8x1xbf16>, vector<1x128xbf16>, vector<8x128xf32> -> vector<8x128xf32>
    %21 = arith.addf %16, %20 : vector<8x128xf32>
    %c0_30 = arith.constant 0 : index
    %c3 = arith.constant 3 : index
    %c0_31 = arith.constant 0 : index
    %c0_32 = arith.constant 0 : index
    %22 = vector.load %arg3[%c0_30, %c3, %c0_31, %c0_32] : memref<1x15x8x1xbf16, #tpu.memory_space<vmem>>, vector<1x1x8x1xbf16>
    %23 = vector.shape_cast %22 : vector<1x1x8x1xbf16> to vector<8x1xbf16>
    %c0_33 = arith.constant 0 : index
    %c3_34 = arith.constant 3 : index
    %24 = vector.load %arg8[%c0_33, %c3_34] : memref<1x142xbf16, #tpu.memory_space<vmem>>, vector<1x128xbf16>
    %cst_35 = arith.constant dense<0.000000e+00> : vector<8x128xf32>
    %25 = tpu.matmul %23, %24, %cst_35 {dimension_numbers = #tpu.dot_dimension_numbers<[1], [0], [0], [1], [0, 0, 1, 1], [], []>} : vector<8x1xbf16>, vector<1x128xbf16>, vector<8x128xf32> -> vector<8x128xf32>
    %26 = arith.addf %21, %25 : vector<8x128xf32>
    %c0_36 = arith.constant 0 : index
    %c4 = arith.constant 4 : index
    %c0_37 = arith.constant 0 : index
    %c0_38 = arith.constant 0 : index
    %27 = vector.load %arg3[%c0_36, %c4, %c0_37, %c0_38] : memref<1x15x8x1xbf16, #tpu.memory_space<vmem>>, vector<1x1x8x1xbf16>
    %28 = vector.shape_cast %27 : vector<1x1x8x1xbf16> to vector<8x1xbf16>
    %c0_39 = arith.constant 0 : index
    %c4_40 = arith.constant 4 : index
    %29 = vector.load %arg8[%c0_39, %c4_40] : memref<1x142xbf16, #tpu.memory_space<vmem>>, vector<1x128xbf16>
    %cst_41 = arith.constant dense<0.000000e+00> : vector<8x128xf32>
    %30 = tpu.matmul %28, %29, %cst_41 {dimension_numbers = #tpu.dot_dimension_numbers<[1], [0], [0], [1], [0, 0, 1, 1], [], []>} : vector<8x1xbf16>, vector<1x128xbf16>, vector<8x128xf32> -> vector<8x128xf32>
    %31 = arith.addf %26, %30 : vector<8x128xf32>
    %c0_42 = arith.constant 0 : index
    %c5 = arith.constant 5 : index
    %c0_43 = arith.constant 0 : index
    %c0_44 = arith.constant 0 : index
    %32 = vector.load %arg3[%c0_42, %c5, %c0_43, %c0_44] : memref<1x15x8x1xbf16, #tpu.memory_space<vmem>>, vector<1x1x8x1xbf16>
    %33 = vector.shape_cast %32 : vector<1x1x8x1xbf16> to vector<8x1xbf16>
    %c0_45 = arith.constant 0 : index
    %c5_46 = arith.constant 5 : index
    %34 = vector.load %arg8[%c0_45, %c5_46] : memref<1x142xbf16, #tpu.memory_space<vmem>>, vector<1x128xbf16>
    %cst_47 = arith.constant dense<0.000000e+00> : vector<8x128xf32>
    %35 = tpu.matmul %33, %34, %cst_47 {dimension_numbers = #tpu.dot_dimension_numbers<[1], [0], [0], [1], [0, 0, 1, 1], [], []>} : vector<8x1xbf16>, vector<1x128xbf16>, vector<8x128xf32> -> vector<8x128xf32>
    %36 = arith.addf %31, %35 : vector<8x128xf32>
    %c0_48 = arith.constant 0 : index
    %c6 = arith.constant 6 : index
    %c0_49 = arith.constant 0 : index
    %c0_50 = arith.constant 0 : index
    %37 = vector.load %arg3[%c0_48, %c6, %c0_49, %c0_50] : memref<1x15x8x1xbf16, #tpu.memory_space<vmem>>, vector<1x1x8x1xbf16>
    %38 = vector.shape_cast %37 : vector<1x1x8x1xbf16> to vector<8x1xbf16>
    %c0_51 = arith.constant 0 : index
    %c6_52 = arith.constant 6 : index
    %39 = vector.load %arg8[%c0_51, %c6_52] : memref<1x142xbf16, #tpu.memory_space<vmem>>, vector<1x128xbf16>
    %cst_53 = arith.constant dense<0.000000e+00> : vector<8x128xf32>
    %40 = tpu.matmul %38, %39, %cst_53 {dimension_numbers = #tpu.dot_dimension_numbers<[1], [0], [0], [1], [0, 0, 1, 1], [], []>} : vector<8x1xbf16>, vector<1x128xbf16>, vector<8x128xf32> -> vector<8x128xf32>
    %41 = arith.addf %36, %40 : vector<8x128xf32>
    %c0_54 = arith.constant 0 : index
    %c7 = arith.constant 7 : index
    %c0_55 = arith.constant 0 : index
    %c0_56 = arith.constant 0 : index
    %42 = vector.load %arg3[%c0_54, %c7, %c0_55, %c0_56] : memref<1x15x8x1xbf16, #tpu.memory_space<vmem>>, vector<1x1x8x1xbf16>
    %43 = vector.shape_cast %42 : vector<1x1x8x1xbf16> to vector<8x1xbf16>
    %c0_57 = arith.constant 0 : index
    %c7_58 = arith.constant 7 : index
    %44 = vector.load %arg8[%c0_57, %c7_58] : memref<1x142xbf16, #tpu.memory_space<vmem>>, vector<1x128xbf16>
    %cst_59 = arith.constant dense<0.000000e+00> : vector<8x128xf32>
    %45 = tpu.matmul %43, %44, %cst_59 {dimension_numbers = #tpu.dot_dimension_numbers<[1], [0], [0], [1], [0, 0, 1, 1], [], []>} : vector<8x1xbf16>, vector<1x128xbf16>, vector<8x128xf32> -> vector<8x128xf32>
    %46 = arith.addf %41, %45 : vector<8x128xf32>
    %c0_60 = arith.constant 0 : index
    %c8 = arith.constant 8 : index
    %c0_61 = arith.constant 0 : index
    %c0_62 = arith.constant 0 : index
    %47 = vector.load %arg3[%c0_60, %c8, %c0_61, %c0_62] : memref<1x15x8x1xbf16, #tpu.memory_space<vmem>>, vector<1x1x8x1xbf16>
    %48 = vector.shape_cast %47 : vector<1x1x8x1xbf16> to vector<8x1xbf16>
    %c0_63 = arith.constant 0 : index
    %c8_64 = arith.constant 8 : index
    %49 = vector.load %arg8[%c0_63, %c8_64] : memref<1x142xbf16, #tpu.memory_space<vmem>>, vector<1x128xbf16>
    %cst_65 = arith.constant dense<0.000000e+00> : vector<8x128xf32>
    %50 = tpu.matmul %48, %49, %cst_65 {dimension_numbers = #tpu.dot_dimension_numbers<[1], [0], [0], [1], [0, 0, 1, 1], [], []>} : vector<8x1xbf16>, vector<1x128xbf16>, vector<8x128xf32> -> vector<8x128xf32>
    %51 = arith.addf %46, %50 : vector<8x128xf32>
    %c0_66 = arith.constant 0 : index
    %c9 = arith.constant 9 : index
    %c0_67 = arith.constant 0 : index
    %c0_68 = arith.constant 0 : index
    %52 = vector.load %arg3[%c0_66, %c9, %c0_67, %c0_68] : memref<1x15x8x1xbf16, #tpu.memory_space<vmem>>, vector<1x1x8x1xbf16>
    %53 = vector.shape_cast %52 : vector<1x1x8x1xbf16> to vector<8x1xbf16>
    %c0_69 = arith.constant 0 : index
    %c9_70 = arith.constant 9 : index
    %54 = vector.load %arg8[%c0_69, %c9_70] : memref<1x142xbf16, #tpu.memory_space<vmem>>, vector<1x128xbf16>
    %cst_71 = arith.constant dense<0.000000e+00> : vector<8x128xf32>
    %55 = tpu.matmul %53, %54, %cst_71 {dimension_numbers = #tpu.dot_dimension_numbers<[1], [0], [0], [1], [0, 0, 1, 1], [], []>} : vector<8x1xbf16>, vector<1x128xbf16>, vector<8x128xf32> -> vector<8x128xf32>
    %56 = arith.addf %51, %55 : vector<8x128xf32>
    %c0_72 = arith.constant 0 : index
    %c10 = arith.constant 10 : index
    %c0_73 = arith.constant 0 : index
    %c0_74 = arith.constant 0 : index
    %57 = vector.load %arg3[%c0_72, %c10, %c0_73, %c0_74] : memref<1x15x8x1xbf16, #tpu.memory_space<vmem>>, vector<1x1x8x1xbf16>
    %58 = vector.shape_cast %57 : vector<1x1x8x1xbf16> to vector<8x1xbf16>
    %c0_75 = arith.constant 0 : index
    %c10_76 = arith.constant 10 : index
    %59 = vector.load %arg8[%c0_75, %c10_76] : memref<1x142xbf16, #tpu.memory_space<vmem>>, vector<1x128xbf16>
    %cst_77 = arith.constant dense<0.000000e+00> : vector<8x128xf32>
    %60 = tpu.matmul %58, %59, %cst_77 {dimension_numbers = #tpu.dot_dimension_numbers<[1], [0], [0], [1], [0, 0, 1, 1], [], []>} : vector<8x1xbf16>, vector<1x128xbf16>, vector<8x128xf32> -> vector<8x128xf32>
    %61 = arith.addf %56, %60 : vector<8x128xf32>
    %c0_78 = arith.constant 0 : index
    %c11 = arith.constant 11 : index
    %c0_79 = arith.constant 0 : index
    %c0_80 = arith.constant 0 : index
    %62 = vector.load %arg3[%c0_78, %c11, %c0_79, %c0_80] : memref<1x15x8x1xbf16, #tpu.memory_space<vmem>>, vector<1x1x8x1xbf16>
    %63 = vector.shape_cast %62 : vector<1x1x8x1xbf16> to vector<8x1xbf16>
    %c0_81 = arith.constant 0 : index
    %c11_82 = arith.constant 11 : index
    %64 = vector.load %arg8[%c0_81, %c11_82] : memref<1x142xbf16, #tpu.memory_space<vmem>>, vector<1x128xbf16>
    %cst_83 = arith.constant dense<0.000000e+00> : vector<8x128xf32>
    %65 = tpu.matmul %63, %64, %cst_83 {dimension_numbers = #tpu.dot_dimension_numbers<[1], [0], [0], [1], [0, 0, 1, 1], [], []>} : vector<8x1xbf16>, vector<1x128xbf16>, vector<8x128xf32> -> vector<8x128xf32>
    %66 = arith.addf %61, %65 : vector<8x128xf32>
    %c0_84 = arith.constant 0 : index
    %c12 = arith.constant 12 : index
    %c0_85 = arith.constant 0 : index
    %c0_86 = arith.constant 0 : index
    %67 = vector.load %arg3[%c0_84, %c12, %c0_85, %c0_86] : memref<1x15x8x1xbf16, #tpu.memory_space<vmem>>, vector<1x1x8x1xbf16>
    %68 = vector.shape_cast %67 : vector<1x1x8x1xbf16> to vector<8x1xbf16>
    %c0_87 = arith.constant 0 : index
    %c12_88 = arith.constant 12 : index
    %69 = vector.load %arg8[%c0_87, %c12_88] : memref<1x142xbf16, #tpu.memory_space<vmem>>, vector<1x128xbf16>
    %cst_89 = arith.constant dense<0.000000e+00> : vector<8x128xf32>
    %70 = tpu.matmul %68, %69, %cst_89 {dimension_numbers = #tpu.dot_dimension_numbers<[1], [0], [0], [1], [0, 0, 1, 1], [], []>} : vector<8x1xbf16>, vector<1x128xbf16>, vector<8x128xf32> -> vector<8x128xf32>
    %71 = arith.addf %66, %70 : vector<8x128xf32>
    %c0_90 = arith.constant 0 : index
    %c13 = arith.constant 13 : index
    %c0_91 = arith.constant 0 : index
    %c0_92 = arith.constant 0 : index
    %72 = vector.load %arg3[%c0_90, %c13, %c0_91, %c0_92] : memref<1x15x8x1xbf16, #tpu.memory_space<vmem>>, vector<1x1x8x1xbf16>
    %73 = vector.shape_cast %72 : vector<1x1x8x1xbf16> to vector<8x1xbf16>
    %c0_93 = arith.constant 0 : index
    %c13_94 = arith.constant 13 : index
    %74 = vector.load %arg8[%c0_93, %c13_94] : memref<1x142xbf16, #tpu.memory_space<vmem>>, vector<1x128xbf16>
    %cst_95 = arith.constant dense<0.000000e+00> : vector<8x128xf32>
    %75 = tpu.matmul %73, %74, %cst_95 {dimension_numbers = #tpu.dot_dimension_numbers<[1], [0], [0], [1], [0, 0, 1, 1], [], []>} : vector<8x1xbf16>, vector<1x128xbf16>, vector<8x128xf32> -> vector<8x128xf32>
    %76 = arith.addf %71, %75 : vector<8x128xf32>
    %c0_96 = arith.constant 0 : index
    %c14 = arith.constant 14 : index
    %c0_97 = arith.constant 0 : index
    %c0_98 = arith.constant 0 : index
    %77 = vector.load %arg3[%c0_96, %c14, %c0_97, %c0_98] : memref<1x15x8x1xbf16, #tpu.memory_space<vmem>>, vector<1x1x8x1xbf16>
    %78 = vector.shape_cast %77 : vector<1x1x8x1xbf16> to vector<8x1xbf16>
    %c0_99 = arith.constant 0 : index
    %c14_100 = arith.constant 14 : index
    %79 = vector.load %arg8[%c0_99, %c14_100] : memref<1x142xbf16, #tpu.memory_space<vmem>>, vector<1x128xbf16>
    %cst_101 = arith.constant dense<0.000000e+00> : vector<8x128xf32>
    %80 = tpu.matmul %78, %79, %cst_101 {dimension_numbers = #tpu.dot_dimension_numbers<[1], [0], [0], [1], [0, 0, 1, 1], [], []>} : vector<8x1xbf16>, vector<1x128xbf16>, vector<8x128xf32> -> vector<8x128xf32>
    %81 = arith.addf %76, %80 : vector<8x128xf32>
    %c0_102 = arith.constant 0 : index
    %c0_103 = arith.constant 0 : index
    %c0_104 = arith.constant 0 : index
    %82 = vector.load %arg4[%c0_102, %c0_103, %c0_104] : memref<1x8x1xf32, #tpu.memory_space<vmem>>, vector<1x8x1xf32>
    %83 = vector.shape_cast %82 : vector<1x8x1xf32> to vector<8x1xf32>
    %84 = vector.broadcast %83 : vector<8x1xf32> to vector<8x128xf32>
    %85 = arith.addf %81, %84 : vector<8x128xf32>
    %cst_105 = arith.constant 0.000000e+00 : f32
    %86 = vector.broadcast %cst_105 : f32 to vector<8x128xf32>
    %87 = arith.cmpf oge, %85, %86 : vector<8x128xf32>
    %cst_106 = arith.constant 1.000000e-01 : f32
    %88 = vector.broadcast %cst_106 : f32 to vector<8x128xf32>
    %89 = arith.mulf %88, %85 : vector<8x128xf32>
    %90 = arith.select %87, %85, %89 : vector<8x128xi1>, vector<8x128xf32>
    %c0_107 = arith.constant 0 : index
    %c0_108 = arith.constant 0 : index
    %c0_109 = arith.constant 0 : index
    %91 = vector.load %arg7[%c0_107, %c0_108, %c0_109] : memref<1x8x128xf32, #tpu.memory_space<vmem>>, vector<1x8x128xf32>
    %92 = vector.shape_cast %91 : vector<1x8x128xf32> to vector<8x128xf32>
    %93 = vector.shape_cast %90 : vector<8x128xf32> to vector<1x8x128xf32>
    tpu.vector_store %arg7[%c0_107, %c0_108, %c0_109], %93 {strides = array<i32>} : memref<1x8x128xf32, #tpu.memory_space<vmem>>, vector<1x8x128xf32>,
    return
  }
  func.func @transform_0(%arg0: i32, %arg1: i32, %arg2: i32) -> (i32, i32, i32, i32) {
    %c0_i32 = arith.constant 0 : i32
    %c0_i32_0 = arith.constant 0 : i32
    %c0_i32_1 = arith.constant 0 : i32
    %c0_i32_2 = arith.constant 0 : i32
    return %arg0, %c0_i32, %c0_i32_0, %c0_i32_1 : i32, i32, i32, i32
  }
  func.func @transform_1(%arg0: i32, %arg1: i32, %arg2: i32) -> (i32, i32, i32) {
    %c0_i32 = arith.constant 0 : i32
    %c0_i32_0 = arith.constant 0 : i32
    %c0_i32_1 = arith.constant 0 : i32
    return %arg0, %c0_i32, %c0_i32_0 : i32, i32, i32
  }
  func.func @transform_2(%arg0: i32, %arg1: i32, %arg2: i32) -> (i32, i32, i32, i32) {
    %c0_i32 = arith.constant 0 : i32
    %c0_i32_0 = arith.constant 0 : i32
    return %arg1, %arg0, %c0_i32, %arg2 : i32, i32, i32, i32
  }
  func.func @transform_3(%arg0: i32, %arg1: i32, %arg2: i32) -> (i32, i32, i32, i32, i32) {
    %c0_i32 = arith.constant 0 : i32
    %c0_i32_0 = arith.constant 0 : i32
    %c0_i32_1 = arith.constant 0 : i32
    return %arg1, %arg0, %arg2, %c0_i32, %c0_i32_0 : i32, i32, i32, i32, i32
  }
  func.func @transform_4(%arg0: i32, %arg1: i32, %arg2: i32) -> (i32, i32, i32) {
    %c0_i32 = arith.constant 0 : i32
    return %arg1, %arg0, %arg2 : i32, i32, i32
  }
}

module attributes {stable_mosaic.version = 11 : i64} {
  func.func @kernel(%arg0: i32, %arg1: i32, %arg2: i32, %arg3: memref<1x21x8x8xbf16, #tpu.memory_space<vmem>>, %arg4: memref<1x8x1xf32, #tpu.memory_space<vmem>>, %arg5: memref<1x1x8x128xbf16, #tpu.memory_space<vmem>>, %arg6: memref<1x1x1x8x20xbf16, #tpu.memory_space<vmem>>, %arg7: memref<1x8x128xf32, #tpu.memory_space<vmem>>, %arg8: memref<8x148xbf16, #tpu.memory_space<vmem>>) attributes {dimension_semantics = [#tpu.dimension_semantics<parallel>, #tpu.dimension_semantics<parallel>, #tpu.dimension_semantics<arbitrary>], iteration_bounds = array<i64: 2, 2, 1>, scalar_prefetch = 0 : i64, scratch_operands = 1 : i64, tpu.core_type = #tpu.core_type<tc>, window_params = [{transform_indices = @transform_0, window_bounds = array<i64: 1, 21, 8, 8>}, {transform_indices = @transform_1, window_bounds = array<i64: 1, 8, 1>}, {transform_indices = @transform_2, window_bounds = array<i64: 1, 1, 8, 128>}, {transform_indices = @transform_3, window_bounds = array<i64: 1, 1, 1, 8, 20>}, {transform_indices = @transform_4, window_bounds = array<i64: 1, 8, 128>}]} {
    %c0 = arith.constant 0 : index
    %c0_0 = arith.constant 0 : index
    %c0_1 = arith.constant 0 : index
    %c0_2 = arith.constant 0 : index
    %0 = vector.load %arg5[%c0, %c0_0, %c0_1, %c0_2] : memref<1x1x8x128xbf16, #tpu.memory_space<vmem>>, vector<1x1x8x128xbf16>
    %1 = vector.shape_cast %0 : vector<1x1x8x128xbf16> to vector<8x128xbf16>
    %c0_3 = arith.constant 0 : index
    %c0_4 = arith.constant 0 : index
    %2 = vector.load %arg8[%c0_3, %c0_4] : memref<8x148xbf16, #tpu.memory_space<vmem>>, vector<8x128xbf16>
    tpu.vector_store %arg8[%c0_3, %c0_4], %1 {strides = array<i32>} : memref<8x148xbf16, #tpu.memory_space<vmem>>, vector<8x128xbf16>,
    %c0_5 = arith.constant 0 : index
    %c0_6 = arith.constant 0 : index
    %c0_7 = arith.constant 0 : index
    %c0_8 = arith.constant 0 : index
    %c0_9 = arith.constant 0 : index
    %3 = vector.load %arg6[%c0_5, %c0_6, %c0_7, %c0_8, %c0_9] : memref<1x1x1x8x20xbf16, #tpu.memory_space<vmem>>, vector<1x1x1x8x20xbf16>
    %4 = vector.shape_cast %3 : vector<1x1x1x8x20xbf16> to vector<8x20xbf16>
    %c0_10 = arith.constant 0 : index
    %c128 = arith.constant 128 : index
    %5 = vector.load %arg8[%c0_10, %c128] : memref<8x148xbf16, #tpu.memory_space<vmem>>, vector<8x20xbf16>
    tpu.vector_store %arg8[%c0_10, %c128], %4 {strides = array<i32>} : memref<8x148xbf16, #tpu.memory_space<vmem>>, vector<8x20xbf16>,
    %cst = arith.constant 0.000000e+00 : f32
    %6 = vector.broadcast %cst : f32 to vector<8x128xf32>
    %c0_11 = arith.constant 0 : index
    %c0_12 = arith.constant 0 : index
    %c0_13 = arith.constant 0 : index
    %c0_14 = arith.constant 0 : index
    %7 = vector.load %arg3[%c0_11, %c0_12, %c0_13, %c0_14] : memref<1x21x8x8xbf16, #tpu.memory_space<vmem>>, vector<1x1x8x8xbf16>
    %8 = vector.shape_cast %7 : vector<1x1x8x8xbf16> to vector<8x8xbf16>
    %c0_15 = arith.constant 0 : index
    %c0_16 = arith.constant 0 : index
    %9 = vector.load %arg8[%c0_15, %c0_16] : memref<8x148xbf16, #tpu.memory_space<vmem>>, vector<8x128xbf16>
    %cst_17 = arith.constant dense<0.000000e+00> : vector<8x128xf32>
    %10 = tpu.matmul %8, %9, %cst_17 {dimension_numbers = #tpu.dot_dimension_numbers<[1], [0], [0], [1], [0, 0, 1, 1], [], []>} : vector<8x8xbf16>, vector<8x128xbf16>, vector<8x128xf32> -> vector<8x128xf32>
    %11 = arith.addf %6, %10 : vector<8x128xf32>
    %c0_18 = arith.constant 0 : index
    %c1 = arith.constant 1 : index
    %c0_19 = arith.constant 0 : index
    %c0_20 = arith.constant 0 : index
    %12 = vector.load %arg3[%c0_18, %c1, %c0_19, %c0_20] : memref<1x21x8x8xbf16, #tpu.memory_space<vmem>>, vector<1x1x8x8xbf16>
    %13 = vector.shape_cast %12 : vector<1x1x8x8xbf16> to vector<8x8xbf16>
    %c0_21 = arith.constant 0 : index
    %c1_22 = arith.constant 1 : index
    %14 = vector.load %arg8[%c0_21, %c1_22] : memref<8x148xbf16, #tpu.memory_space<vmem>>, vector<8x128xbf16>
    %cst_23 = arith.constant dense<0.000000e+00> : vector<8x128xf32>
    %15 = tpu.matmul %13, %14, %cst_23 {dimension_numbers = #tpu.dot_dimension_numbers<[1], [0], [0], [1], [0, 0, 1, 1], [], []>} : vector<8x8xbf16>, vector<8x128xbf16>, vector<8x128xf32> -> vector<8x128xf32>
    %16 = arith.addf %11, %15 : vector<8x128xf32>
    %c0_24 = arith.constant 0 : index
    %c2 = arith.constant 2 : index
    %c0_25 = arith.constant 0 : index
    %c0_26 = arith.constant 0 : index
    %17 = vector.load %arg3[%c0_24, %c2, %c0_25, %c0_26] : memref<1x21x8x8xbf16, #tpu.memory_space<vmem>>, vector<1x1x8x8xbf16>
    %18 = vector.shape_cast %17 : vector<1x1x8x8xbf16> to vector<8x8xbf16>
    %c0_27 = arith.constant 0 : index
    %c2_28 = arith.constant 2 : index
    %19 = vector.load %arg8[%c0_27, %c2_28] : memref<8x148xbf16, #tpu.memory_space<vmem>>, vector<8x128xbf16>
    %cst_29 = arith.constant dense<0.000000e+00> : vector<8x128xf32>
    %20 = tpu.matmul %18, %19, %cst_29 {dimension_numbers = #tpu.dot_dimension_numbers<[1], [0], [0], [1], [0, 0, 1, 1], [], []>} : vector<8x8xbf16>, vector<8x128xbf16>, vector<8x128xf32> -> vector<8x128xf32>
    %21 = arith.addf %16, %20 : vector<8x128xf32>
    %c0_30 = arith.constant 0 : index
    %c3 = arith.constant 3 : index
    %c0_31 = arith.constant 0 : index
    %c0_32 = arith.constant 0 : index
    %22 = vector.load %arg3[%c0_30, %c3, %c0_31, %c0_32] : memref<1x21x8x8xbf16, #tpu.memory_space<vmem>>, vector<1x1x8x8xbf16>
    %23 = vector.shape_cast %22 : vector<1x1x8x8xbf16> to vector<8x8xbf16>
    %c0_33 = arith.constant 0 : index
    %c3_34 = arith.constant 3 : index
    %24 = vector.load %arg8[%c0_33, %c3_34] : memref<8x148xbf16, #tpu.memory_space<vmem>>, vector<8x128xbf16>
    %cst_35 = arith.constant dense<0.000000e+00> : vector<8x128xf32>
    %25 = tpu.matmul %23, %24, %cst_35 {dimension_numbers = #tpu.dot_dimension_numbers<[1], [0], [0], [1], [0, 0, 1, 1], [], []>} : vector<8x8xbf16>, vector<8x128xbf16>, vector<8x128xf32> -> vector<8x128xf32>
    %26 = arith.addf %21, %25 : vector<8x128xf32>
    %c0_36 = arith.constant 0 : index
    %c4 = arith.constant 4 : index
    %c0_37 = arith.constant 0 : index
    %c0_38 = arith.constant 0 : index
    %27 = vector.load %arg3[%c0_36, %c4, %c0_37, %c0_38] : memref<1x21x8x8xbf16, #tpu.memory_space<vmem>>, vector<1x1x8x8xbf16>
    %28 = vector.shape_cast %27 : vector<1x1x8x8xbf16> to vector<8x8xbf16>
    %c0_39 = arith.constant 0 : index
    %c4_40 = arith.constant 4 : index
    %29 = vector.load %arg8[%c0_39, %c4_40] : memref<8x148xbf16, #tpu.memory_space<vmem>>, vector<8x128xbf16>
    %cst_41 = arith.constant dense<0.000000e+00> : vector<8x128xf32>
    %30 = tpu.matmul %28, %29, %cst_41 {dimension_numbers = #tpu.dot_dimension_numbers<[1], [0], [0], [1], [0, 0, 1, 1], [], []>} : vector<8x8xbf16>, vector<8x128xbf16>, vector<8x128xf32> -> vector<8x128xf32>
    %31 = arith.addf %26, %30 : vector<8x128xf32>
    %c0_42 = arith.constant 0 : index
    %c5 = arith.constant 5 : index
    %c0_43 = arith.constant 0 : index
    %c0_44 = arith.constant 0 : index
    %32 = vector.load %arg3[%c0_42, %c5, %c0_43, %c0_44] : memref<1x21x8x8xbf16, #tpu.memory_space<vmem>>, vector<1x1x8x8xbf16>
    %33 = vector.shape_cast %32 : vector<1x1x8x8xbf16> to vector<8x8xbf16>
    %c0_45 = arith.constant 0 : index
    %c5_46 = arith.constant 5 : index
    %34 = vector.load %arg8[%c0_45, %c5_46] : memref<8x148xbf16, #tpu.memory_space<vmem>>, vector<8x128xbf16>
    %cst_47 = arith.constant dense<0.000000e+00> : vector<8x128xf32>
    %35 = tpu.matmul %33, %34, %cst_47 {dimension_numbers = #tpu.dot_dimension_numbers<[1], [0], [0], [1], [0, 0, 1, 1], [], []>} : vector<8x8xbf16>, vector<8x128xbf16>, vector<8x128xf32> -> vector<8x128xf32>
    %36 = arith.addf %31, %35 : vector<8x128xf32>
    %c0_48 = arith.constant 0 : index
    %c6 = arith.constant 6 : index
    %c0_49 = arith.constant 0 : index
    %c0_50 = arith.constant 0 : index
    %37 = vector.load %arg3[%c0_48, %c6, %c0_49, %c0_50] : memref<1x21x8x8xbf16, #tpu.memory_space<vmem>>, vector<1x1x8x8xbf16>
    %38 = vector.shape_cast %37 : vector<1x1x8x8xbf16> to vector<8x8xbf16>
    %c0_51 = arith.constant 0 : index
    %c6_52 = arith.constant 6 : index
    %39 = vector.load %arg8[%c0_51, %c6_52] : memref<8x148xbf16, #tpu.memory_space<vmem>>, vector<8x128xbf16>
    %cst_53 = arith.constant dense<0.000000e+00> : vector<8x128xf32>
    %40 = tpu.matmul %38, %39, %cst_53 {dimension_numbers = #tpu.dot_dimension_numbers<[1], [0], [0], [1], [0, 0, 1, 1], [], []>} : vector<8x8xbf16>, vector<8x128xbf16>, vector<8x128xf32> -> vector<8x128xf32>
    %41 = arith.addf %36, %40 : vector<8x128xf32>
    %c0_54 = arith.constant 0 : index
    %c7 = arith.constant 7 : index
    %c0_55 = arith.constant 0 : index
    %c0_56 = arith.constant 0 : index
    %42 = vector.load %arg3[%c0_54, %c7, %c0_55, %c0_56] : memref<1x21x8x8xbf16, #tpu.memory_space<vmem>>, vector<1x1x8x8xbf16>
    %43 = vector.shape_cast %42 : vector<1x1x8x8xbf16> to vector<8x8xbf16>
    %c0_57 = arith.constant 0 : index
    %c7_58 = arith.constant 7 : index
    %44 = vector.load %arg8[%c0_57, %c7_58] : memref<8x148xbf16, #tpu.memory_space<vmem>>, vector<8x128xbf16>
    %cst_59 = arith.constant dense<0.000000e+00> : vector<8x128xf32>
    %45 = tpu.matmul %43, %44, %cst_59 {dimension_numbers = #tpu.dot_dimension_numbers<[1], [0], [0], [1], [0, 0, 1, 1], [], []>} : vector<8x8xbf16>, vector<8x128xbf16>, vector<8x128xf32> -> vector<8x128xf32>
    %46 = arith.addf %41, %45 : vector<8x128xf32>
    %c0_60 = arith.constant 0 : index
    %c8 = arith.constant 8 : index
    %c0_61 = arith.constant 0 : index
    %c0_62 = arith.constant 0 : index
    %47 = vector.load %arg3[%c0_60, %c8, %c0_61, %c0_62] : memref<1x21x8x8xbf16, #tpu.memory_space<vmem>>, vector<1x1x8x8xbf16>
    %48 = vector.shape_cast %47 : vector<1x1x8x8xbf16> to vector<8x8xbf16>
    %c0_63 = arith.constant 0 : index
    %c8_64 = arith.constant 8 : index
    %49 = vector.load %arg8[%c0_63, %c8_64] : memref<8x148xbf16, #tpu.memory_space<vmem>>, vector<8x128xbf16>
    %cst_65 = arith.constant dense<0.000000e+00> : vector<8x128xf32>
    %50 = tpu.matmul %48, %49, %cst_65 {dimension_numbers = #tpu.dot_dimension_numbers<[1], [0], [0], [1], [0, 0, 1, 1], [], []>} : vector<8x8xbf16>, vector<8x128xbf16>, vector<8x128xf32> -> vector<8x128xf32>
    %51 = arith.addf %46, %50 : vector<8x128xf32>
    %c0_66 = arith.constant 0 : index
    %c9 = arith.constant 9 : index
    %c0_67 = arith.constant 0 : index
    %c0_68 = arith.constant 0 : index
    %52 = vector.load %arg3[%c0_66, %c9, %c0_67, %c0_68] : memref<1x21x8x8xbf16, #tpu.memory_space<vmem>>, vector<1x1x8x8xbf16>
    %53 = vector.shape_cast %52 : vector<1x1x8x8xbf16> to vector<8x8xbf16>
    %c0_69 = arith.constant 0 : index
    %c9_70 = arith.constant 9 : index
    %54 = vector.load %arg8[%c0_69, %c9_70] : memref<8x148xbf16, #tpu.memory_space<vmem>>, vector<8x128xbf16>
    %cst_71 = arith.constant dense<0.000000e+00> : vector<8x128xf32>
    %55 = tpu.matmul %53, %54, %cst_71 {dimension_numbers = #tpu.dot_dimension_numbers<[1], [0], [0], [1], [0, 0, 1, 1], [], []>} : vector<8x8xbf16>, vector<8x128xbf16>, vector<8x128xf32> -> vector<8x128xf32>
    %56 = arith.addf %51, %55 : vector<8x128xf32>
    %c0_72 = arith.constant 0 : index
    %c10 = arith.constant 10 : index
    %c0_73 = arith.constant 0 : index
    %c0_74 = arith.constant 0 : index
    %57 = vector.load %arg3[%c0_72, %c10, %c0_73, %c0_74] : memref<1x21x8x8xbf16, #tpu.memory_space<vmem>>, vector<1x1x8x8xbf16>
    %58 = vector.shape_cast %57 : vector<1x1x8x8xbf16> to vector<8x8xbf16>
    %c0_75 = arith.constant 0 : index
    %c10_76 = arith.constant 10 : index
    %59 = vector.load %arg8[%c0_75, %c10_76] : memref<8x148xbf16, #tpu.memory_space<vmem>>, vector<8x128xbf16>
    %cst_77 = arith.constant dense<0.000000e+00> : vector<8x128xf32>
    %60 = tpu.matmul %58, %59, %cst_77 {dimension_numbers = #tpu.dot_dimension_numbers<[1], [0], [0], [1], [0, 0, 1, 1], [], []>} : vector<8x8xbf16>, vector<8x128xbf16>, vector<8x128xf32> -> vector<8x128xf32>
    %61 = arith.addf %56, %60 : vector<8x128xf32>
    %c0_78 = arith.constant 0 : index
    %c11 = arith.constant 11 : index
    %c0_79 = arith.constant 0 : index
    %c0_80 = arith.constant 0 : index
    %62 = vector.load %arg3[%c0_78, %c11, %c0_79, %c0_80] : memref<1x21x8x8xbf16, #tpu.memory_space<vmem>>, vector<1x1x8x8xbf16>
    %63 = vector.shape_cast %62 : vector<1x1x8x8xbf16> to vector<8x8xbf16>
    %c0_81 = arith.constant 0 : index
    %c11_82 = arith.constant 11 : index
    %64 = vector.load %arg8[%c0_81, %c11_82] : memref<8x148xbf16, #tpu.memory_space<vmem>>, vector<8x128xbf16>
    %cst_83 = arith.constant dense<0.000000e+00> : vector<8x128xf32>
    %65 = tpu.matmul %63, %64, %cst_83 {dimension_numbers = #tpu.dot_dimension_numbers<[1], [0], [0], [1], [0, 0, 1, 1], [], []>} : vector<8x8xbf16>, vector<8x128xbf16>, vector<8x128xf32> -> vector<8x128xf32>
    %66 = arith.addf %61, %65 : vector<8x128xf32>
    %c0_84 = arith.constant 0 : index
    %c12 = arith.constant 12 : index
    %c0_85 = arith.constant 0 : index
    %c0_86 = arith.constant 0 : index
    %67 = vector.load %arg3[%c0_84, %c12, %c0_85, %c0_86] : memref<1x21x8x8xbf16, #tpu.memory_space<vmem>>, vector<1x1x8x8xbf16>
    %68 = vector.shape_cast %67 : vector<1x1x8x8xbf16> to vector<8x8xbf16>
    %c0_87 = arith.constant 0 : index
    %c12_88 = arith.constant 12 : index
    %69 = vector.load %arg8[%c0_87, %c12_88] : memref<8x148xbf16, #tpu.memory_space<vmem>>, vector<8x128xbf16>
    %cst_89 = arith.constant dense<0.000000e+00> : vector<8x128xf32>
    %70 = tpu.matmul %68, %69, %cst_89 {dimension_numbers = #tpu.dot_dimension_numbers<[1], [0], [0], [1], [0, 0, 1, 1], [], []>} : vector<8x8xbf16>, vector<8x128xbf16>, vector<8x128xf32> -> vector<8x128xf32>
    %71 = arith.addf %66, %70 : vector<8x128xf32>
    %c0_90 = arith.constant 0 : index
    %c13 = arith.constant 13 : index
    %c0_91 = arith.constant 0 : index
    %c0_92 = arith.constant 0 : index
    %72 = vector.load %arg3[%c0_90, %c13, %c0_91, %c0_92] : memref<1x21x8x8xbf16, #tpu.memory_space<vmem>>, vector<1x1x8x8xbf16>
    %73 = vector.shape_cast %72 : vector<1x1x8x8xbf16> to vector<8x8xbf16>
    %c0_93 = arith.constant 0 : index
    %c13_94 = arith.constant 13 : index
    %74 = vector.load %arg8[%c0_93, %c13_94] : memref<8x148xbf16, #tpu.memory_space<vmem>>, vector<8x128xbf16>
    %cst_95 = arith.constant dense<0.000000e+00> : vector<8x128xf32>
    %75 = tpu.matmul %73, %74, %cst_95 {dimension_numbers = #tpu.dot_dimension_numbers<[1], [0], [0], [1], [0, 0, 1, 1], [], []>} : vector<8x8xbf16>, vector<8x128xbf16>, vector<8x128xf32> -> vector<8x128xf32>
    %76 = arith.addf %71, %75 : vector<8x128xf32>
    %c0_96 = arith.constant 0 : index
    %c14 = arith.constant 14 : index
    %c0_97 = arith.constant 0 : index
    %c0_98 = arith.constant 0 : index
    %77 = vector.load %arg3[%c0_96, %c14, %c0_97, %c0_98] : memref<1x21x8x8xbf16, #tpu.memory_space<vmem>>, vector<1x1x8x8xbf16>
    %78 = vector.shape_cast %77 : vector<1x1x8x8xbf16> to vector<8x8xbf16>
    %c0_99 = arith.constant 0 : index
    %c14_100 = arith.constant 14 : index
    %79 = vector.load %arg8[%c0_99, %c14_100] : memref<8x148xbf16, #tpu.memory_space<vmem>>, vector<8x128xbf16>
    %cst_101 = arith.constant dense<0.000000e+00> : vector<8x128xf32>
    %80 = tpu.matmul %78, %79, %cst_101 {dimension_numbers = #tpu.dot_dimension_numbers<[1], [0], [0], [1], [0, 0, 1, 1], [], []>} : vector<8x8xbf16>, vector<8x128xbf16>, vector<8x128xf32> -> vector<8x128xf32>
    %81 = arith.addf %76, %80 : vector<8x128xf32>
    %c0_102 = arith.constant 0 : index
    %c15 = arith.constant 15 : index
    %c0_103 = arith.constant 0 : index
    %c0_104 = arith.constant 0 : index
    %82 = vector.load %arg3[%c0_102, %c15, %c0_103, %c0_104] : memref<1x21x8x8xbf16, #tpu.memory_space<vmem>>, vector<1x1x8x8xbf16>
    %83 = vector.shape_cast %82 : vector<1x1x8x8xbf16> to vector<8x8xbf16>
    %c0_105 = arith.constant 0 : index
    %c15_106 = arith.constant 15 : index
    %84 = vector.load %arg8[%c0_105, %c15_106] : memref<8x148xbf16, #tpu.memory_space<vmem>>, vector<8x128xbf16>
    %cst_107 = arith.constant dense<0.000000e+00> : vector<8x128xf32>
    %85 = tpu.matmul %83, %84, %cst_107 {dimension_numbers = #tpu.dot_dimension_numbers<[1], [0], [0], [1], [0, 0, 1, 1], [], []>} : vector<8x8xbf16>, vector<8x128xbf16>, vector<8x128xf32> -> vector<8x128xf32>
    %86 = arith.addf %81, %85 : vector<8x128xf32>
    %c0_108 = arith.constant 0 : index
    %c16 = arith.constant 16 : index
    %c0_109 = arith.constant 0 : index
    %c0_110 = arith.constant 0 : index
    %87 = vector.load %arg3[%c0_108, %c16, %c0_109, %c0_110] : memref<1x21x8x8xbf16, #tpu.memory_space<vmem>>, vector<1x1x8x8xbf16>
    %88 = vector.shape_cast %87 : vector<1x1x8x8xbf16> to vector<8x8xbf16>
    %c0_111 = arith.constant 0 : index
    %c16_112 = arith.constant 16 : index
    %89 = vector.load %arg8[%c0_111, %c16_112] : memref<8x148xbf16, #tpu.memory_space<vmem>>, vector<8x128xbf16>
    %cst_113 = arith.constant dense<0.000000e+00> : vector<8x128xf32>
    %90 = tpu.matmul %88, %89, %cst_113 {dimension_numbers = #tpu.dot_dimension_numbers<[1], [0], [0], [1], [0, 0, 1, 1], [], []>} : vector<8x8xbf16>, vector<8x128xbf16>, vector<8x128xf32> -> vector<8x128xf32>
    %91 = arith.addf %86, %90 : vector<8x128xf32>
    %c0_114 = arith.constant 0 : index
    %c17 = arith.constant 17 : index
    %c0_115 = arith.constant 0 : index
    %c0_116 = arith.constant 0 : index
    %92 = vector.load %arg3[%c0_114, %c17, %c0_115, %c0_116] : memref<1x21x8x8xbf16, #tpu.memory_space<vmem>>, vector<1x1x8x8xbf16>
    %93 = vector.shape_cast %92 : vector<1x1x8x8xbf16> to vector<8x8xbf16>
    %c0_117 = arith.constant 0 : index
    %c17_118 = arith.constant 17 : index
    %94 = vector.load %arg8[%c0_117, %c17_118] : memref<8x148xbf16, #tpu.memory_space<vmem>>, vector<8x128xbf16>
    %cst_119 = arith.constant dense<0.000000e+00> : vector<8x128xf32>
    %95 = tpu.matmul %93, %94, %cst_119 {dimension_numbers = #tpu.dot_dimension_numbers<[1], [0], [0], [1], [0, 0, 1, 1], [], []>} : vector<8x8xbf16>, vector<8x128xbf16>, vector<8x128xf32> -> vector<8x128xf32>
    %96 = arith.addf %91, %95 : vector<8x128xf32>
    %c0_120 = arith.constant 0 : index
    %c18 = arith.constant 18 : index
    %c0_121 = arith.constant 0 : index
    %c0_122 = arith.constant 0 : index
    %97 = vector.load %arg3[%c0_120, %c18, %c0_121, %c0_122] : memref<1x21x8x8xbf16, #tpu.memory_space<vmem>>, vector<1x1x8x8xbf16>
    %98 = vector.shape_cast %97 : vector<1x1x8x8xbf16> to vector<8x8xbf16>
    %c0_123 = arith.constant 0 : index
    %c18_124 = arith.constant 18 : index
    %99 = vector.load %arg8[%c0_123, %c18_124] : memref<8x148xbf16, #tpu.memory_space<vmem>>, vector<8x128xbf16>
    %cst_125 = arith.constant dense<0.000000e+00> : vector<8x128xf32>
    %100 = tpu.matmul %98, %99, %cst_125 {dimension_numbers = #tpu.dot_dimension_numbers<[1], [0], [0], [1], [0, 0, 1, 1], [], []>} : vector<8x8xbf16>, vector<8x128xbf16>, vector<8x128xf32> -> vector<8x128xf32>
    %101 = arith.addf %96, %100 : vector<8x128xf32>
    %c0_126 = arith.constant 0 : index
    %c19 = arith.constant 19 : index
    %c0_127 = arith.constant 0 : index
    %c0_128 = arith.constant 0 : index
    %102 = vector.load %arg3[%c0_126, %c19, %c0_127, %c0_128] : memref<1x21x8x8xbf16, #tpu.memory_space<vmem>>, vector<1x1x8x8xbf16>
    %103 = vector.shape_cast %102 : vector<1x1x8x8xbf16> to vector<8x8xbf16>
    %c0_129 = arith.constant 0 : index
    %c19_130 = arith.constant 19 : index
    %104 = vector.load %arg8[%c0_129, %c19_130] : memref<8x148xbf16, #tpu.memory_space<vmem>>, vector<8x128xbf16>
    %cst_131 = arith.constant dense<0.000000e+00> : vector<8x128xf32>
    %105 = tpu.matmul %103, %104, %cst_131 {dimension_numbers = #tpu.dot_dimension_numbers<[1], [0], [0], [1], [0, 0, 1, 1], [], []>} : vector<8x8xbf16>, vector<8x128xbf16>, vector<8x128xf32> -> vector<8x128xf32>
    %106 = arith.addf %101, %105 : vector<8x128xf32>
    %c0_132 = arith.constant 0 : index
    %c20 = arith.constant 20 : index
    %c0_133 = arith.constant 0 : index
    %c0_134 = arith.constant 0 : index
    %107 = vector.load %arg3[%c0_132, %c20, %c0_133, %c0_134] : memref<1x21x8x8xbf16, #tpu.memory_space<vmem>>, vector<1x1x8x8xbf16>
    %108 = vector.shape_cast %107 : vector<1x1x8x8xbf16> to vector<8x8xbf16>
    %c0_135 = arith.constant 0 : index
    %c20_136 = arith.constant 20 : index
    %109 = vector.load %arg8[%c0_135, %c20_136] : memref<8x148xbf16, #tpu.memory_space<vmem>>, vector<8x128xbf16>
    %cst_137 = arith.constant dense<0.000000e+00> : vector<8x128xf32>
    %110 = tpu.matmul %108, %109, %cst_137 {dimension_numbers = #tpu.dot_dimension_numbers<[1], [0], [0], [1], [0, 0, 1, 1], [], []>} : vector<8x8xbf16>, vector<8x128xbf16>, vector<8x128xf32> -> vector<8x128xf32>
    %111 = arith.addf %106, %110 : vector<8x128xf32>
    %c0_138 = arith.constant 0 : index
    %c0_139 = arith.constant 0 : index
    %c0_140 = arith.constant 0 : index
    %112 = vector.load %arg4[%c0_138, %c0_139, %c0_140] : memref<1x8x1xf32, #tpu.memory_space<vmem>>, vector<1x8x1xf32>
    %113 = vector.shape_cast %112 : vector<1x8x1xf32> to vector<8x1xf32>
    %114 = vector.broadcast %113 : vector<8x1xf32> to vector<8x128xf32>
    %115 = arith.addf %111, %114 : vector<8x128xf32>
    %cst_141 = arith.constant 0.000000e+00 : f32
    %116 = vector.broadcast %cst_141 : f32 to vector<8x128xf32>
    %117 = arith.cmpf oge, %115, %116 : vector<8x128xf32>
    %cst_142 = arith.constant 1.000000e-01 : f32
    %118 = vector.broadcast %cst_142 : f32 to vector<8x128xf32>
    %119 = arith.mulf %118, %115 : vector<8x128xf32>
    %120 = arith.select %117, %115, %119 : vector<8x128xi1>, vector<8x128xf32>
    %c0_143 = arith.constant 0 : index
    %c0_144 = arith.constant 0 : index
    %c0_145 = arith.constant 0 : index
    %121 = vector.load %arg7[%c0_143, %c0_144, %c0_145] : memref<1x8x128xf32, #tpu.memory_space<vmem>>, vector<1x8x128xf32>
    %122 = vector.shape_cast %121 : vector<1x8x128xf32> to vector<8x128xf32>
    %123 = vector.shape_cast %120 : vector<8x128xf32> to vector<1x8x128xf32>
    tpu.vector_store %arg7[%c0_143, %c0_144, %c0_145], %123 {strides = array<i32>} : memref<1x8x128xf32, #tpu.memory_space<vmem>>, vector<1x8x128xf32>,
    return
  }
  func.func @transform_0(%arg0: i32, %arg1: i32, %arg2: i32) -> (i32, i32, i32, i32) {
    %c0_i32 = arith.constant 0 : i32
    %c0_i32_0 = arith.constant 0 : i32
    %c0_i32_1 = arith.constant 0 : i32
    %c0_i32_2 = arith.constant 0 : i32
    return %arg0, %c0_i32, %c0_i32_0, %c0_i32_1 : i32, i32, i32, i32
  }
  func.func @transform_1(%arg0: i32, %arg1: i32, %arg2: i32) -> (i32, i32, i32) {
    %c0_i32 = arith.constant 0 : i32
    %c0_i32_0 = arith.constant 0 : i32
    %c0_i32_1 = arith.constant 0 : i32
    return %arg0, %c0_i32, %c0_i32_0 : i32, i32, i32
  }
  func.func @transform_2(%arg0: i32, %arg1: i32, %arg2: i32) -> (i32, i32, i32, i32) {
    %c0_i32 = arith.constant 0 : i32
    %c0_i32_0 = arith.constant 0 : i32
    return %arg1, %arg0, %c0_i32, %arg2 : i32, i32, i32, i32
  }
  func.func @transform_3(%arg0: i32, %arg1: i32, %arg2: i32) -> (i32, i32, i32, i32, i32) {
    %c0_i32 = arith.constant 0 : i32
    %c0_i32_0 = arith.constant 0 : i32
    %c0_i32_1 = arith.constant 0 : i32
    return %arg1, %arg0, %arg2, %c0_i32, %c0_i32_0 : i32, i32, i32, i32, i32
  }
  func.func @transform_4(%arg0: i32, %arg1: i32, %arg2: i32) -> (i32, i32, i32) {
    %c0_i32 = arith.constant 0 : i32
    return %arg1, %arg0, %arg2 : i32, i32, i32
  }
}

module attributes {stable_mosaic.version = 11 : i64} {
  func.func @kernel(%arg0: i32, %arg1: i32, %arg2: i32, %arg3: memref<1x21x8x16xbf16, #tpu.memory_space<vmem>>, %arg4: memref<1x8x1xf32, #tpu.memory_space<vmem>>, %arg5: memref<1x1x16x128xbf16, #tpu.memory_space<vmem>>, %arg6: memref<1x1x1x16x20xbf16, #tpu.memory_space<vmem>>, %arg7: memref<1x8x128xf32, #tpu.memory_space<vmem>>, %arg8: memref<16x148xbf16, #tpu.memory_space<vmem>>) attributes {dimension_semantics = [#tpu.dimension_semantics<parallel>, #tpu.dimension_semantics<parallel>, #tpu.dimension_semantics<arbitrary>], iteration_bounds = array<i64: 2, 2, 1>, scalar_prefetch = 0 : i64, scratch_operands = 1 : i64, tpu.core_type = #tpu.core_type<tc>, window_params = [{transform_indices = @transform_0, window_bounds = array<i64: 1, 21, 8, 16>}, {transform_indices = @transform_1, window_bounds = array<i64: 1, 8, 1>}, {transform_indices = @transform_2, window_bounds = array<i64: 1, 1, 16, 128>}, {transform_indices = @transform_3, window_bounds = array<i64: 1, 1, 1, 16, 20>}, {transform_indices = @transform_4, window_bounds = array<i64: 1, 8, 128>}]} {
    %c0 = arith.constant 0 : index
    %c0_0 = arith.constant 0 : index
    %c0_1 = arith.constant 0 : index
    %c0_2 = arith.constant 0 : index
    %0 = vector.load %arg5[%c0, %c0_0, %c0_1, %c0_2] : memref<1x1x16x128xbf16, #tpu.memory_space<vmem>>, vector<1x1x16x128xbf16>
    %1 = vector.shape_cast %0 : vector<1x1x16x128xbf16> to vector<16x128xbf16>
    %c0_3 = arith.constant 0 : index
    %c0_4 = arith.constant 0 : index
    %2 = vector.load %arg8[%c0_3, %c0_4] : memref<16x148xbf16, #tpu.memory_space<vmem>>, vector<16x128xbf16>
    tpu.vector_store %arg8[%c0_3, %c0_4], %1 {strides = array<i32>} : memref<16x148xbf16, #tpu.memory_space<vmem>>, vector<16x128xbf16>,
    %c0_5 = arith.constant 0 : index
    %c0_6 = arith.constant 0 : index
    %c0_7 = arith.constant 0 : index
    %c0_8 = arith.constant 0 : index
    %c0_9 = arith.constant 0 : index
    %3 = vector.load %arg6[%c0_5, %c0_6, %c0_7, %c0_8, %c0_9] : memref<1x1x1x16x20xbf16, #tpu.memory_space<vmem>>, vector<1x1x1x16x20xbf16>
    %4 = vector.shape_cast %3 : vector<1x1x1x16x20xbf16> to vector<16x20xbf16>
    %c0_10 = arith.constant 0 : index
    %c128 = arith.constant 128 : index
    %5 = vector.load %arg8[%c0_10, %c128] : memref<16x148xbf16, #tpu.memory_space<vmem>>, vector<16x20xbf16>
    tpu.vector_store %arg8[%c0_10, %c128], %4 {strides = array<i32>} : memref<16x148xbf16, #tpu.memory_space<vmem>>, vector<16x20xbf16>,
    %cst = arith.constant 0.000000e+00 : f32
    %6 = vector.broadcast %cst : f32 to vector<8x128xf32>
    %c0_11 = arith.constant 0 : index
    %c0_12 = arith.constant 0 : index
    %c0_13 = arith.constant 0 : index
    %c0_14 = arith.constant 0 : index
    %7 = vector.load %arg3[%c0_11, %c0_12, %c0_13, %c0_14] : memref<1x21x8x16xbf16, #tpu.memory_space<vmem>>, vector<1x1x8x16xbf16>
    %8 = vector.shape_cast %7 : vector<1x1x8x16xbf16> to vector<8x16xbf16>
    %c0_15 = arith.constant 0 : index
    %c0_16 = arith.constant 0 : index
    %9 = vector.load %arg8[%c0_15, %c0_16] : memref<16x148xbf16, #tpu.memory_space<vmem>>, vector<16x128xbf16>
    %cst_17 = arith.constant dense<0.000000e+00> : vector<8x128xf32>
    %10 = tpu.matmul %8, %9, %cst_17 {dimension_numbers = #tpu.dot_dimension_numbers<[1], [0], [0], [1], [0, 0, 1, 1], [], []>} : vector<8x16xbf16>, vector<16x128xbf16>, vector<8x128xf32> -> vector<8x128xf32>
    %11 = arith.addf %6, %10 : vector<8x128xf32>
    %c0_18 = arith.constant 0 : index
    %c1 = arith.constant 1 : index
    %c0_19 = arith.constant 0 : index
    %c0_20 = arith.constant 0 : index
    %12 = vector.load %arg3[%c0_18, %c1, %c0_19, %c0_20] : memref<1x21x8x16xbf16, #tpu.memory_space<vmem>>, vector<1x1x8x16xbf16>
    %13 = vector.shape_cast %12 : vector<1x1x8x16xbf16> to vector<8x16xbf16>
    %c0_21 = arith.constant 0 : index
    %c1_22 = arith.constant 1 : index
    %14 = vector.load %arg8[%c0_21, %c1_22] : memref<16x148xbf16, #tpu.memory_space<vmem>>, vector<16x128xbf16>
    %cst_23 = arith.constant dense<0.000000e+00> : vector<8x128xf32>
    %15 = tpu.matmul %13, %14, %cst_23 {dimension_numbers = #tpu.dot_dimension_numbers<[1], [0], [0], [1], [0, 0, 1, 1], [], []>} : vector<8x16xbf16>, vector<16x128xbf16>, vector<8x128xf32> -> vector<8x128xf32>
    %16 = arith.addf %11, %15 : vector<8x128xf32>
    %c0_24 = arith.constant 0 : index
    %c2 = arith.constant 2 : index
    %c0_25 = arith.constant 0 : index
    %c0_26 = arith.constant 0 : index
    %17 = vector.load %arg3[%c0_24, %c2, %c0_25, %c0_26] : memref<1x21x8x16xbf16, #tpu.memory_space<vmem>>, vector<1x1x8x16xbf16>
    %18 = vector.shape_cast %17 : vector<1x1x8x16xbf16> to vector<8x16xbf16>
    %c0_27 = arith.constant 0 : index
    %c2_28 = arith.constant 2 : index
    %19 = vector.load %arg8[%c0_27, %c2_28] : memref<16x148xbf16, #tpu.memory_space<vmem>>, vector<16x128xbf16>
    %cst_29 = arith.constant dense<0.000000e+00> : vector<8x128xf32>
    %20 = tpu.matmul %18, %19, %cst_29 {dimension_numbers = #tpu.dot_dimension_numbers<[1], [0], [0], [1], [0, 0, 1, 1], [], []>} : vector<8x16xbf16>, vector<16x128xbf16>, vector<8x128xf32> -> vector<8x128xf32>
    %21 = arith.addf %16, %20 : vector<8x128xf32>
    %c0_30 = arith.constant 0 : index
    %c3 = arith.constant 3 : index
    %c0_31 = arith.constant 0 : index
    %c0_32 = arith.constant 0 : index
    %22 = vector.load %arg3[%c0_30, %c3, %c0_31, %c0_32] : memref<1x21x8x16xbf16, #tpu.memory_space<vmem>>, vector<1x1x8x16xbf16>
    %23 = vector.shape_cast %22 : vector<1x1x8x16xbf16> to vector<8x16xbf16>
    %c0_33 = arith.constant 0 : index
    %c3_34 = arith.constant 3 : index
    %24 = vector.load %arg8[%c0_33, %c3_34] : memref<16x148xbf16, #tpu.memory_space<vmem>>, vector<16x128xbf16>
    %cst_35 = arith.constant dense<0.000000e+00> : vector<8x128xf32>
    %25 = tpu.matmul %23, %24, %cst_35 {dimension_numbers = #tpu.dot_dimension_numbers<[1], [0], [0], [1], [0, 0, 1, 1], [], []>} : vector<8x16xbf16>, vector<16x128xbf16>, vector<8x128xf32> -> vector<8x128xf32>
    %26 = arith.addf %21, %25 : vector<8x128xf32>
    %c0_36 = arith.constant 0 : index
    %c4 = arith.constant 4 : index
    %c0_37 = arith.constant 0 : index
    %c0_38 = arith.constant 0 : index
    %27 = vector.load %arg3[%c0_36, %c4, %c0_37, %c0_38] : memref<1x21x8x16xbf16, #tpu.memory_space<vmem>>, vector<1x1x8x16xbf16>
    %28 = vector.shape_cast %27 : vector<1x1x8x16xbf16> to vector<8x16xbf16>
    %c0_39 = arith.constant 0 : index
    %c4_40 = arith.constant 4 : index
    %29 = vector.load %arg8[%c0_39, %c4_40] : memref<16x148xbf16, #tpu.memory_space<vmem>>, vector<16x128xbf16>
    %cst_41 = arith.constant dense<0.000000e+00> : vector<8x128xf32>
    %30 = tpu.matmul %28, %29, %cst_41 {dimension_numbers = #tpu.dot_dimension_numbers<[1], [0], [0], [1], [0, 0, 1, 1], [], []>} : vector<8x16xbf16>, vector<16x128xbf16>, vector<8x128xf32> -> vector<8x128xf32>
    %31 = arith.addf %26, %30 : vector<8x128xf32>
    %c0_42 = arith.constant 0 : index
    %c5 = arith.constant 5 : index
    %c0_43 = arith.constant 0 : index
    %c0_44 = arith.constant 0 : index
    %32 = vector.load %arg3[%c0_42, %c5, %c0_43, %c0_44] : memref<1x21x8x16xbf16, #tpu.memory_space<vmem>>, vector<1x1x8x16xbf16>
    %33 = vector.shape_cast %32 : vector<1x1x8x16xbf16> to vector<8x16xbf16>
    %c0_45 = arith.constant 0 : index
    %c5_46 = arith.constant 5 : index
    %34 = vector.load %arg8[%c0_45, %c5_46] : memref<16x148xbf16, #tpu.memory_space<vmem>>, vector<16x128xbf16>
    %cst_47 = arith.constant dense<0.000000e+00> : vector<8x128xf32>
    %35 = tpu.matmul %33, %34, %cst_47 {dimension_numbers = #tpu.dot_dimension_numbers<[1], [0], [0], [1], [0, 0, 1, 1], [], []>} : vector<8x16xbf16>, vector<16x128xbf16>, vector<8x128xf32> -> vector<8x128xf32>
    %36 = arith.addf %31, %35 : vector<8x128xf32>
    %c0_48 = arith.constant 0 : index
    %c6 = arith.constant 6 : index
    %c0_49 = arith.constant 0 : index
    %c0_50 = arith.constant 0 : index
    %37 = vector.load %arg3[%c0_48, %c6, %c0_49, %c0_50] : memref<1x21x8x16xbf16, #tpu.memory_space<vmem>>, vector<1x1x8x16xbf16>
    %38 = vector.shape_cast %37 : vector<1x1x8x16xbf16> to vector<8x16xbf16>
    %c0_51 = arith.constant 0 : index
    %c6_52 = arith.constant 6 : index
    %39 = vector.load %arg8[%c0_51, %c6_52] : memref<16x148xbf16, #tpu.memory_space<vmem>>, vector<16x128xbf16>
    %cst_53 = arith.constant dense<0.000000e+00> : vector<8x128xf32>
    %40 = tpu.matmul %38, %39, %cst_53 {dimension_numbers = #tpu.dot_dimension_numbers<[1], [0], [0], [1], [0, 0, 1, 1], [], []>} : vector<8x16xbf16>, vector<16x128xbf16>, vector<8x128xf32> -> vector<8x128xf32>
    %41 = arith.addf %36, %40 : vector<8x128xf32>
    %c0_54 = arith.constant 0 : index
    %c7 = arith.constant 7 : index
    %c0_55 = arith.constant 0 : index
    %c0_56 = arith.constant 0 : index
    %42 = vector.load %arg3[%c0_54, %c7, %c0_55, %c0_56] : memref<1x21x8x16xbf16, #tpu.memory_space<vmem>>, vector<1x1x8x16xbf16>
    %43 = vector.shape_cast %42 : vector<1x1x8x16xbf16> to vector<8x16xbf16>
    %c0_57 = arith.constant 0 : index
    %c7_58 = arith.constant 7 : index
    %44 = vector.load %arg8[%c0_57, %c7_58] : memref<16x148xbf16, #tpu.memory_space<vmem>>, vector<16x128xbf16>
    %cst_59 = arith.constant dense<0.000000e+00> : vector<8x128xf32>
    %45 = tpu.matmul %43, %44, %cst_59 {dimension_numbers = #tpu.dot_dimension_numbers<[1], [0], [0], [1], [0, 0, 1, 1], [], []>} : vector<8x16xbf16>, vector<16x128xbf16>, vector<8x128xf32> -> vector<8x128xf32>
    %46 = arith.addf %41, %45 : vector<8x128xf32>
    %c0_60 = arith.constant 0 : index
    %c8 = arith.constant 8 : index
    %c0_61 = arith.constant 0 : index
    %c0_62 = arith.constant 0 : index
    %47 = vector.load %arg3[%c0_60, %c8, %c0_61, %c0_62] : memref<1x21x8x16xbf16, #tpu.memory_space<vmem>>, vector<1x1x8x16xbf16>
    %48 = vector.shape_cast %47 : vector<1x1x8x16xbf16> to vector<8x16xbf16>
    %c0_63 = arith.constant 0 : index
    %c8_64 = arith.constant 8 : index
    %49 = vector.load %arg8[%c0_63, %c8_64] : memref<16x148xbf16, #tpu.memory_space<vmem>>, vector<16x128xbf16>
    %cst_65 = arith.constant dense<0.000000e+00> : vector<8x128xf32>
    %50 = tpu.matmul %48, %49, %cst_65 {dimension_numbers = #tpu.dot_dimension_numbers<[1], [0], [0], [1], [0, 0, 1, 1], [], []>} : vector<8x16xbf16>, vector<16x128xbf16>, vector<8x128xf32> -> vector<8x128xf32>
    %51 = arith.addf %46, %50 : vector<8x128xf32>
    %c0_66 = arith.constant 0 : index
    %c9 = arith.constant 9 : index
    %c0_67 = arith.constant 0 : index
    %c0_68 = arith.constant 0 : index
    %52 = vector.load %arg3[%c0_66, %c9, %c0_67, %c0_68] : memref<1x21x8x16xbf16, #tpu.memory_space<vmem>>, vector<1x1x8x16xbf16>
    %53 = vector.shape_cast %52 : vector<1x1x8x16xbf16> to vector<8x16xbf16>
    %c0_69 = arith.constant 0 : index
    %c9_70 = arith.constant 9 : index
    %54 = vector.load %arg8[%c0_69, %c9_70] : memref<16x148xbf16, #tpu.memory_space<vmem>>, vector<16x128xbf16>
    %cst_71 = arith.constant dense<0.000000e+00> : vector<8x128xf32>
    %55 = tpu.matmul %53, %54, %cst_71 {dimension_numbers = #tpu.dot_dimension_numbers<[1], [0], [0], [1], [0, 0, 1, 1], [], []>} : vector<8x16xbf16>, vector<16x128xbf16>, vector<8x128xf32> -> vector<8x128xf32>
    %56 = arith.addf %51, %55 : vector<8x128xf32>
    %c0_72 = arith.constant 0 : index
    %c10 = arith.constant 10 : index
    %c0_73 = arith.constant 0 : index
    %c0_74 = arith.constant 0 : index
    %57 = vector.load %arg3[%c0_72, %c10, %c0_73, %c0_74] : memref<1x21x8x16xbf16, #tpu.memory_space<vmem>>, vector<1x1x8x16xbf16>
    %58 = vector.shape_cast %57 : vector<1x1x8x16xbf16> to vector<8x16xbf16>
    %c0_75 = arith.constant 0 : index
    %c10_76 = arith.constant 10 : index
    %59 = vector.load %arg8[%c0_75, %c10_76] : memref<16x148xbf16, #tpu.memory_space<vmem>>, vector<16x128xbf16>
    %cst_77 = arith.constant dense<0.000000e+00> : vector<8x128xf32>
    %60 = tpu.matmul %58, %59, %cst_77 {dimension_numbers = #tpu.dot_dimension_numbers<[1], [0], [0], [1], [0, 0, 1, 1], [], []>} : vector<8x16xbf16>, vector<16x128xbf16>, vector<8x128xf32> -> vector<8x128xf32>
    %61 = arith.addf %56, %60 : vector<8x128xf32>
    %c0_78 = arith.constant 0 : index
    %c11 = arith.constant 11 : index
    %c0_79 = arith.constant 0 : index
    %c0_80 = arith.constant 0 : index
    %62 = vector.load %arg3[%c0_78, %c11, %c0_79, %c0_80] : memref<1x21x8x16xbf16, #tpu.memory_space<vmem>>, vector<1x1x8x16xbf16>
    %63 = vector.shape_cast %62 : vector<1x1x8x16xbf16> to vector<8x16xbf16>
    %c0_81 = arith.constant 0 : index
    %c11_82 = arith.constant 11 : index
    %64 = vector.load %arg8[%c0_81, %c11_82] : memref<16x148xbf16, #tpu.memory_space<vmem>>, vector<16x128xbf16>
    %cst_83 = arith.constant dense<0.000000e+00> : vector<8x128xf32>
    %65 = tpu.matmul %63, %64, %cst_83 {dimension_numbers = #tpu.dot_dimension_numbers<[1], [0], [0], [1], [0, 0, 1, 1], [], []>} : vector<8x16xbf16>, vector<16x128xbf16>, vector<8x128xf32> -> vector<8x128xf32>
    %66 = arith.addf %61, %65 : vector<8x128xf32>
    %c0_84 = arith.constant 0 : index
    %c12 = arith.constant 12 : index
    %c0_85 = arith.constant 0 : index
    %c0_86 = arith.constant 0 : index
    %67 = vector.load %arg3[%c0_84, %c12, %c0_85, %c0_86] : memref<1x21x8x16xbf16, #tpu.memory_space<vmem>>, vector<1x1x8x16xbf16>
    %68 = vector.shape_cast %67 : vector<1x1x8x16xbf16> to vector<8x16xbf16>
    %c0_87 = arith.constant 0 : index
    %c12_88 = arith.constant 12 : index
    %69 = vector.load %arg8[%c0_87, %c12_88] : memref<16x148xbf16, #tpu.memory_space<vmem>>, vector<16x128xbf16>
    %cst_89 = arith.constant dense<0.000000e+00> : vector<8x128xf32>
    %70 = tpu.matmul %68, %69, %cst_89 {dimension_numbers = #tpu.dot_dimension_numbers<[1], [0], [0], [1], [0, 0, 1, 1], [], []>} : vector<8x16xbf16>, vector<16x128xbf16>, vector<8x128xf32> -> vector<8x128xf32>
    %71 = arith.addf %66, %70 : vector<8x128xf32>
    %c0_90 = arith.constant 0 : index
    %c13 = arith.constant 13 : index
    %c0_91 = arith.constant 0 : index
    %c0_92 = arith.constant 0 : index
    %72 = vector.load %arg3[%c0_90, %c13, %c0_91, %c0_92] : memref<1x21x8x16xbf16, #tpu.memory_space<vmem>>, vector<1x1x8x16xbf16>
    %73 = vector.shape_cast %72 : vector<1x1x8x16xbf16> to vector<8x16xbf16>
    %c0_93 = arith.constant 0 : index
    %c13_94 = arith.constant 13 : index
    %74 = vector.load %arg8[%c0_93, %c13_94] : memref<16x148xbf16, #tpu.memory_space<vmem>>, vector<16x128xbf16>
    %cst_95 = arith.constant dense<0.000000e+00> : vector<8x128xf32>
    %75 = tpu.matmul %73, %74, %cst_95 {dimension_numbers = #tpu.dot_dimension_numbers<[1], [0], [0], [1], [0, 0, 1, 1], [], []>} : vector<8x16xbf16>, vector<16x128xbf16>, vector<8x128xf32> -> vector<8x128xf32>
    %76 = arith.addf %71, %75 : vector<8x128xf32>
    %c0_96 = arith.constant 0 : index
    %c14 = arith.constant 14 : index
    %c0_97 = arith.constant 0 : index
    %c0_98 = arith.constant 0 : index
    %77 = vector.load %arg3[%c0_96, %c14, %c0_97, %c0_98] : memref<1x21x8x16xbf16, #tpu.memory_space<vmem>>, vector<1x1x8x16xbf16>
    %78 = vector.shape_cast %77 : vector<1x1x8x16xbf16> to vector<8x16xbf16>
    %c0_99 = arith.constant 0 : index
    %c14_100 = arith.constant 14 : index
    %79 = vector.load %arg8[%c0_99, %c14_100] : memref<16x148xbf16, #tpu.memory_space<vmem>>, vector<16x128xbf16>
    %cst_101 = arith.constant dense<0.000000e+00> : vector<8x128xf32>
    %80 = tpu.matmul %78, %79, %cst_101 {dimension_numbers = #tpu.dot_dimension_numbers<[1], [0], [0], [1], [0, 0, 1, 1], [], []>} : vector<8x16xbf16>, vector<16x128xbf16>, vector<8x128xf32> -> vector<8x128xf32>
    %81 = arith.addf %76, %80 : vector<8x128xf32>
    %c0_102 = arith.constant 0 : index
    %c15 = arith.constant 15 : index
    %c0_103 = arith.constant 0 : index
    %c0_104 = arith.constant 0 : index
    %82 = vector.load %arg3[%c0_102, %c15, %c0_103, %c0_104] : memref<1x21x8x16xbf16, #tpu.memory_space<vmem>>, vector<1x1x8x16xbf16>
    %83 = vector.shape_cast %82 : vector<1x1x8x16xbf16> to vector<8x16xbf16>
    %c0_105 = arith.constant 0 : index
    %c15_106 = arith.constant 15 : index
    %84 = vector.load %arg8[%c0_105, %c15_106] : memref<16x148xbf16, #tpu.memory_space<vmem>>, vector<16x128xbf16>
    %cst_107 = arith.constant dense<0.000000e+00> : vector<8x128xf32>
    %85 = tpu.matmul %83, %84, %cst_107 {dimension_numbers = #tpu.dot_dimension_numbers<[1], [0], [0], [1], [0, 0, 1, 1], [], []>} : vector<8x16xbf16>, vector<16x128xbf16>, vector<8x128xf32> -> vector<8x128xf32>
    %86 = arith.addf %81, %85 : vector<8x128xf32>
    %c0_108 = arith.constant 0 : index
    %c16 = arith.constant 16 : index
    %c0_109 = arith.constant 0 : index
    %c0_110 = arith.constant 0 : index
    %87 = vector.load %arg3[%c0_108, %c16, %c0_109, %c0_110] : memref<1x21x8x16xbf16, #tpu.memory_space<vmem>>, vector<1x1x8x16xbf16>
    %88 = vector.shape_cast %87 : vector<1x1x8x16xbf16> to vector<8x16xbf16>
    %c0_111 = arith.constant 0 : index
    %c16_112 = arith.constant 16 : index
    %89 = vector.load %arg8[%c0_111, %c16_112] : memref<16x148xbf16, #tpu.memory_space<vmem>>, vector<16x128xbf16>
    %cst_113 = arith.constant dense<0.000000e+00> : vector<8x128xf32>
    %90 = tpu.matmul %88, %89, %cst_113 {dimension_numbers = #tpu.dot_dimension_numbers<[1], [0], [0], [1], [0, 0, 1, 1], [], []>} : vector<8x16xbf16>, vector<16x128xbf16>, vector<8x128xf32> -> vector<8x128xf32>
    %91 = arith.addf %86, %90 : vector<8x128xf32>
    %c0_114 = arith.constant 0 : index
    %c17 = arith.constant 17 : index
    %c0_115 = arith.constant 0 : index
    %c0_116 = arith.constant 0 : index
    %92 = vector.load %arg3[%c0_114, %c17, %c0_115, %c0_116] : memref<1x21x8x16xbf16, #tpu.memory_space<vmem>>, vector<1x1x8x16xbf16>
    %93 = vector.shape_cast %92 : vector<1x1x8x16xbf16> to vector<8x16xbf16>
    %c0_117 = arith.constant 0 : index
    %c17_118 = arith.constant 17 : index
    %94 = vector.load %arg8[%c0_117, %c17_118] : memref<16x148xbf16, #tpu.memory_space<vmem>>, vector<16x128xbf16>
    %cst_119 = arith.constant dense<0.000000e+00> : vector<8x128xf32>
    %95 = tpu.matmul %93, %94, %cst_119 {dimension_numbers = #tpu.dot_dimension_numbers<[1], [0], [0], [1], [0, 0, 1, 1], [], []>} : vector<8x16xbf16>, vector<16x128xbf16>, vector<8x128xf32> -> vector<8x128xf32>
    %96 = arith.addf %91, %95 : vector<8x128xf32>
    %c0_120 = arith.constant 0 : index
    %c18 = arith.constant 18 : index
    %c0_121 = arith.constant 0 : index
    %c0_122 = arith.constant 0 : index
    %97 = vector.load %arg3[%c0_120, %c18, %c0_121, %c0_122] : memref<1x21x8x16xbf16, #tpu.memory_space<vmem>>, vector<1x1x8x16xbf16>
    %98 = vector.shape_cast %97 : vector<1x1x8x16xbf16> to vector<8x16xbf16>
    %c0_123 = arith.constant 0 : index
    %c18_124 = arith.constant 18 : index
    %99 = vector.load %arg8[%c0_123, %c18_124] : memref<16x148xbf16, #tpu.memory_space<vmem>>, vector<16x128xbf16>
    %cst_125 = arith.constant dense<0.000000e+00> : vector<8x128xf32>
    %100 = tpu.matmul %98, %99, %cst_125 {dimension_numbers = #tpu.dot_dimension_numbers<[1], [0], [0], [1], [0, 0, 1, 1], [], []>} : vector<8x16xbf16>, vector<16x128xbf16>, vector<8x128xf32> -> vector<8x128xf32>
    %101 = arith.addf %96, %100 : vector<8x128xf32>
    %c0_126 = arith.constant 0 : index
    %c19 = arith.constant 19 : index
    %c0_127 = arith.constant 0 : index
    %c0_128 = arith.constant 0 : index
    %102 = vector.load %arg3[%c0_126, %c19, %c0_127, %c0_128] : memref<1x21x8x16xbf16, #tpu.memory_space<vmem>>, vector<1x1x8x16xbf16>
    %103 = vector.shape_cast %102 : vector<1x1x8x16xbf16> to vector<8x16xbf16>
    %c0_129 = arith.constant 0 : index
    %c19_130 = arith.constant 19 : index
    %104 = vector.load %arg8[%c0_129, %c19_130] : memref<16x148xbf16, #tpu.memory_space<vmem>>, vector<16x128xbf16>
    %cst_131 = arith.constant dense<0.000000e+00> : vector<8x128xf32>
    %105 = tpu.matmul %103, %104, %cst_131 {dimension_numbers = #tpu.dot_dimension_numbers<[1], [0], [0], [1], [0, 0, 1, 1], [], []>} : vector<8x16xbf16>, vector<16x128xbf16>, vector<8x128xf32> -> vector<8x128xf32>
    %106 = arith.addf %101, %105 : vector<8x128xf32>
    %c0_132 = arith.constant 0 : index
    %c20 = arith.constant 20 : index
    %c0_133 = arith.constant 0 : index
    %c0_134 = arith.constant 0 : index
    %107 = vector.load %arg3[%c0_132, %c20, %c0_133, %c0_134] : memref<1x21x8x16xbf16, #tpu.memory_space<vmem>>, vector<1x1x8x16xbf16>
    %108 = vector.shape_cast %107 : vector<1x1x8x16xbf16> to vector<8x16xbf16>
    %c0_135 = arith.constant 0 : index
    %c20_136 = arith.constant 20 : index
    %109 = vector.load %arg8[%c0_135, %c20_136] : memref<16x148xbf16, #tpu.memory_space<vmem>>, vector<16x128xbf16>
    %cst_137 = arith.constant dense<0.000000e+00> : vector<8x128xf32>
    %110 = tpu.matmul %108, %109, %cst_137 {dimension_numbers = #tpu.dot_dimension_numbers<[1], [0], [0], [1], [0, 0, 1, 1], [], []>} : vector<8x16xbf16>, vector<16x128xbf16>, vector<8x128xf32> -> vector<8x128xf32>
    %111 = arith.addf %106, %110 : vector<8x128xf32>
    %c0_138 = arith.constant 0 : index
    %c0_139 = arith.constant 0 : index
    %c0_140 = arith.constant 0 : index
    %112 = vector.load %arg4[%c0_138, %c0_139, %c0_140] : memref<1x8x1xf32, #tpu.memory_space<vmem>>, vector<1x8x1xf32>
    %113 = vector.shape_cast %112 : vector<1x8x1xf32> to vector<8x1xf32>
    %114 = vector.broadcast %113 : vector<8x1xf32> to vector<8x128xf32>
    %115 = arith.addf %111, %114 : vector<8x128xf32>
    %cst_141 = arith.constant 0.000000e+00 : f32
    %116 = vector.broadcast %cst_141 : f32 to vector<8x128xf32>
    %117 = arith.cmpf oge, %115, %116 : vector<8x128xf32>
    %cst_142 = arith.constant 1.000000e-01 : f32
    %118 = vector.broadcast %cst_142 : f32 to vector<8x128xf32>
    %119 = arith.mulf %118, %115 : vector<8x128xf32>
    %120 = arith.select %117, %115, %119 : vector<8x128xi1>, vector<8x128xf32>
    %c0_143 = arith.constant 0 : index
    %c0_144 = arith.constant 0 : index
    %c0_145 = arith.constant 0 : index
    %121 = vector.load %arg7[%c0_143, %c0_144, %c0_145] : memref<1x8x128xf32, #tpu.memory_space<vmem>>, vector<1x8x128xf32>
    %122 = vector.shape_cast %121 : vector<1x8x128xf32> to vector<8x128xf32>
    %123 = vector.shape_cast %120 : vector<8x128xf32> to vector<1x8x128xf32>
    tpu.vector_store %arg7[%c0_143, %c0_144, %c0_145], %123 {strides = array<i32>} : memref<1x8x128xf32, #tpu.memory_space<vmem>>, vector<1x8x128xf32>,
    return
  }
  func.func @transform_0(%arg0: i32, %arg1: i32, %arg2: i32) -> (i32, i32, i32, i32) {
    %c0_i32 = arith.constant 0 : i32
    %c0_i32_0 = arith.constant 0 : i32
    %c0_i32_1 = arith.constant 0 : i32
    %c0_i32_2 = arith.constant 0 : i32
    return %arg0, %c0_i32, %c0_i32_0, %c0_i32_1 : i32, i32, i32, i32
  }
  func.func @transform_1(%arg0: i32, %arg1: i32, %arg2: i32) -> (i32, i32, i32) {
    %c0_i32 = arith.constant 0 : i32
    %c0_i32_0 = arith.constant 0 : i32
    %c0_i32_1 = arith.constant 0 : i32
    return %arg0, %c0_i32, %c0_i32_0 : i32, i32, i32
  }
  func.func @transform_2(%arg0: i32, %arg1: i32, %arg2: i32) -> (i32, i32, i32, i32) {
    %c0_i32 = arith.constant 0 : i32
    %c0_i32_0 = arith.constant 0 : i32
    return %arg1, %arg0, %c0_i32, %arg2 : i32, i32, i32, i32
  }
  func.func @transform_3(%arg0: i32, %arg1: i32, %arg2: i32) -> (i32, i32, i32, i32, i32) {
    %c0_i32 = arith.constant 0 : i32
    %c0_i32_0 = arith.constant 0 : i32
    %c0_i32_1 = arith.constant 0 : i32
    return %arg1, %arg0, %arg2, %c0_i32, %c0_i32_0 : i32, i32, i32, i32, i32
  }
  func.func @transform_4(%arg0: i32, %arg1: i32, %arg2: i32) -> (i32, i32, i32) {
    %c0_i32 = arith.constant 0 : i32
    return %arg1, %arg0, %arg2 : i32, i32, i32
  }
}

module attributes {stable_mosaic.version = 11 : i64} {
  func.func @kernel(%arg0: i32, %arg1: i32, %arg2: i32, %arg3: memref<1x3x1x16xbf16, #tpu.memory_space<vmem>>, %arg4: memref<1x1x1xf32, #tpu.memory_space<vmem>>, %arg5: memref<1x1x16x128xbf16, #tpu.memory_space<vmem>>, %arg6: memref<1x1x1x16x2xbf16, #tpu.memory_space<vmem>>, %arg7: memref<1x1x128xf32, #tpu.memory_space<vmem>>, %arg8: memref<16x130xbf16, #tpu.memory_space<vmem>>) attributes {dimension_semantics = [#tpu.dimension_semantics<parallel>, #tpu.dimension_semantics<parallel>, #tpu.dimension_semantics<arbitrary>], iteration_bounds = array<i64: 1, 2, 1>, scalar_prefetch = 0 : i64, scratch_operands = 1 : i64, tpu.core_type = #tpu.core_type<tc>, window_params = [{transform_indices = @transform_0, window_bounds = array<i64: 1, 3, 1, 16>}, {transform_indices = @transform_1, window_bounds = array<i64: 1, 1, 1>}, {transform_indices = @transform_2, window_bounds = array<i64: 1, 1, 16, 128>}, {transform_indices = @transform_3, window_bounds = array<i64: 1, 1, 1, 16, 2>}, {transform_indices = @transform_4, window_bounds = array<i64: 1, 1, 128>}]} {
    %c0 = arith.constant 0 : index
    %c0_0 = arith.constant 0 : index
    %c0_1 = arith.constant 0 : index
    %c0_2 = arith.constant 0 : index
    %0 = vector.load %arg5[%c0, %c0_0, %c0_1, %c0_2] : memref<1x1x16x128xbf16, #tpu.memory_space<vmem>>, vector<1x1x16x128xbf16>
    %1 = vector.shape_cast %0 : vector<1x1x16x128xbf16> to vector<16x128xbf16>
    %c0_3 = arith.constant 0 : index
    %c0_4 = arith.constant 0 : index
    %2 = vector.load %arg8[%c0_3, %c0_4] : memref<16x130xbf16, #tpu.memory_space<vmem>>, vector<16x128xbf16>
    tpu.vector_store %arg8[%c0_3, %c0_4], %1 {strides = array<i32>} : memref<16x130xbf16, #tpu.memory_space<vmem>>, vector<16x128xbf16>,
    %c0_5 = arith.constant 0 : index
    %c0_6 = arith.constant 0 : index
    %c0_7 = arith.constant 0 : index
    %c0_8 = arith.constant 0 : index
    %c0_9 = arith.constant 0 : index
    %3 = vector.load %arg6[%c0_5, %c0_6, %c0_7, %c0_8, %c0_9] : memref<1x1x1x16x2xbf16, #tpu.memory_space<vmem>>, vector<1x1x1x16x2xbf16>
    %4 = vector.shape_cast %3 : vector<1x1x1x16x2xbf16> to vector<16x2xbf16>
    %c0_10 = arith.constant 0 : index
    %c128 = arith.constant 128 : index
    %5 = vector.load %arg8[%c0_10, %c128] : memref<16x130xbf16, #tpu.memory_space<vmem>>, vector<16x2xbf16>
    tpu.vector_store %arg8[%c0_10, %c128], %4 {strides = array<i32>} : memref<16x130xbf16, #tpu.memory_space<vmem>>, vector<16x2xbf16>,
    %cst = arith.constant 0.000000e+00 : f32
    %6 = vector.broadcast %cst : f32 to vector<1x128xf32>
    %c0_11 = arith.constant 0 : index
    %c0_12 = arith.constant 0 : index
    %c0_13 = arith.constant 0 : index
    %c0_14 = arith.constant 0 : index
    %7 = vector.load %arg3[%c0_11, %c0_12, %c0_13, %c0_14] : memref<1x3x1x16xbf16, #tpu.memory_space<vmem>>, vector<1x1x1x16xbf16>
    %8 = vector.shape_cast %7 : vector<1x1x1x16xbf16> to vector<1x16xbf16>
    %c0_15 = arith.constant 0 : index
    %c0_16 = arith.constant 0 : index
    %9 = vector.load %arg8[%c0_15, %c0_16] : memref<16x130xbf16, #tpu.memory_space<vmem>>, vector<16x128xbf16>
    %cst_17 = arith.constant dense<0.000000e+00> : vector<1x128xf32>
    %10 = tpu.matmul %8, %9, %cst_17 {dimension_numbers = #tpu.dot_dimension_numbers<[1], [0], [0], [1], [0, 0, 1, 1], [], []>} : vector<1x16xbf16>, vector<16x128xbf16>, vector<1x128xf32> -> vector<1x128xf32>
    %11 = arith.addf %6, %10 : vector<1x128xf32>
    %c0_18 = arith.constant 0 : index
    %c1 = arith.constant 1 : index
    %c0_19 = arith.constant 0 : index
    %c0_20 = arith.constant 0 : index
    %12 = vector.load %arg3[%c0_18, %c1, %c0_19, %c0_20] : memref<1x3x1x16xbf16, #tpu.memory_space<vmem>>, vector<1x1x1x16xbf16>
    %13 = vector.shape_cast %12 : vector<1x1x1x16xbf16> to vector<1x16xbf16>
    %c0_21 = arith.constant 0 : index
    %c1_22 = arith.constant 1 : index
    %14 = vector.load %arg8[%c0_21, %c1_22] : memref<16x130xbf16, #tpu.memory_space<vmem>>, vector<16x128xbf16>
    %cst_23 = arith.constant dense<0.000000e+00> : vector<1x128xf32>
    %15 = tpu.matmul %13, %14, %cst_23 {dimension_numbers = #tpu.dot_dimension_numbers<[1], [0], [0], [1], [0, 0, 1, 1], [], []>} : vector<1x16xbf16>, vector<16x128xbf16>, vector<1x128xf32> -> vector<1x128xf32>
    %16 = arith.addf %11, %15 : vector<1x128xf32>
    %c0_24 = arith.constant 0 : index
    %c2 = arith.constant 2 : index
    %c0_25 = arith.constant 0 : index
    %c0_26 = arith.constant 0 : index
    %17 = vector.load %arg3[%c0_24, %c2, %c0_25, %c0_26] : memref<1x3x1x16xbf16, #tpu.memory_space<vmem>>, vector<1x1x1x16xbf16>
    %18 = vector.shape_cast %17 : vector<1x1x1x16xbf16> to vector<1x16xbf16>
    %c0_27 = arith.constant 0 : index
    %c2_28 = arith.constant 2 : index
    %19 = vector.load %arg8[%c0_27, %c2_28] : memref<16x130xbf16, #tpu.memory_space<vmem>>, vector<16x128xbf16>
    %cst_29 = arith.constant dense<0.000000e+00> : vector<1x128xf32>
    %20 = tpu.matmul %18, %19, %cst_29 {dimension_numbers = #tpu.dot_dimension_numbers<[1], [0], [0], [1], [0, 0, 1, 1], [], []>} : vector<1x16xbf16>, vector<16x128xbf16>, vector<1x128xf32> -> vector<1x128xf32>
    %21 = arith.addf %16, %20 : vector<1x128xf32>
    %c0_30 = arith.constant 0 : index
    %c0_31 = arith.constant 0 : index
    %c0_32 = arith.constant 0 : index
    %22 = vector.load %arg4[%c0_30, %c0_31, %c0_32] : memref<1x1x1xf32, #tpu.memory_space<vmem>>, vector<1x1x1xf32>
    %23 = vector.shape_cast %22 : vector<1x1x1xf32> to vector<1x1xf32>
    %24 = vector.broadcast %23 : vector<1x1xf32> to vector<1x128xf32>
    %25 = arith.addf %21, %24 : vector<1x128xf32>
    %c0_33 = arith.constant 0 : index
    %c0_34 = arith.constant 0 : index
    %c0_35 = arith.constant 0 : index
    %26 = vector.load %arg7[%c0_33, %c0_34, %c0_35] : memref<1x1x128xf32, #tpu.memory_space<vmem>>, vector<1x1x128xf32>
    %27 = vector.shape_cast %26 : vector<1x1x128xf32> to vector<1x128xf32>
    %28 = vector.shape_cast %25 : vector<1x128xf32> to vector<1x1x128xf32>
    tpu.vector_store %arg7[%c0_33, %c0_34, %c0_35], %28 {strides = array<i32>} : memref<1x1x128xf32, #tpu.memory_space<vmem>>, vector<1x1x128xf32>,
    return
  }
  func.func @transform_0(%arg0: i32, %arg1: i32, %arg2: i32) -> (i32, i32, i32, i32) {
    %c0_i32 = arith.constant 0 : i32
    %c0_i32_0 = arith.constant 0 : i32
    %c0_i32_1 = arith.constant 0 : i32
    %c0_i32_2 = arith.constant 0 : i32
    return %arg0, %c0_i32, %c0_i32_0, %c0_i32_1 : i32, i32, i32, i32
  }
  func.func @transform_1(%arg0: i32, %arg1: i32, %arg2: i32) -> (i32, i32, i32) {
    %c0_i32 = arith.constant 0 : i32
    %c0_i32_0 = arith.constant 0 : i32
    %c0_i32_1 = arith.constant 0 : i32
    return %arg0, %c0_i32, %c0_i32_0 : i32, i32, i32
  }
  func.func @transform_2(%arg0: i32, %arg1: i32, %arg2: i32) -> (i32, i32, i32, i32) {
    %c0_i32 = arith.constant 0 : i32
    %c0_i32_0 = arith.constant 0 : i32
    return %arg1, %arg0, %c0_i32, %arg2 : i32, i32, i32, i32
  }
  func.func @transform_3(%arg0: i32, %arg1: i32, %arg2: i32) -> (i32, i32, i32, i32, i32) {
    %c0_i32 = arith.constant 0 : i32
    %c0_i32_0 = arith.constant 0 : i32
    %c0_i32_1 = arith.constant 0 : i32
    return %arg1, %arg0, %arg2, %c0_i32, %c0_i32_0 : i32, i32, i32, i32, i32
  }
  func.func @transform_4(%arg0: i32, %arg1: i32, %arg2: i32) -> (i32, i32, i32) {
    %c0_i32 = arith.constant 0 : i32
    return %arg1, %arg0, %arg2 : i32, i32, i32
  }
}

</mosaic_0001>

<bundles_post_ra>
// kernel: _lambda_.12
= control target key start
LH: loop header
LB: loop body
LE: loop exit
PB: predicated region body
PF: predicated region fallthrough
CT: control target
= control target key end

     0   :  { %s1149_s15 = smov 0   ;;  %s1151_s16 = smov 0   ;;  %s1272_s0 = inlined_call_operand.vmem [shape: bf16[1,15,8,1], index: 0, kind: input, shape index: {}]   ;;  %s1273_s1 = inlined_call_operand.vmem [shape: f32[1,8,1], index: 1, kind: input, shape index: {}]   ;;  %s1274_s2 = inlined_call_operand.vmem [shape: bf16[2,1,1,142], index: 2, kind: input, shape index: {}]   ;;  %s1275_s3 = inlined_call_operand.vmem [shape: bf16[2,1,1,1,14], index: 3, kind: input, shape index: {}]   ;;  %s1276_s4 = inlined_call_operand.vmem [shape: f32[2,8,128], index: 4, kind: output, shape index: {}]  }
   0x1   :  { %s1153_s17 = smov 0  }
   0x2 LB: > { %s29_s18 = sadd.s32 1, %s1103_s16  ;;  %p1010_p0 = scmp.ge.s32.totalorder %s1107_s17, 1  ;;  %s1107_s17 = sphi %s1153_s17, %s14_s17   ;;  %s1103_s16 = sphi %s1151_s16, %s1278_s16   ;;  %s1099_s15 = sphi %s1149_s15, %s1277_s15  }
   0x3   : > { %p31_p1 = scmp.ge.s32.totalorder %s29_s18, 2  ;;  %p232_p2 = scmp.lt.s32.totalorder %s1107_s17, 3 }
   0x5   : > { %s1280_s18 = smov (%p31_p1, %s29_s18), 0  ;;  %p233_p3 = pnand %p1010_p0, %p232_p2 }
   0x6   : > { %p296_p4 = scmp.lt.s32.totalorder (!%p233_p3), %s1099_s15, 1  ;;  %s1109_s26 = smov (!%p233_p3), 127  }
   0x7   : > { %236 = sbr.rel (%p233_p3) target bundleno = 404 (0x194), region = 36  ;;  %s1110_s27 = smov (!%p233_p3), 126  }
   0x8   : > { %s1111_s28 = smov (!%p233_p3), 125   ;;  %s1112_s29 = smov (!%p233_p3), 124  }
   0x9   : > { %s1113_s30 = smov (!%p233_p3), 123   ;;  %s1114_s5 = smov (!%p233_p3), 122  }
   0xa   : > { %s1115_s6 = smov (!%p233_p3), 121   ;;  %s1116_s7 = smov (!%p233_p3), 120  }
   0xb   : > { %s1117_s8 = smov (!%p233_p3), 119   ;;  %s1118_s9 = smov (!%p233_p3), 118  }
   0xc   : > { %vm329_vm0 = vsmask.f32 256  ;;  %vm328_vm1 = vcmask 1040384   ;;  %vm335_vm2 = vcmask 106496   ;;  %s1282_s15 = smov (!%p296_p4, %s1099_s15), 1  ;;  %s1119_s10 = smov 117  }
   0xd   : > { %vm336_vm3 = vmand %vm335_vm2, %vm329_vm0  ;;  %v337_v0 = vld [vmem:[#allocation2 + $0x1] sm:$0x1]  ;;  %s1011_s19 = sshll.u32 %s1282_s15, 1  ;;  %s315_s22 = scalar_lea.vmem %s1275_s3, %s1282_s15  ;;  %v331_v1 = vld [vmem:[#allocation2] sm:$0x1]  ;;  %v1122_v46 = vmov 0  }
   0xe   : > { %vm330_vm4 = vmand %vm328_vm1, %vm329_vm0  ;;  %s306_s25 = scalar_lea.vmem %s1274_s2, %s1011_s19  ;;  %v334_v2 = vld [vmem:[%s315_s22] sm:$0x1]  ;;  %s1120_s11 = smov 116   ;;  %1083 = vset.pattern.permute.xlu1 %v1122_v46  ;;  %1084 = vset.pattern.permute.xlu0 %v1122_v46  ;;  %vm447_vm5 = vcmask 1022976   ;;  %v1179_v52 = vsel %vm328_vm1, 65535, %v1122_v46  ;;  %vm355_vm6 = vcmask 1039360  }
   0xf   : > { %v327_v3 = vld [vmem:[%s306_s25] sm:$0x1]  ;;  %v338_v4 = vsel %vm336_vm3, %v334_v2, %v337_v0  ;;  %s1121_s12 = smov 115   ;;  %s1123_s13 = smov 114   ;;  %vm357_vm7 = vcmask 7168   ;;  %vm412_vm8 = vcmask 1031168  }
  0x10   : > { %v332_v5 = vsel %vm330_vm4, %v327_v3, %v331_v1  ;;  %339 = vst [vmem:[#allocation2 + $0x1] sm:$0x1] %v338_v4  ;;  %v1018_v61 = vld [vmem:[%s1272_s0 + $0xc] sm:$0xf]  ;;  %v1013_v62 = vld [vmem:[%s1272_s0 + $0x4] sm:$0xf] }
  0x11   : > { %333 = vst [vmem:[#allocation2] sm:$0x1] %v332_v5  ;;  %v340_v1 = vld [vmem:[%s1272_s0] sm:$0xf]  ;;  %v1016_v3 = vld [vmem:[%s1272_s0 + $0x8] sm:$0xf] }
  0x12   : > { %vm482_vm9 = vcmask 1014784   ;;  %vm517_vm10 = vcmask 1006592   ;;  %vm552_vm11 = vcmask 998400   ;;  %vm587_vm12 = vcmask 990208  }
  0x13   : > { %vm622_vm13 = vcmask 982016   ;;  %vm657_vm14 = vcmask 973824   ;;  %vm692_vm15 = vcmask 965632   ;;  %vm727_vm0 = vcmask 957440  }
  0x14   : > { %vm797_vm1 = vcmask 941056   ;;  %vm832_vm2 = vcmask 932864   ;;  %vm762_vm3 = vcmask 949248  }
  0x18   : > { %v344_v6 = vld [vmem:[#allocation2] sm:$0x3] }
  0x19   : > { %346 = vst [vmem:[#allocation1] ss:$9 sm:$0xff] %v344_v6  ;;  %v401_v7 = vld [vmem:[#allocation2] sm:$0x3] }
  0x1a   : > { %v436_v10 = vld [vmem:[#allocation2] sm:$0x3] }
  0x1b   : > { %v471_v13 = vld [vmem:[#allocation2] sm:$0x3] }
  0x1c   : > { %v506_v16 = vld [vmem:[#allocation2] sm:$0x3] }
  0x1d   : > { %v541_v19 = vld [vmem:[#allocation2] sm:$0x3] }
  0x1e   : > { %v576_v22 = vld [vmem:[#allocation2] sm:$0x3] }
  0x1f   : > { %v611_v25 = vld [vmem:[#allocation2] sm:$0x3] }
  0x20   : > { %v347_v8 = vld [vmem:[#allocation1] sm:$0xff]  ;;  %v349_v9 = vld [vmem:[#allocation1 + $0x9] sm:$0xff]  ;;  %v341_v58 = vld [vmem:[#allocation2] sm:$0x1] }
  0x21   : > { %351 = vrot.lane.b32.xlu1 %v347_v8, %s1109_s26  ;;  %403 = vst [vmem:[#allocation1] ss:$9 sm:$0xff] %v401_v7  ;;  %v646_v28 = vld [vmem:[#allocation2] sm:$0x3]  ;;  %v384_v60 = vand.u32 %v1179_v52, %v341_v58 }
  0x22   : > { %v681_v31 = vld [vmem:[#allocation2] sm:$0x3] }
  0x23   : > { %v716_v34 = vld [vmem:[#allocation2] sm:$0x3]  ;;  %393 = vmatpush.bf16.msra.mxu1 %v384_v60  ;;  %v1036_v60 = vld [vmem:[%s1272_s0 + $0x30] sm:$0xf] }
  0x24   : > { %v751_v37 = vld [vmem:[#allocation2] sm:$0x3] }
  0x25   : > { %v786_v40 = vld [vmem:[#allocation2] sm:$0x3] }
  0x26   : > { %v821_v43 = vld [vmem:[#allocation2] sm:$0x3]  ;;  %1015 = vmatmul.msk.bf16.vlgmr.msra.gmra.mxu1 %vm357_vm7, %v340_v1 }
  0x28   : > { %v404_v11 = vld [vmem:[#allocation1] sm:$0xff]  ;;  %v406_v12 = vld [vmem:[#allocation1 + $0x9] sm:$0xff] }
  0x29   : > { %408 = vrot.lane.b32.xlu0 %v404_v11, %s1110_s27  ;;  %353 = vrot.lane.b32.xlu1 %v349_v9, %s1109_s26  ;;  %438 = vst [vmem:[#allocation1] ss:$9 sm:$0xff] %v436_v10  ;;  %v1020_v10 = vld [vmem:[%s1272_s0 + $0x10] sm:$0xf] }
  0x30   : > { %v439_v14 = vld [vmem:[#allocation1] sm:$0xff]  ;;  %v441_v15 = vld [vmem:[#allocation1 + $0x9] sm:$0xff] }
  0x31   : > { %410 = vrot.lane.b32.xlu0 %v406_v12, %s1110_s27  ;;  %473 = vst [vmem:[#allocation1] ss:$9 sm:$0xff] %v471_v13  ;;  %443 = vrot.lane.b32.xlu2 %v439_v14, %s1111_s28  ;;  %v1022_v13 = vld [vmem:[%s1272_s0 + $0x14] sm:$0xf] }
  0x38   : > { %v474_v17 = vld [vmem:[#allocation1] sm:$0xff]  ;;  %v476_v18 = vld [vmem:[#allocation1 + $0x9] sm:$0xff] }
  0x39   : > { %508 = vst [vmem:[#allocation1] ss:$9 sm:$0xff] %v506_v16  ;;  %480 = vrot.lane.b32.xlu0 %v476_v18, %s1112_s29  ;;  %445 = vrot.lane.b32.xlu2 %v441_v15, %s1111_s28  ;;  %v1024_v18 = vld [vmem:[%s1272_s0 + $0x18] sm:$0xf]  ;;  %s1012_s28 = sshll.u32 %s1282_s15, 3 }
  0x40   : > { %v509_v20 = vld [vmem:[#allocation1] sm:$0xff]  ;;  %v511_v21 = vld [vmem:[#allocation1 + $0x9] sm:$0xff] }
  0x41   : > { %513 = vrot.lane.b32.xlu1 %v509_v20, %s1113_s30  ;;  %543 = vst [vmem:[#allocation1] ss:$9 sm:$0xff] %v541_v19  ;;  %478 = vrot.lane.b32.xlu2 %v474_v17, %s1112_s29 }
  0x48   : > { %v546_v23 = vld [vmem:[#allocation1 + $0x9] sm:$0xff]  ;;  %v544_v24 = vld [vmem:[#allocation1] sm:$0xff] }
  0x49   : > { %550 = vrot.lane.b32.xlu1 %v546_v23, %s1114_s5  ;;  %548 = vrot.lane.b32.xlu0 %v544_v24, %s1114_s5  ;;  %578 = vst [vmem:[#allocation1] ss:$9 sm:$0xff] %v576_v22  ;;  %v1026_v23 = vld [vmem:[%s1272_s0 + $0x1c] sm:$0xf]  ;;  %s325_s5 = scalar_lea.vmem %s1276_s4, %s1012_s28 }
  0x4a   : > { %515 = vrot.lane.b32.xlu2 %v511_v21, %s1113_s30 }
  0x50   : > { %v581_v26 = vld [vmem:[#allocation1 + $0x9] sm:$0xff]  ;;  %v579_v27 = vld [vmem:[#allocation1] sm:$0xff] }
  0x51   : > { %585 = vrot.lane.b32.xlu1 %v581_v26, %s1115_s6  ;;  %583 = vrot.lane.b32.xlu0 %v579_v27, %s1115_s6  ;;  %613 = vst [vmem:[#allocation1] ss:$9 sm:$0xff] %v611_v25 }
  0x58   : > { %v614_v29 = vld [vmem:[#allocation1] sm:$0xff]  ;;  %v616_v30 = vld [vmem:[#allocation1 + $0x9] sm:$0xff] }
  0x59   : > { %618 = vrot.lane.b32.xlu1 %v614_v29, %s1116_s7  ;;  %648 = vst [vmem:[#allocation1] ss:$9 sm:$0xff] %v646_v28  ;;  %620 = vrot.lane.b32.xlu2 %v616_v30, %s1116_s7  ;;  %v1028_v28 = vld [vmem:[%s1272_s0 + $0x20] sm:$0xf] }
  0x60   : > { %v649_v32 = vld [vmem:[#allocation1] sm:$0xff]  ;;  %v651_v33 = vld [vmem:[#allocation1 + $0x9] sm:$0xff] }
  0x61   : > { %653 = vrot.lane.b32.xlu0 %v649_v32, %s1117_s8  ;;  %655 = vrot.lane.b32.xlu1 %v651_v33, %s1117_s8  ;;  %683 = vst [vmem:[#allocation1] ss:$9 sm:$0xff] %v681_v31 }
  0x68   : > { %v686_v35 = vld [vmem:[#allocation1 + $0x9] sm:$0xff]  ;;  %v684_v36 = vld [vmem:[#allocation1] sm:$0xff] }
  0x69   : > { %690 = vrot.lane.b32.xlu0 %v686_v35, %s1118_s9  ;;  %718 = vst [vmem:[#allocation1] ss:$9 sm:$0xff] %v716_v34  ;;  %688 = vrot.lane.b32.xlu2 %v684_v36, %s1118_s9  ;;  %v1030_v34 = vld [vmem:[%s1272_s0 + $0x24] sm:$0xf] }
  0x70   : > { %v721_v38 = vld [vmem:[#allocation1 + $0x9] sm:$0xff]  ;;  %v719_v39 = vld [vmem:[#allocation1] sm:$0xff] }
  0x71   : > { %725 = vrot.lane.b32.xlu0 %v721_v38, %s1119_s10  ;;  %753 = vst [vmem:[#allocation1] ss:$9 sm:$0xff] %v751_v37  ;;  %723 = vrot.lane.b32.xlu2 %v719_v39, %s1119_s10  ;;  %v1032_v39 = vld [vmem:[%s1272_s0 + $0x28] sm:$0xf] }
  0x78   : > { %v754_v41 = vld [vmem:[#allocation1] sm:$0xff]  ;;  %v756_v42 = vld [vmem:[#allocation1 + $0x9] sm:$0xff] }
  0x79   : > { %788 = vst [vmem:[#allocation1] ss:$9 sm:$0xff] %v786_v40  ;;  %758 = vrot.lane.b32.xlu0 %v754_v41, %s1120_s11 }
  0x80   : > { %v789_v44 = vld [vmem:[#allocation1] sm:$0xff]  ;;  %v791_v45 = vld [vmem:[#allocation1 + $0x9] sm:$0xff] }
  0x81   : > { %823 = vst [vmem:[#allocation1] ss:$9 sm:$0xff] %v821_v43  ;;  %795 = vrot.lane.b32.xlu0 %v791_v45, %s1121_s12  ;;  %v1034_v43 = vld [vmem:[%s1272_s0 + $0x2c] sm:$0xf]  ;;  %v854_v45 = vld [vmem:[%s1273_s1] sm:$0xff] }
  0x88   : > { %v824_v47 = vld [vmem:[#allocation1] sm:$0xff]  ;;  %v826_v48 = vld [vmem:[#allocation1 + $0x9] sm:$0xff] }
  0x89   : > { %828 = vrot.lane.b32.xlu1 %v824_v47, %s1123_s13  ;;  %830 = vrot.lane.b32.xlu2 %v826_v48, %s1123_s13 }
  0x8b   : > { %v444_v49 = vpop.permute.xlu2 %443 }
  0x91   : > { %760 = vrot.lane.b32.xlu1 %v756_v42, %s1120_s11  ;;  %793 = vrot.lane.b32.xlu2 %v789_v44, %s1121_s12 }
  0x93   : > { %v352_v50 = vpop.permute.xlu1 %351  ;;  %v446_v51 = vpop.permute.xlu2 %445 }
  0x94   : > { %v448_v53 = vsel %vm447_vm5, %v444_v49, %v446_v51  ;;  %v1038_v51 = vld [vmem:[%s1272_s0 + $0x34] sm:$0xf] }
  0x95   : > { %v453_v54 = vand.u32 %v448_v53, %v1179_v52 }
  0x97   : > { %462 = vmatpush.bf16.msra.mxu3 %v453_v54 }
  0x99   : > { %857 = vperm.xlu1 %1083, %v854_v45  }
  0x9a   : > { %1019 = vmatmul.msk.bf16.vlgmr.msra.gmra.mxu3 %vm357_vm7, %v1018_v61 }
  0x9b   : > { %v409_v55 = vpop.permute.xlu0 %408  ;;  %v354_v56 = vpop.permute.xlu1 %353 }
  0x9c   : > { %v356_v57 = vsel %vm355_vm6, %v352_v50, %v354_v56  ;;  %v479_v4 = vpop.permute.xlu2 %478  ;;  %v1040_v56 = vld [vmem:[%s1272_s0 + $0x38] sm:$0xf] }
  0x9d   : > { %v365_v59 = vand.u32 %v1179_v52, %v356_v57 }
  0x9f   : > { %374 = vmatpush.bf16.msra.mxu0 %v365_v59 }
  0xa2   : > { %1014 = vmatmul.msk.bf16.vlgmr.msra.gmra.mxu0 %vm357_vm7, %v1013_v62 }
  0xa3   : > { %v411_v63 = vpop.permute.xlu0 %410 }
  0xa4   : > { %v413_v0 = vsel %vm412_vm8, %v409_v55, %v411_v63  ;;  %v516_v9 = vpop.permute.xlu2 %515  ;;  %v395_v63 = vpop.f32.mrf.mxu1 }
  0xa5   : > { %v418_v2 = vand.u32 %v413_v0, %v1179_v52 }
  0xa7   : > { %427 = vmatpush.bf16.msra.mxu2 %v418_v2 }
  0xaa   : > { %1017 = vmatmul.msk.bf16.vlgmr.msra.gmra.mxu2 %vm357_vm7, %v1016_v3 }
  0xab   : > { %v481_v5 = vpop.permute.xlu0 %480 }
  0xac   : > { %v483_v6 = vsel %vm482_vm9, %v479_v4, %v481_v5  ;;  %v397_v3 = vpop.f32.mrf.mxu1 }
  0xad   : > { %v488_v7 = vand.u32 %v483_v6, %v1179_v52 }
  0xaf   : > { %497 = vmatpush.bf16.msrb.mxu0 %v488_v7 }
  0xb2   : > { %1021 = vmatmul.msk.bf16.vlgmr.msrb.gmra.mxu0 %vm357_vm7, %v1020_v10 }
  0xb3   : > { %v514_v8 = vpop.permute.xlu1 %513  ;;  %v621_v25 = vpop.permute.xlu2 %620 }
  0xb4   : > { %v518_v11 = vsel %vm517_vm10, %v514_v8, %v516_v9 }
  0xb5   : > { %v523_v12 = vand.u32 %v518_v11, %v1179_v52 }
  0xb7   : > { %532 = vmatpush.bf16.msrb.mxu1 %v523_v12 }
  0xba   : > { %1023 = vmatmul.msk.bf16.vlgmr.msrb.gmra.mxu1 %vm357_vm7, %v1022_v13 }
  0xbb   : > { %v551_v14 = vpop.permute.xlu1 %550  ;;  %v549_v15 = vpop.permute.xlu0 %548 }
  0xbc   : > { %v553_v16 = vsel %vm552_vm11, %v549_v15, %v551_v14 }
  0xbd   : > { %v558_v17 = vand.u32 %v553_v16, %v1179_v52 }
  0xbf   : > { %567 = vmatpush.bf16.msrb.mxu2 %v558_v17 }
  0xc2   : > { %1025 = vmatmul.msk.bf16.vlgmr.msrb.gmra.mxu2 %vm357_vm7, %v1024_v18 }
  0xc3   : > { %v586_v19 = vpop.permute.xlu1 %585  ;;  %v584_v20 = vpop.permute.xlu0 %583 }
  0xc4   : > { %v588_v21 = vsel %vm587_vm12, %v584_v20, %v586_v19  ;;  %v689_v33 = vpop.permute.xlu2 %688 }
  0xc5   : > { %v593_v22 = vand.u32 %v588_v21, %v1179_v52 }
  0xc7   : > { %602 = vmatpush.bf16.msrb.mxu3 %v593_v22 }
  0xca   : > { %1027 = vmatmul.msk.bf16.vlgmr.msrb.gmra.mxu3 %vm357_vm7, %v1026_v23 }
  0xcb   : > { %v619_v24 = vpop.permute.xlu1 %618 }
  0xcc   : > { %v623_v26 = vsel %vm622_vm13, %v619_v24, %v621_v25  ;;  %v724_v38 = vpop.permute.xlu2 %723 }
  0xcd   : > { %v628_v27 = vand.u32 %v623_v26, %v1179_v52 }
  0xcf   : > { %637 = vmatpush.bf16.msra.mxu0 %v628_v27 }
  0xd2   : > { %1029 = vmatmul.msk.bf16.vlgmr.msra.gmra.mxu0 %vm357_vm7, %v1028_v28 }
  0xd3   : > { %v654_v29 = vpop.permute.xlu0 %653  ;;  %v656_v30 = vpop.permute.xlu1 %655 }
  0xd4   : > { %v658_v31 = vsel %vm657_vm14, %v654_v29, %v656_v30 }
  0xd5   : > { %v663_v32 = vand.u32 %v658_v31, %v1179_v52 }
  0xd7   : > { %672 = vmatpush.bf16.msra.mxu1 %v663_v32 }
  0xda   : > { %1031 = vmatmul.msk.bf16.vlgmr.msra.gmra.mxu1 %vm357_vm7, %v1030_v34 }
  0xdb   : > { %v691_v35 = vpop.permute.xlu0 %690 }
  0xdc   : > { %v693_v36 = vsel %vm692_vm15, %v689_v33, %v691_v35 }
  0xdd   : > { %v698_v37 = vand.u32 %v693_v36, %v1179_v52 }
  0xdf   : > { %707 = vmatpush.bf16.msra.mxu2 %v698_v37 }
  0xe2   : > { %1033 = vmatmul.msk.bf16.vlgmr.msra.gmra.mxu2 %vm357_vm7, %v1032_v39 }
  0xe3   : > { %v726_v40 = vpop.permute.xlu0 %725  ;;  %v831_v44 = vpop.permute.xlu2 %830 }
  0xe4   : > { %v728_v41 = vsel %vm727_vm0, %v724_v38, %v726_v40 }
  0xe5   : > { %v733_v42 = vand.u32 %v728_v41, %v1179_v52 }
  0xe7   : > { %742 = vmatpush.bf16.msra.mxu3 %v733_v42 }
  0xea   : > { %1035 = vmatmul.msk.bf16.vlgmr.msra.gmra.mxu3 %vm357_vm7, %v1034_v43 }
  0xeb   : > { %v759_v46 = vpop.permute.xlu0 %758  ;;  %v794_v47 = vpop.permute.xlu2 %793 }
  0xf3   : > { %v796_v48 = vpop.permute.xlu0 %795 }
  0xf4   : > { %v798_v49 = vsel %vm797_vm1, %v794_v47, %v796_v48 }
  0xf5   : > { %v803_v50 = vand.u32 %v798_v49, %v1179_v52 }
  0xf7   : > { %812 = vmatpush.bf16.msrb.mxu1 %v803_v50 }
  0xfa   : > { %1039 = vmatmul.msk.bf16.vlgmr.msrb.gmra.mxu1 %vm357_vm7, %v1038_v51 }
  0xfb   : > { %v829_v53 = vpop.permute.xlu1 %828 }
  0xfc   : > { %v833_v54 = vsel %vm832_vm2, %v829_v53, %v831_v44 }
  0xfd   : > { %v838_v55 = vand.u32 %v833_v54, %v1179_v52 }
  0xff   : > { %847 = vmatpush.bf16.msrb.mxu2 %v838_v55 }
 0x102   : > { %1041 = vmatmul.msk.bf16.vlgmr.msrb.gmra.mxu2 %vm357_vm7, %v1040_v56 }
 0x103   : > { %v761_v57 = vpop.permute.xlu1 %760 }
 0x104   : > { %v763_v58 = vsel %vm762_vm3, %v759_v46, %v761_v57 }
 0x105   : > { %v768_v59 = vand.u32 %v763_v58, %v1179_v52 }
 0x107   : > { %777 = vmatpush.bf16.msrb.mxu0 %v768_v59 }
 0x10a   : > { %1037 = vmatmul.msk.bf16.vlgmr.msrb.gmra.mxu0 %vm357_vm7, %v1036_v60 }
 0x10b   : > { %v858_v37 = vpop.permute.xlu1 %857 }
 0x11d   : > { %v464_v62 = vpop.f32.mrf.mxu3 }
 0x11f   : > { %v376_v61 = vpop.f32.mrf.mxu0 }
 0x120   : > { %v396_v0 = vadd.f32 %v395_v63, %v376_v61 }
 0x125   : > { %v466_v2 = vpop.f32.mrf.mxu3 }
 0x127   : > { %v378_v1 = vpop.f32.mrf.mxu0 }
 0x12d   : > { %v429_v4 = vpop.f32.mrf.mxu2 }
 0x12e   : > { %v433_v5 = vadd.f32 %v429_v4, %v396_v0 }
 0x12f   : > { %v499_v7 = vpop.f32.mrf.mxu0 }
 0x130   : > { %v468_v6 = vadd.f32 %v464_v62, %v433_v5 }
 0x132   : > { %v503_v8 = vadd.f32 %v499_v7, %v468_v6 }
 0x135   : > { %v431_v52 = vpop.f32.mrf.mxu2 }
 0x137   : > { %v534_v9 = vpop.f32.mrf.mxu1  ;;  %v501_v11 = vpop.f32.mrf.mxu0 }
 0x138   : > { %v538_v10 = vadd.f32 %v534_v9, %v503_v8 }
 0x13f   : > { %v536_v12 = vpop.f32.mrf.mxu1 }
 0x145   : > { %v569_v13 = vpop.f32.mrf.mxu2 }
 0x146   : > { %v573_v24 = vadd.f32 %v569_v13, %v538_v10 }
 0x14d   : > { %v604_v14 = vpop.f32.mrf.mxu3  ;;  %v571_v15 = vpop.f32.mrf.mxu2 }
 0x14e   : > { %v608_v27 = vadd.f32 %v604_v14, %v573_v24 }
 0x14f   : > { %v639_v16 = vpop.f32.mrf.mxu0 }
 0x150   : > { %v643_v28 = vadd.f32 %v639_v16, %v608_v27 }
 0x155   : > { %v606_v17 = vpop.f32.mrf.mxu3 }
 0x157   : > { %v674_v18 = vpop.f32.mrf.mxu1  ;;  %v641_v19 = vpop.f32.mrf.mxu0 }
 0x158   : > { %v678_v30 = vadd.f32 %v674_v18, %v643_v28 }
 0x15f   : > { %v676_v20 = vpop.f32.mrf.mxu1 }
 0x165   : > { %v709_v21 = vpop.f32.mrf.mxu2 }
 0x166   : > { %v713_v31 = vadd.f32 %v709_v21, %v678_v30 }
 0x16d   : > { %v744_v22 = vpop.f32.mrf.mxu3  ;;  %v711_v23 = vpop.f32.mrf.mxu2 }
 0x16e   : > { %v748_v33 = vadd.f32 %v744_v22, %v713_v31 }
 0x175   : > { %v746_v25 = vpop.f32.mrf.mxu3 }
 0x177   : > { %v814_v26 = vpop.f32.mrf.mxu1 }
 0x17f   : > { %v816_v29 = vpop.f32.mrf.mxu1 }
 0x185   : > { %v849_v32 = vpop.f32.mrf.mxu2 }
 0x187   : > { %v779_v34 = vpop.f32.mrf.mxu0 }
 0x188   : > { %v783_v35 = vadd.f32 %v779_v34, %v748_v33 }
 0x18a   : > { %v818_v36 = vadd.f32 %v814_v26, %v783_v35 }
 0x18c   : > { %v853_v38 = vadd.f32 %v849_v32, %v818_v36 }
 0x18d   : > { %v851_v39 = vpop.f32.mrf.mxu2 }
 0x18e   : > { %v860_v40 = vadd.f32 %v858_v37, %v853_v38 }
 0x18f   : > { %v781_v41 = vpop.f32.mrf.mxu0 }
 0x190   : > { %vm861_vm4 = vcmp.ge.f32.partialorder %v860_v40, 0.0  ;;  %v862_v42 = vmul.f32 0.1, %v860_v40 }
 0x192   : > { %v863_v43 = vsel %vm861_vm4, %v860_v40, %v862_v42 }
 0x193   : > { %864 = vst [vmem:[%s325_s5] sm:$0xff] %v863_v43 }
 0x194 PF: > { %s14_s17 = sadd.s32 1, %s1107_s17   ;;  %s1277_s15 = smov %s1103_s16 }
 0x195   : > { %p11_p5 = scmp.ge.s32.totalorder %s14_s17, 4   ;;  %s1278_s16 = smov %s1280_s18 }
 0x197   :  { %13 = sbr.rel (!%p11_p5) target bundleno = 2 (0x2), region = 89 }

// kernel: _lambda_.13
= control target key start
LH: loop header
LB: loop body
LE: loop exit
PB: predicated region body
PF: predicated region fallthrough
CT: control target
= control target key end

     0   :  { %s1299_s15 = smov 0   ;;  %s1301_s16 = smov 0   ;;  %s1456_s0 = inlined_call_operand.vmem [shape: bf16[2,21,8,8], index: 0, kind: input, shape index: {}]   ;;  %s1457_s1 = inlined_call_operand.vmem [shape: f32[2,8,1], index: 1, kind: input, shape index: {}]   ;;  %s1458_s2 = inlined_call_operand.vmem [shape: bf16[2,2,8,148], index: 2, kind: input, shape index: {}]   ;;  %s1459_s3 = inlined_call_operand.vmem [shape: bf16[2,2,1,8,20], index: 3, kind: input, shape index: {}]   ;;  %s1460_s4 = inlined_call_operand.vmem [shape: f32[2,16,128], index: 4, kind: output, shape index: {}]  }
   0x1   :  { %s1303_s17 = smov 0   ;;  %s1305_s18 = smov 0  }
   0x2   :  { %s1307_s19 = smov 0  }
   0x3 LB: > { %s29_s20 = sadd.s32 1, %s1243_s17  ;;  %s33_s21 = sadd.s32 1, %s1247_s18  ;;  %s1251_s19 = sphi %s1307_s19, %s14_s19   ;;  %s1247_s18 = sphi %s1305_s18, %s1464_s18   ;;  %s1243_s17 = sphi %s1303_s17, %s1463_s17   ;;  %s1239_s16 = sphi %s1301_s16, %s1462_s16   ;;  %s1235_s15 = sphi %s1299_s15, %s1461_s15  }
   0x4   : > { %p31_p0 = scmp.ge.s32.totalorder %s29_s20, 2  ;;  %p1096_p1 = scmp.ge.s32.totalorder %s1251_s19, 1 }
   0x5   : > { %p235_p2 = scmp.lt.s32.totalorder %s1251_s19, 5 }
   0x6   : > { %s1466_s20 = smov (%p31_p0, %s29_s20), 0  ;;  %s1468_s21 = smov (!%p31_p0, %s33_s21), %s1247_s18 }
   0x7   : > { %p236_p3 = pnand %p1096_p1, %p235_p2  ;;  %p35_p4 = scmp.ge.s32.totalorder %s1468_s21, 2 }
   0x8   : > { %p294_p5 = scmp.lt.s32.totalorder (!%p236_p3), %s1239_s16, 1  ;;  %p303_p6 = scmp.lt.s32.totalorder (!%p236_p3), %s1235_s15, 1 }
   0x9   : > { %s1470_s21 = smov (%p35_p4, %s1468_s21), 0  ;;  %239 = sbr.rel (%p236_p3) target bundleno = 391 (0x187), region = 36 }
   0xa   : > { %s1253_s9 = smov (!%p236_p3), 126   ;;  %s1254_s10 = smov (!%p236_p3), 127  }
   0xb   : > { %s1255_s11 = smov (!%p236_p3), 125   ;;  %s1256_s12 = smov (!%p236_p3), 124  }
   0xc   : > { %s1257_s13 = smov (!%p236_p3), 122   ;;  %s1258_s14 = smov (!%p236_p3), 121  }
   0xd   : > { %s1266_s29 = smov (!%p236_p3), 113   ;;  %s1267_s30 = smov (!%p236_p3), 115  }
   0xe   : > { %s1472_s16 = smov (!%p294_p5, %s1239_s16), 1  ;;  %s1474_s15 = smov (!%p303_p6, %s1235_s15), 1  ;;  %vm341_vm0 = vcmask 158720   ;;  %vm433_vm1 = vcmask 1022976   ;;  %vm363_vm2 = vcmask 1043456   ;;  %vm359_vm3 = vcmask 64512  }
   0xf   : > { %s1099_s22 = sshll.u32 %s1472_s16, 1  ;;  %s1100_s23 = sshll.u32 %s1474_s15, 2  ;;  %vm357_vm4 = vcmask 1039360   ;;  %vm405_vm5 = vcmask 1031168   ;;  %vm461_vm6 = vcmask 1014784   ;;  %vm517_vm7 = vcmask 998400  }
  0x10   : > { %s1102_s24 = sshll.u32 %s1474_s15, 1  ;;  %s312_s25 = sadd.s32 %s1100_s23, %s1099_s22  ;;  %vm545_vm8 = vcmask 990208   ;;  %vm489_vm9 = vcmask 1006592   ;;  %vm629_vm10 = vcmask 965632   ;;  %vm573_vm11 = vcmask 982016  }
  0x11   : > { %s1333_s26 = sadd.s32 %s1102_s24, %s1472_s16  ;;  %s1101_s27 = sshll.u32 %s312_s25, 2  ;;  %vm657_vm12 = vcmask 957440   ;;  %vm685_vm13 = vcmask 949248   ;;  %vm601_vm14 = vcmask 973824   ;;  %vm741_vm15 = vcmask 932864  }
  0x12   : > { %s1103_s28 = sshll.u32 %s1333_s26, 2  ;;  %s314_s5 = scalar_lea.vmem %s1458_s2, %s1101_s27 }
  0x13   : > { %s325_s8 = scalar_lea.vmem %s1459_s3, %s1103_s28  ;;  %v338_v0 = vld [vmem:[%s314_s5] sm:$0xf]  ;;  %s1259_s15 = smov 123  }
  0x14   : > { %v340_v1 = vld [vmem:[%s325_s8] sm:$0xf]  ;;  %339 = vst [vmem:[#allocation2] sm:$0xf] %v338_v0  ;;  %s1260_s22 = smov 120   ;;  %s1261_s23 = smov 118  }
  0x15   : > { %342 = vst.msk [vmem:[#allocation2 + $0x4] sm:$0xf] %vm341_vm0, %v340_v1  ;;  %s1262_s24 = smov 117   ;;  %s1263_s25 = smov 119   ;;  %vm713_vm0 = vcmask 941056  }
  0x16   : > { %s1264_s27 = smov 116   ;;  %s1265_s28 = smov 114  }
  0x17   : > { %s1268_s5 = smov 112   ;;  %s1269_s6 = smov 110  }
  0x18   : > { %s1270_s7 = smov 109   ;;  %s1271_s8 = smov 111  }
  0x1b   : > { %v344_v9 = vld [vmem:[#allocation2] sm:$0xf] }
  0x1c   : > { %v347_v2 = vld [vmem:[#allocation2] sm:$0xff]  ;;  %v384_v11 = vsel %vm363_vm2, %v344_v9, 0 }
  0x1d   : > { %v349_v3 = vunpack.c.l.b16 %v347_v2  ;;  %v350_v5 = vunpack.c.h.b16 %v347_v2  ;;  %393 = vmatpush.bf16.msra.mxu1 %v384_v11 }
  0x1f   : > { %v351_v4 = vpack.c.b16 %v349_v3, %v349_v3  ;;  %v1342_v6 = vpack.c.b16 %v350_v5, %v350_v5 }
  0x21   : > { %401 = vrot.lane.b32.xlu1 %v351_v4, %s1253_s9  ;;  %353 = vrot.lane.b32.xlu0 %v351_v4, %s1254_s10 }
  0x22   : > { %429 = vrot.lane.b32.xlu2 %v351_v4, %s1255_s11 }
  0x29   : > { %403 = vrot.lane.b32.xlu1 %v1342_v6, %s1253_s9  ;;  %355 = vrot.lane.b32.xlu0 %v1342_v6, %s1254_s10  ;;  %s1272_s9 = smov 108   ;;  %s1149_s10 = smul.u32 84, %s1472_s16 }
  0x2a   : > { %431 = vrot.lane.b32.xlu2 %v1342_v6, %s1255_s11 }
  0x31   : > { %459 = vrot.lane.b32.xlu1 %v1342_v6, %s1256_s12  ;;  %457 = vrot.lane.b32.xlu0 %v351_v4, %s1256_s12 }
  0x32   : > { %513 = vrot.lane.b32.xlu2 %v351_v4, %s1257_s13 }
  0x39   : > { %541 = vrot.lane.b32.xlu1 %v351_v4, %s1258_s14  ;;  %515 = vrot.lane.b32.xlu0 %v1342_v6, %s1257_s13  ;;  %s1369_s13 = scalar_lea.vmem %s1456_s0, %s1149_s10 }
  0x3a   : > { %543 = vrot.lane.b32.xlu2 %v1342_v6, %s1258_s14  ;;  %v1111_v13 = vld [vmem:[%s1369_s13 + $0xc] sm:$0xf]  ;;  %v343_v14 = vld [vmem:[%s1369_s13] sm:$0xf]  ;;  %v1106_v25 = vld [vmem:[%s1369_s13 + $0x4] sm:$0xf] }
  0x3b   : > { %1108 = vmatmul.msk.bf16.vlgmr.msra.gmra.mxu1 %vm359_vm3, %v343_v14  ;;  %v1109_v26 = vld [vmem:[%s1369_s13 + $0x8] sm:$0xf]  ;;  %v1113_v39 = vld [vmem:[%s1369_s13 + $0x10] sm:$0xf]  ;;  %v1117_v40 = vld [vmem:[%s1369_s13 + $0x18] sm:$0xf] }
  0x3c   : > { %v1119_v41 = vld [vmem:[%s1369_s13 + $0x1c] sm:$0xf]  ;;  %v1115_v46 = vld [vmem:[%s1369_s13 + $0x14] sm:$0xf]  ;;  %v1121_v54 = vld [vmem:[%s1369_s13 + $0x20] sm:$0xf] }
  0x3d   : > { %v1125_v55 = vld [vmem:[%s1369_s13 + $0x28] sm:$0xf]  ;;  %v1127_v61 = vld [vmem:[%s1369_s13 + $0x2c] sm:$0xf]  ;;  %v1123_v5 = vld [vmem:[%s1369_s13 + $0x24] sm:$0xf] }
  0x3e   : > { %s1098_s14 = sshll.u32 %s1472_s16, 3  ;;  %s1105_s16 = sshll.u32 %s1333_s26, 3 }
  0x41   : > { %487 = vrot.lane.b32.xlu1 %v1342_v6, %s1259_s15  ;;  %485 = vrot.lane.b32.xlu0 %v351_v4, %s1259_s15 }
  0x42   : > { %569 = vrot.lane.b32.xlu2 %v351_v4, %s1260_s22 }
  0x49   : > { %625 = vrot.lane.b32.xlu1 %v351_v4, %s1261_s23  ;;  %571 = vrot.lane.b32.xlu0 %v1342_v6, %s1260_s22 }
  0x4a   : > { %627 = vrot.lane.b32.xlu2 %v1342_v6, %s1261_s23  ;;  %s302_s23 = scalar_lea.vmem %s1457_s1, %s1098_s14 }
  0x51   : > { %655 = vrot.lane.b32.xlu1 %v1342_v6, %s1262_s24  ;;  %653 = vrot.lane.b32.xlu0 %v351_v4, %s1262_s24 }
  0x52   : > { %597 = vrot.lane.b32.xlu2 %v351_v4, %s1263_s25 }
  0x59   : > { %681 = vrot.lane.b32.xlu1 %v351_v4, %s1264_s27  ;;  %599 = vrot.lane.b32.xlu0 %v1342_v6, %s1263_s25 }
  0x5a   : > { %683 = vrot.lane.b32.xlu2 %v1342_v6, %s1264_s27  ;;  %s336_s27 = scalar_lea.vmem %s1460_s4, %s1105_s16 }
  0x61   : > { %739 = vrot.lane.b32.xlu1 %v1342_v6, %s1265_s28  ;;  %737 = vrot.lane.b32.xlu0 %v351_v4, %s1265_s28 }
  0x62   : > { %765 = vrot.lane.b32.xlu2 %v351_v4, %s1266_s29 }
  0x69   : > { %709 = vrot.lane.b32.xlu1 %v351_v4, %s1267_s30  ;;  %767 = vrot.lane.b32.xlu0 %v1342_v6, %s1266_s29 }
  0x6a   : > { %711 = vrot.lane.b32.xlu2 %v1342_v6, %s1267_s30 }
  0x71   : > { %795 = vrot.lane.b32.xlu1 %v1342_v6, %s1268_s5  ;;  %793 = vrot.lane.b32.xlu0 %v351_v4, %s1268_s5 }
  0x72   : > { %849 = vrot.lane.b32.xlu2 %v351_v4, %s1269_s6 }
  0x79   : > { %877 = vrot.lane.b32.xlu1 %v351_v4, %s1270_s7  ;;  %851 = vrot.lane.b32.xlu0 %v1342_v6, %s1269_s6 }
  0x7a   : > { %879 = vrot.lane.b32.xlu2 %v1342_v6, %s1270_s7 }
  0x7c   : > { %v430_v7 = vpop.permute.xlu2 %429 }
  0x81   : > { %823 = vrot.lane.b32.xlu1 %v1342_v6, %s1271_s8  ;;  %821 = vrot.lane.b32.xlu0 %v351_v4, %s1271_s8 }
  0x82   : > { %905 = vrot.lane.b32.xlu2 %v351_v4, %s1272_s9 }
  0x84   : > { %v432_v8 = vpop.permute.xlu2 %431 }
  0x85   : > { %v434_v10 = vsel %vm433_vm1, %v430_v7, %v432_v8  ;;  %vm769_vm1 = vcmask 924672  }
  0x86   : > { %v439_v12 = vsel %vm363_vm2, %v434_v10, 0 }
  0x87   : > { %448 = vmatpush.bf16.msra.mxu3 %v439_v12  ;;  %v1133_v12 = vld [vmem:[%s1369_s13 + $0x38] sm:$0xf] }
  0x89   : > { %907 = vrot.lane.b32.xlu0 %v1342_v6, %s1272_s9  ;;  %v1129_v6 = vld [vmem:[%s1369_s13 + $0x30] sm:$0xf] }
  0x8a   : > { %1112 = vmatmul.msk.bf16.vlgmr.msra.gmra.mxu3 %vm359_vm3, %v1111_v13 }
  0x8c   : > { %v514_v15 = vpop.permute.xlu2 %513 }
  0x93   : > { %v402_v16 = vpop.permute.xlu1 %401  ;;  %v354_v17 = vpop.permute.xlu0 %353 }
  0x94   : > { %v544_v18 = vpop.permute.xlu2 %543 }
  0x9b   : > { %v404_v19 = vpop.permute.xlu1 %403  ;;  %v356_v20 = vpop.permute.xlu0 %355 }
  0x9c   : > { %v358_v21 = vsel %vm357_vm4, %v354_v17, %v356_v20  ;;  %v406_v22 = vsel %vm405_vm5, %v402_v16, %v404_v19  ;;  %v570_v27 = vpop.permute.xlu2 %569  ;;  %v1131_v19 = vld [vmem:[%s1369_s13 + $0x34] sm:$0xf]  ;;  %v1135_v20 = vld [vmem:[%s1369_s13 + $0x3c] sm:$0xf]  ;;  %vm797_vm4 = vcmask 916480   ;;  %vm853_vm5 = vcmask 900096  }
  0x9d   : > { %v365_v23 = vsel %vm363_vm2, %v358_v21, 0  ;;  %v411_v24 = vsel %vm363_vm2, %v406_v22, 0  ;;  %v931_v22 = vld [vmem:[%s302_s23] sm:$0xff] }
  0x9e   : > { %374 = vmatpush.bf16.msra.mxu0 %v365_v23  ;;  %420 = vmatpush.bf16.msra.mxu2 %v411_v24  ;;  %v1273_v23 = vmov 0  }
  0x9f   : > { %1211 = vset.pattern.permute.xlu1 %v1273_v23  ;;  %1212 = vset.pattern.permute.xlu0 %v1273_v23 }
  0xa0   : > { %934 = vperm.xlu1 %1211, %v931_v22  }
  0xa1   : > { %1107 = vmatmul.msk.bf16.vlgmr.msra.gmra.mxu0 %vm359_vm3, %v1106_v25  ;;  %1110 = vmatmul.msk.bf16.vlgmr.msra.gmra.mxu2 %vm359_vm3, %v1109_v26 }
  0xa3   : > { %v460_v28 = vpop.permute.xlu1 %459  ;;  %v458_v29 = vpop.permute.xlu0 %457 }
  0xa4   : > { %v462_v30 = vsel %vm461_vm6, %v458_v29, %v460_v28  ;;  %v628_v36 = vpop.permute.xlu2 %627  ;;  %v1137_v28 = vld [vmem:[%s1369_s13 + $0x40] sm:$0xf]  ;;  %vm881_vm6 = vcmask 891904  }
  0xa5   : > { %v467_v31 = vsel %vm363_vm2, %v462_v30, 0 }
  0xa6   : > { %476 = vmatpush.bf16.msrb.mxu0 %v467_v31 }
  0xab   : > { %v542_v32 = vpop.permute.xlu1 %541  ;;  %v516_v33 = vpop.permute.xlu0 %515 }
  0xac   : > { %v518_v34 = vsel %vm517_vm7, %v514_v15, %v516_v33  ;;  %v546_v35 = vsel %vm545_vm8, %v542_v32, %v544_v18  ;;  %v598_v47 = vpop.permute.xlu2 %597  ;;  %vm825_vm7 = vcmask 908288   ;;  %vm909_vm8 = vcmask 883712  }
  0xad   : > { %v523_v37 = vsel %vm363_vm2, %v518_v34, 0  ;;  %v551_v38 = vsel %vm363_vm2, %v546_v35, 0 }
  0xae   : > { %532 = vmatpush.bf16.msrb.mxu2 %v523_v37  ;;  %560 = vmatpush.bf16.msrb.mxu3 %v551_v38  ;;  %v1143_v37 = vld [vmem:[%s1369_s13 + $0x4c] sm:$0xf] }
  0xb1   : > { %1114 = vmatmul.msk.bf16.vlgmr.msrb.gmra.mxu0 %vm359_vm3, %v1113_v39  ;;  %1118 = vmatmul.msk.bf16.vlgmr.msrb.gmra.mxu2 %vm359_vm3, %v1117_v40 }
  0xb2   : > { %1120 = vmatmul.msk.bf16.vlgmr.msrb.gmra.mxu3 %vm359_vm3, %v1119_v41 }
  0xb3   : > { %v488_v42 = vpop.permute.xlu1 %487  ;;  %v486_v43 = vpop.permute.xlu0 %485 }
  0xb4   : > { %v490_v44 = vsel %vm489_vm9, %v486_v43, %v488_v42  ;;  %v684_v56 = vpop.permute.xlu2 %683  ;;  %v1139_v42 = vld [vmem:[%s1369_s13 + $0x44] sm:$0xf] }
  0xb5   : > { %v495_v45 = vsel %vm363_vm2, %v490_v44, 0 }
  0xb6   : > { %504 = vmatpush.bf16.msrb.mxu1 %v495_v45 }
  0xb9   : > { %1116 = vmatmul.msk.bf16.vlgmr.msrb.gmra.mxu1 %vm359_vm3, %v1115_v46 }
  0xbb   : > { %v626_v48 = vpop.permute.xlu1 %625  ;;  %v572_v49 = vpop.permute.xlu0 %571 }
  0xbc   : > { %v630_v50 = vsel %vm629_vm10, %v626_v48, %v628_v36  ;;  %v574_v51 = vsel %vm573_vm11, %v570_v27, %v572_v49  ;;  %v766_v62 = vpop.permute.xlu2 %765  ;;  %v1141_v36 = vld [vmem:[%s1369_s13 + $0x48] sm:$0xf]  ;;  %v395_v48 = vpop.f32.mrf.mxu1 }
  0xbd   : > { %v635_v52 = vsel %vm363_vm2, %v630_v50, 0  ;;  %v579_v53 = vsel %vm363_vm2, %v574_v51, 0 }
  0xbe   : > { %588 = vmatpush.bf16.msra.mxu0 %v579_v53  ;;  %644 = vmatpush.bf16.msra.mxu2 %v635_v52 }
  0xc1   : > { %1122 = vmatmul.msk.bf16.vlgmr.msra.gmra.mxu0 %vm359_vm3, %v1121_v54  ;;  %1126 = vmatmul.msk.bf16.vlgmr.msra.gmra.mxu2 %vm359_vm3, %v1125_v55 }
  0xc3   : > { %v656_v57 = vpop.permute.xlu1 %655  ;;  %v654_v58 = vpop.permute.xlu0 %653 }
  0xc4   : > { %v658_v59 = vsel %vm657_vm12, %v654_v58, %v656_v57  ;;  %v712_v11 = vpop.permute.xlu2 %711  ;;  %v397_v50 = vpop.f32.mrf.mxu1 }
  0xc5   : > { %v663_v60 = vsel %vm363_vm2, %v658_v59, 0 }
  0xc6   : > { %672 = vmatpush.bf16.msra.mxu3 %v663_v60 }
  0xc9   : > { %1128 = vmatmul.msk.bf16.vlgmr.msra.gmra.mxu3 %vm359_vm3, %v1127_v61 }
  0xcb   : > { %v682_v63 = vpop.permute.xlu1 %681  ;;  %v600_v0 = vpop.permute.xlu0 %599 }
  0xcc   : > { %v686_v1 = vsel %vm685_vm13, %v682_v63, %v684_v56  ;;  %v602_v2 = vsel %vm601_vm14, %v598_v47, %v600_v0  ;;  %v850_v21 = vpop.permute.xlu2 %849  ;;  %v1145_v47 = vld [vmem:[%s1369_s13 + $0x50] sm:$0xf] }
  0xcd   : > { %v691_v3 = vsel %vm363_vm2, %v686_v1, 0  ;;  %v607_v4 = vsel %vm363_vm2, %v602_v2, 0 }
  0xce   : > { %616 = vmatpush.bf16.msra.mxu1 %v607_v4  ;;  %700 = vmatpush.bf16.msrb.mxu0 %v691_v3 }
  0xd1   : > { %1124 = vmatmul.msk.bf16.vlgmr.msra.gmra.mxu1 %vm359_vm3, %v1123_v5  ;;  %1130 = vmatmul.msk.bf16.vlgmr.msrb.gmra.mxu0 %vm359_vm3, %v1129_v6 }
  0xd3   : > { %v740_v7 = vpop.permute.xlu1 %739  ;;  %v738_v8 = vpop.permute.xlu0 %737 }
  0xd4   : > { %v742_v9 = vsel %vm741_vm15, %v738_v8, %v740_v7  ;;  %v880_v29 = vpop.permute.xlu2 %879 }
  0xd5   : > { %v747_v10 = vsel %vm363_vm2, %v742_v9, 0 }
  0xd6   : > { %756 = vmatpush.bf16.msrb.mxu2 %v747_v10 }
  0xd9   : > { %1134 = vmatmul.msk.bf16.vlgmr.msrb.gmra.mxu2 %vm359_vm3, %v1133_v12 }
  0xdb   : > { %v710_v13 = vpop.permute.xlu1 %709  ;;  %v768_v14 = vpop.permute.xlu0 %767 }
  0xdc   : > { %v714_v15 = vsel %vm713_vm0, %v710_v13, %v712_v11  ;;  %v770_v16 = vsel %vm769_vm1, %v766_v62, %v768_v14  ;;  %v906_v43 = vpop.permute.xlu2 %905 }
  0xdd   : > { %v719_v17 = vsel %vm363_vm2, %v714_v15, 0  ;;  %v775_v18 = vsel %vm363_vm2, %v770_v16, 0 }
  0xde   : > { %728 = vmatpush.bf16.msrb.mxu1 %v719_v17  ;;  %784 = vmatpush.bf16.msrb.mxu3 %v775_v18 }
  0xe1   : > { %1132 = vmatmul.msk.bf16.vlgmr.msrb.gmra.mxu1 %vm359_vm3, %v1131_v19  ;;  %1136 = vmatmul.msk.bf16.vlgmr.msrb.gmra.mxu3 %vm359_vm3, %v1135_v20 }
  0xe3   : > { %v796_v24 = vpop.permute.xlu1 %795  ;;  %v794_v25 = vpop.permute.xlu0 %793 }
  0xe4   : > { %v798_v26 = vsel %vm797_vm4, %v794_v25, %v796_v24 }
  0xe5   : > { %v803_v27 = vsel %vm363_vm2, %v798_v26, 0 }
  0xe6   : > { %812 = vmatpush.bf16.msra.mxu0 %v803_v27 }
  0xe9   : > { %1138 = vmatmul.msk.bf16.vlgmr.msra.gmra.mxu0 %vm359_vm3, %v1137_v28 }
  0xeb   : > { %v878_v30 = vpop.permute.xlu1 %877  ;;  %v852_v31 = vpop.permute.xlu0 %851 }
  0xec   : > { %v854_v32 = vsel %vm853_vm5, %v850_v21, %v852_v31  ;;  %v882_v33 = vsel %vm881_vm6, %v878_v30, %v880_v29 }
  0xed   : > { %v859_v34 = vsel %vm363_vm2, %v854_v32, 0  ;;  %v887_v35 = vsel %vm363_vm2, %v882_v33, 0 }
  0xee   : > { %868 = vmatpush.bf16.msra.mxu2 %v859_v34  ;;  %896 = vmatpush.bf16.msra.mxu3 %v887_v35 }
  0xf1   : > { %1142 = vmatmul.msk.bf16.vlgmr.msra.gmra.mxu2 %vm359_vm3, %v1141_v36  ;;  %1144 = vmatmul.msk.bf16.vlgmr.msra.gmra.mxu3 %vm359_vm3, %v1143_v37 }
  0xf3   : > { %v824_v38 = vpop.permute.xlu1 %823  ;;  %v822_v39 = vpop.permute.xlu0 %821 }
  0xf4   : > { %v826_v40 = vsel %vm825_vm7, %v822_v39, %v824_v38 }
  0xf5   : > { %v831_v41 = vsel %vm363_vm2, %v826_v40, 0 }
  0xf6   : > { %840 = vmatpush.bf16.msra.mxu1 %v831_v41 }
  0xf9   : > { %1140 = vmatmul.msk.bf16.vlgmr.msra.gmra.mxu1 %vm359_vm3, %v1139_v42 }
  0xfb   : > { %v908_v44 = vpop.permute.xlu0 %907 }
  0xfc   : > { %v910_v45 = vsel %vm909_vm8, %v906_v43, %v908_v44 }
  0xfd   : > { %v915_v46 = vsel %vm363_vm2, %v910_v45, 0 }
  0xfe   : > { %924 = vmatpush.bf16.msrb.mxu0 %v915_v46 }
 0x101   : > { %1146 = vmatmul.msk.bf16.vlgmr.msrb.gmra.mxu0 %vm359_vm3, %v1145_v47 }
 0x10d   : > { %v450_v49 = vpop.f32.mrf.mxu3 }
 0x112   : > { %v935_v42 = vpop.permute.xlu1 %934 }
 0x115   : > { %v452_v51 = vpop.f32.mrf.mxu3 }
 0x11e   : > { %v376_v52 = vpop.f32.mrf.mxu0 }
 0x11f   : > { %v396_v53 = vadd.f32 %v395_v48, %v376_v52 }
 0x124   : > { %v422_v54 = vpop.f32.mrf.mxu2 }
 0x125   : > { %v426_v55 = vadd.f32 %v422_v54, %v396_v53 }
 0x126   : > { %v378_v56 = vpop.f32.mrf.mxu0 }
 0x127   : > { %v454_v57 = vadd.f32 %v450_v49, %v426_v55 }
 0x12c   : > { %v424_v58 = vpop.f32.mrf.mxu2 }
 0x12e   : > { %v478_v59 = vpop.f32.mrf.mxu0 }
 0x12f   : > { %v482_v8 = vadd.f32 %v478_v59, %v454_v57 }
 0x134   : > { %v534_v60 = vpop.f32.mrf.mxu2 }
 0x135   : > { %v562_v61 = vpop.f32.mrf.mxu3 }
 0x136   : > { %v480_v62 = vpop.f32.mrf.mxu0  ;;  %v506_v63 = vpop.f32.mrf.mxu1 }
 0x137   : > { %v510_v11 = vadd.f32 %v506_v63, %v482_v8 }
 0x139   : > { %v538_v13 = vadd.f32 %v534_v60, %v510_v11 }
 0x13b   : > { %v566_v16 = vadd.f32 %v562_v61, %v538_v13 }
 0x13c   : > { %v536_v0 = vpop.f32.mrf.mxu2 }
 0x13d   : > { %v564_v1 = vpop.f32.mrf.mxu3 }
 0x13e   : > { %v590_v2 = vpop.f32.mrf.mxu0  ;;  %v508_v3 = vpop.f32.mrf.mxu1 }
 0x13f   : > { %v594_v17 = vadd.f32 %v590_v2, %v566_v16 }
 0x144   : > { %v646_v4 = vpop.f32.mrf.mxu2 }
 0x146   : > { %v592_v5 = vpop.f32.mrf.mxu0 }
 0x14c   : > { %v674_v6 = vpop.f32.mrf.mxu3  ;;  %v648_v7 = vpop.f32.mrf.mxu2 }
 0x14e   : > { %v618_v9 = vpop.f32.mrf.mxu1  ;;  %v702_v10 = vpop.f32.mrf.mxu0 }
 0x14f   : > { %v622_v19 = vadd.f32 %v618_v9, %v594_v17 }
 0x151   : > { %v650_v21 = vadd.f32 %v646_v4, %v622_v19 }
 0x153   : > { %v678_v24 = vadd.f32 %v674_v6, %v650_v21 }
 0x154   : > { %v676_v12 = vpop.f32.mrf.mxu3 }
 0x155   : > { %v706_v27 = vadd.f32 %v702_v10, %v678_v24 }
 0x156   : > { %v620_v14 = vpop.f32.mrf.mxu1  ;;  %v704_v15 = vpop.f32.mrf.mxu0 }
 0x15c   : > { %v758_v18 = vpop.f32.mrf.mxu2 }
 0x15e   : > { %v730_v20 = vpop.f32.mrf.mxu1 }
 0x15f   : > { %v734_v28 = vadd.f32 %v730_v20, %v706_v27 }
 0x161   : > { %v762_v31 = vadd.f32 %v758_v18, %v734_v28 }
 0x164   : > { %v786_v22 = vpop.f32.mrf.mxu3  ;;  %v760_v23 = vpop.f32.mrf.mxu2 }
 0x165   : > { %v790_v32 = vadd.f32 %v786_v22, %v762_v31 }
 0x166   : > { %v814_v25 = vpop.f32.mrf.mxu0  ;;  %v732_v26 = vpop.f32.mrf.mxu1 }
 0x167   : > { %v818_v35 = vadd.f32 %v814_v25, %v790_v32 }
 0x16c   : > { %v788_v29 = vpop.f32.mrf.mxu3 }
 0x16e   : > { %v816_v30 = vpop.f32.mrf.mxu0 }
 0x174   : > { %v870_v33 = vpop.f32.mrf.mxu2  ;;  %v898_v34 = vpop.f32.mrf.mxu3 }
 0x176   : > { %v842_v36 = vpop.f32.mrf.mxu1 }
 0x177   : > { %v846_v37 = vadd.f32 %v842_v36, %v818_v35 }
 0x179   : > { %v874_v38 = vadd.f32 %v870_v33, %v846_v37 }
 0x17b   : > { %v902_v41 = vadd.f32 %v898_v34, %v874_v38 }
 0x17c   : > { %v872_v39 = vpop.f32.mrf.mxu2  ;;  %v900_v40 = vpop.f32.mrf.mxu3 }
 0x17e   : > { %v926_v43 = vpop.f32.mrf.mxu0  ;;  %v844_v44 = vpop.f32.mrf.mxu1 }
 0x17f   : > { %v930_v45 = vadd.f32 %v926_v43, %v902_v41 }
 0x181   : > { %v937_v46 = vadd.f32 %v935_v42, %v930_v45 }
 0x183   : > { %vm938_vm2 = vcmp.ge.f32.partialorder %v937_v46, 0.0  ;;  %v939_v47 = vmul.f32 0.1, %v937_v46 }
 0x185   : > { %v940_v48 = vsel %vm938_vm2, %v937_v46, %v939_v47 }
 0x186   : > { %941 = vst [vmem:[%s336_s27] sm:$0xff] %v940_v48  ;;  %v928_v49 = vpop.f32.mrf.mxu0 }
 0x187 PF: > { %s14_s19 = sadd.s32 1, %s1251_s19   ;;  %s1461_s15 = smov %s1243_s17 }
 0x188   : > { %p11_p7 = scmp.ge.s32.totalorder %s14_s19, 6   ;;  %s1462_s16 = smov %s1247_s18 }
 0x189   : > { %s1463_s17 = smov %s1466_s20  ;;  %s1464_s18 = smov %s1470_s21 }
 0x18a   :  { %13 = sbr.rel (!%p11_p7) target bundleno = 3 (0x3), region = 95 }

// kernel: _lambda_.14
= control target key start
LH: loop header
LB: loop body
LE: loop exit
PB: predicated region body
PF: predicated region fallthrough
CT: control target
= control target key end

     0   :  { %s1360_s15 = smov 0   ;;  %s1362_s16 = smov 0   ;;  %s1536_s0 = inlined_call_operand.vmem [shape: bf16[2,21,8,16], index: 0, kind: input, shape index: {}]   ;;  %s1537_s1 = inlined_call_operand.vmem [shape: f32[2,8,1], index: 1, kind: input, shape index: {}]   ;;  %s1538_s2 = inlined_call_operand.vmem [shape: bf16[2,2,16,148], index: 2, kind: input, shape index: {}]   ;;  %s1539_s3 = inlined_call_operand.vmem [shape: bf16[2,2,1,16,20], index: 3, kind: input, shape index: {}]   ;;  %s1540_s4 = inlined_call_operand.vmem [shape: f32[2,16,128], index: 4, kind: output, shape index: {}]  }
   0x1   :  { %s1364_s17 = smov 0   ;;  %s1366_s18 = smov 0  }
   0x2   :  { %s1368_s19 = smov 0   ;;  %s1370_s20 = smov 0  }
   0x3   :  { %s1372_s21 = smov 0  }
   0x4 LB: > { %s29_s22 = sadd.s32 1, %s1304_s19  ;;  %s33_s23 = sadd.s32 1, %s1308_s20  ;;  %s1312_s21 = sphi %s1372_s21, %s14_s21   ;;  %s1308_s20 = sphi %s1370_s20, %s1546_s20   ;;  %s1304_s19 = sphi %s1368_s19, %s1545_s19   ;;  %s1300_s18 = sphi %s1366_s18, %s1544_s18   ;;  %s1296_s17 = sphi %s1364_s17, %s1543_s17   ;;  %s1292_s16 = sphi %s1362_s16, %s1542_s16   ;;  %s1288_s15 = sphi %s1360_s15, %s1541_s15  }
   0x5   : > { %p31_p0 = scmp.ge.s32.totalorder %s29_s22, 2  ;;  %p103_p1 = scmp.ne.s32.totalorder %s1292_s16, %s1288_s15 }
   0x6   : > { %p104_p2 = scmp.eq.s32.totalorder %s1312_s21, 0  ;;  %s96_s27 = sadd.s32 1, %s1292_s16 }
   0x7   : > { %s1548_s22 = smov (%p31_p0, %s29_s22), 0  ;;  %s1550_s23 = smov (!%p31_p0, %s33_s23), %s1308_s20 }
   0x8   : > { %p105_p3 = por %p104_p2, %p103_p1  ;;  %p35_p4 = scmp.ge.s32.totalorder %s1550_s23, 2 }
   0x9   : > { %s89_s24 = ssub.s32 %s1304_s19, %s1548_s22  ;;  %p1106_p6 = scmp.ge.s32.totalorder %s1312_s21, 4 }
   0xa   : > { %s1552_s23 = smov (%p35_p4, %s1550_s23), 0 }
   0xb   : > { %s90_s25 = ssub.s32 %s1308_s20, %s1552_s23  ;;  %189 = sbr.rel (%p1106_p6) target bundleno = 25 (0x19), region = 16 }
   0xc   : > { %s91_s26 = sor.u32 %s90_s25, %s89_s24 }
   0xd   : > { %p94_p5 = scmp.eq.s32.totalorder %s91_s26, 0 }
   0xf   : > { %s1411_s28 = scalar_select %p94_p5, %s1292_s16, %s96_s27  }
  0x10   : > { %207 = sbr.rel (!%p105_p3) target bundleno = 25 (0x19), region = 28  ;;  %s209_s29 = sand.u32 (%p105_p3), 1, %s1292_s16  }
  0x11   : > { %s1108_s30 = sshll.u32 (%p105_p3), %s1308_s20, 2  ;;  %s1107_s5 = sshll.u32 (%p105_p3), %s209_s29, 3 }
  0x12   : > { %s1109_s6 = sshll.u32 (%p105_p3), %s1304_s19, 3  ;;  %s211_s12 = scalar_lea.vmem (%p105_p3), [#allocation3], %s1107_s5 }
  0x13   : > { %s215_s7 = sadd.s32 (%p105_p3), %s1109_s6, %s1108_s30 }
  0x14   : > { %s1110_s8 = sshll.u32 (%p105_p3), %s215_s7, 2 }
  0x15   : > { %s217_s11 = scalar_lea.vmem %s1538_s2, %s1110_s8 }
  0x16   : > { %v234_v0 = vld [vmem:[%s217_s11] sm:$0xf]  ;;  %v236_v1 = vld [vmem:[%s217_s11 + $0x8] sm:$0xf] }
  0x17   : > { %235 = vst [vmem:[%s211_s12] sm:$0xf] %v234_v0 }
  0x18   : > { %237 = vst [vmem:[%s211_s12 + $0x4] sm:$0xf] %v236_v1 }
  0x19 PF: > { %p1111_p7 = scmp.ge.s32.totalorder %s1312_s21, 1  ;;  %p280_p8 = scmp.lt.s32.totalorder %s1312_s21, 5 }
  0x1b   : > { %p281_p9 = pnand %p1111_p7, %p280_p8 }
  0x1c   : > { %s287_s13 = sand.u32 (!%p281_p9), 1, %s1288_s15   ;;  %p340_p10 = scmp.lt.s32.totalorder (!%p281_p9), %s1300_s18, 1 }
  0x1d   : > { %284 = sbr.rel (%p281_p9) target bundleno = 403 (0x193), region = 73  ;;  %s1112_s14 = sshll.u32 (!%p281_p9), %s287_s13, 3 }
  0x1e   : > { %s289_s24 = scalar_lea.vmem (!%p281_p9), [#allocation3], %s1112_s14  ;;  %p349_p11 = scmp.lt.s32.totalorder (!%p281_p9), %s1296_s17, 1 }
  0x1f   : > { %s1314_s6 = smov (!%p281_p9), 126   ;;  %s1315_s7 = smov (!%p281_p9), 127  }
  0x20   : > { %s1316_s8 = smov (!%p281_p9), 125   ;;  %s1317_s9 = smov (!%p281_p9), 124  }
  0x21   : > { %s1318_s10 = smov (!%p281_p9), 122   ;;  %s1319_s11 = smov (!%p281_p9), 121  }
  0x22   : > { %v374_v2 = vld [vmem:[%s289_s24] sm:$0xf]  ;;  %v375_v3 = vld [vmem:[%s289_s24 + $0x4] sm:$0xf]  ;;  %s1554_s18 = smov (!%p340_p10, %s1300_s18), 1  ;;  %s1556_s17 = smov (!%p349_p11, %s1296_s17), 1 }
  0x23   : > { %376 = vst [vmem:[#allocation2] sm:$0xf] %v374_v2  ;;  %s1115_s25 = sshll.u32 %s1554_s18, 1  ;;  %s1116_s26 = sshll.u32 %s1556_s17, 2  ;;  %vm380_vm0 = vcmask 158720   ;;  %vm405_vm1 = vcmask 130048  }
  0x24   : > { %377 = vst [vmem:[#allocation2 + $0x8] sm:$0xf] %v375_v3  ;;  %s359_s27 = sadd.s32 %s1116_s26, %s1115_s25  ;;  %s1320_s12 = smov 123   ;;  %vm476_vm2 = vcmask 1022976   ;;  %vm450_vm3 = vcmask 1031168   ;;  %vm402_vm4 = vcmask 1039360  }
  0x25   : > { %s1117_s29 = sshll.u32 %s359_s27, 2  ;;  %s1321_s13 = smov 120   ;;  %vm502_vm5 = vcmask 1014784   ;;  %vm554_vm6 = vcmask 998400   ;;  %vm580_vm7 = vcmask 990208   ;;  %vm528_vm8 = vcmask 1006592  }
  0x26   : > { %s361_s5 = scalar_lea.vmem %s1539_s3, %s1117_s29  ;;  %s1322_s14 = smov 118   ;;  %vm658_vm9 = vcmask 965632   ;;  %vm606_vm10 = vcmask 982016   ;;  %vm684_vm11 = vcmask 957440   ;;  %vm710_vm12 = vcmask 949248  }
  0x27   : > { %v378_v5 = vld [vmem:[%s361_s5] sm:$0xf]  ;;  %v379_v6 = vld [vmem:[%s361_s5 + $0x4] sm:$0xf]  ;;  %s1323_s24 = smov 117   ;;  %s1324_s25 = smov 119  }
  0x28   : > { %381 = vst.msk [vmem:[#allocation2 + $0x4] sm:$0xf] %vm380_vm0, %v378_v5  ;;  %s1325_s26 = smov 116   ;;  %s1326_s27 = smov 114   ;;  %vm632_vm13 = vcmask 973824   ;;  %vm762_vm14 = vcmask 932864  }
  0x29   : > { %382 = vst.msk [vmem:[#allocation2 + $0xc] sm:$0xf] %vm380_vm0, %v379_v6  ;;  %s1327_s29 = smov 113   ;;  %s1328_s15 = smov 115   ;;  %vm736_vm15 = vcmask 941056   ;;  %vm788_vm0 = vcmask 924672  }
  0x2a   : > { %v1123_v4 = vld [vmem:[#allocation2] sm:$0xf]  ;;  %s1329_s30 = smov 112   ;;  %s1330_s5 = smov 110  }
  0x2b   : > { %v1177_v7 = vld [vmem:[#allocation2 + $0x4] sm:$0xf0]  ;;  %v1132_v14 = vld [vmem:[#allocation2] sm:$0xf] }
  0x2c   : > { %v1436_v8 = vor.u32 %v1177_v7, %v1123_v4  ;;  %v1175_v15 = vld [vmem:[#allocation2 + $0x4] sm:$0xf0] }
  0x2d   : > { %v1133_v16 = vor.u32 %v1175_v15, %v1132_v14  ;;  %v1334_v14 = vmov 0  }
  0x2e   : > { %446 = vrot.lane.b32.xlu1 %v1436_v8, %s1314_s6  ;;  %398 = vrot.lane.b32.xlu0 %v1436_v8, %s1315_s7 }
  0x2f   : > { %472 = vrot.lane.b32.xlu2 %v1436_v8, %s1316_s8  ;;  %v1176_v9 = vld [vmem:[#allocation2 + $0x4] sm:$0xf]  ;;  %438 = vmatpush.bf16.msra.mxu1 %v1133_v16 }
  0x30   : > { %v1125_v10 = vld [vmem:[#allocation2 + $0x8] sm:$0xf0]  ;;  %1256 = vset.pattern.permute.xlu1 %v1334_v14  ;;  %1257 = vset.pattern.permute.xlu0 %v1334_v14 }
  0x31   : > { %v1128_v11 = vor.u32 %v1176_v9, %v1125_v10 }
  0x36   : > { %448 = vrot.lane.b32.xlu1 %v1128_v11, %s1314_s6  ;;  %498 = vrot.lane.b32.xlu0 %v1436_v8, %s1317_s9  ;;  %s1331_s6 = smov 109  }
  0x37   : > { %550 = vrot.lane.b32.xlu2 %v1436_v8, %s1318_s10 }
  0x3e   : > { %500 = vrot.lane.b32.xlu1 %v1128_v11, %s1317_s9  ;;  %400 = vrot.lane.b32.xlu0 %v1128_v11, %s1315_s7  ;;  %s1332_s7 = smov 111   ;;  %s1178_s9 = smul.u32 84, %s1554_s18 }
  0x3f   : > { %474 = vrot.lane.b32.xlu2 %v1128_v11, %s1316_s8  ;;  %s1333_s8 = smov 108  }
  0x46   : > { %576 = vrot.lane.b32.xlu1 %v1436_v8, %s1319_s11  ;;  %552 = vrot.lane.b32.xlu0 %v1128_v11, %s1318_s10 }
  0x47   : > { %578 = vrot.lane.b32.xlu2 %v1128_v11, %s1319_s11 }
  0x4e   : > { %526 = vrot.lane.b32.xlu1 %v1128_v11, %s1320_s12  ;;  %524 = vrot.lane.b32.xlu0 %v1436_v8, %s1320_s12  ;;  %s1462_s12 = scalar_lea.vmem %s1536_s0, %s1178_s9 }
  0x4f   : > { %602 = vrot.lane.b32.xlu2 %v1436_v8, %s1321_s13  ;;  %v383_v17 = vld [vmem:[%s1462_s12] sm:$0xf]  ;;  %v1137_v20 = vld [vmem:[%s1462_s12 + $0xc] sm:$0xf]  ;;  %v1135_v27 = vld [vmem:[%s1462_s12 + $0x8] sm:$0xf] }
  0x50   : > { %1134 = vmatmul.msk.bf16.vlgmr.msra.gmra.mxu1 %vm405_vm1, %v383_v17  ;;  %v1120_v33 = vld [vmem:[%s1462_s12 + $0x4] sm:$0xf]  ;;  %v1143_v39 = vld [vmem:[%s1462_s12 + $0x18] sm:$0xf]  ;;  %v1145_v40 = vld [vmem:[%s1462_s12 + $0x1c] sm:$0xf] }
  0x51   : > { %v1139_v44 = vld [vmem:[%s1462_s12 + $0x10] sm:$0xf]  ;;  %v1141_v45 = vld [vmem:[%s1462_s12 + $0x14] sm:$0xf]  ;;  %v1151_v51 = vld [vmem:[%s1462_s12 + $0x28] sm:$0xf] }
  0x52   : > { %v1147_v56 = vld [vmem:[%s1462_s12 + $0x20] sm:$0xf]  ;;  %v1153_v57 = vld [vmem:[%s1462_s12 + $0x2c] sm:$0xf]  ;;  %v1149_v63 = vld [vmem:[%s1462_s12 + $0x24] sm:$0xf] }
  0x53   : > { %v1155_v3 = vld [vmem:[%s1462_s12 + $0x30] sm:$0xf]  ;;  %v1159_v5 = vld [vmem:[%s1462_s12 + $0x38] sm:$0xf]  ;;  %v1157_v10 = vld [vmem:[%s1462_s12 + $0x34] sm:$0xf] }
  0x56   : > { %654 = vrot.lane.b32.xlu1 %v1436_v8, %s1322_s14  ;;  %604 = vrot.lane.b32.xlu0 %v1128_v11, %s1321_s13  ;;  %s1114_s13 = sshll.u32 %s1554_s18, 3 }
  0x57   : > { %656 = vrot.lane.b32.xlu2 %v1128_v11, %s1322_s14 }
  0x5e   : > { %682 = vrot.lane.b32.xlu1 %v1128_v11, %s1323_s24  ;;  %680 = vrot.lane.b32.xlu0 %v1436_v8, %s1323_s24 }
  0x5f   : > { %628 = vrot.lane.b32.xlu2 %v1436_v8, %s1324_s25 }
  0x66   : > { %706 = vrot.lane.b32.xlu1 %v1436_v8, %s1325_s26  ;;  %630 = vrot.lane.b32.xlu0 %v1128_v11, %s1324_s25  ;;  %s348_s25 = scalar_lea.vmem %s1537_s1, %s1114_s13 }
  0x67   : > { %708 = vrot.lane.b32.xlu2 %v1128_v11, %s1325_s26  ;;  %s1118_s26 = sshll.u32 %s1556_s17, 1 }
  0x6e   : > { %760 = vrot.lane.b32.xlu1 %v1128_v11, %s1326_s27  ;;  %758 = vrot.lane.b32.xlu0 %v1436_v8, %s1326_s27  ;;  %s370_s27 = sadd.s32 %s1118_s26, %s1554_s18 }
  0x6f   : > { %784 = vrot.lane.b32.xlu2 %v1436_v8, %s1327_s29 }
  0x76   : > { %732 = vrot.lane.b32.xlu1 %v1436_v8, %s1328_s15  ;;  %786 = vrot.lane.b32.xlu0 %v1128_v11, %s1327_s29  ;;  %s1119_s29 = sshll.u32 %s370_s27, 3 }
  0x77   : > { %734 = vrot.lane.b32.xlu2 %v1128_v11, %s1328_s15 }
  0x7e   : > { %812 = vrot.lane.b32.xlu1 %v1128_v11, %s1329_s30  ;;  %810 = vrot.lane.b32.xlu0 %v1436_v8, %s1329_s30 }
  0x7f   : > { %862 = vrot.lane.b32.xlu2 %v1436_v8, %s1330_s5 }
  0x86   : > { %888 = vrot.lane.b32.xlu1 %v1436_v8, %s1331_s6  ;;  %864 = vrot.lane.b32.xlu0 %v1128_v11, %s1330_s5  ;;  %s372_s5 = scalar_lea.vmem %s1540_s4, %s1119_s29 }
  0x87   : > { %890 = vrot.lane.b32.xlu2 %v1128_v11, %s1331_s6 }
  0x89   : > { %v473_v12 = vpop.permute.xlu2 %472 }
  0x8e   : > { %838 = vrot.lane.b32.xlu1 %v1128_v11, %s1332_s7  ;;  %836 = vrot.lane.b32.xlu0 %v1436_v8, %s1332_s7 }
  0x8f   : > { %914 = vrot.lane.b32.xlu2 %v1436_v8, %s1333_s8 }
  0x91   : > { %v551_v13 = vpop.permute.xlu2 %550 }
  0x96   : > { %916 = vrot.lane.b32.xlu0 %v1128_v11, %s1333_s8  ;;  %v1161_v11 = vld [vmem:[%s1462_s12 + $0x3c] sm:$0xf] }
  0x99   : > { %v475_v18 = vpop.permute.xlu2 %474 }
  0x9a   : > { %v477_v19 = vsel %vm476_vm2, %v473_v12, %v475_v18  ;;  %vm814_vm2 = vcmask 916480   ;;  %v1163_v18 = vld [vmem:[%s1462_s12 + $0x40] sm:$0xf] }
  0x9b   : > { %489 = vmatpush.bf16.msra.mxu3 %v477_v19 }
  0x9e   : > { %1138 = vmatmul.msk.bf16.vlgmr.msra.gmra.mxu3 %vm405_vm1, %v1137_v20 }
  0xa0   : > { %v447_v21 = vpop.permute.xlu1 %446  ;;  %v399_v22 = vpop.permute.xlu0 %398 }
  0xa1   : > { %v579_v23 = vpop.permute.xlu2 %578 }
  0xa8   : > { %v449_v24 = vpop.permute.xlu1 %448  ;;  %v499_v25 = vpop.permute.xlu0 %498 }
  0xa9   : > { %v451_v26 = vsel %vm450_vm3, %v447_v21, %v449_v24  ;;  %v603_v28 = vpop.permute.xlu2 %602  ;;  %vm866_vm3 = vcmask 900096   ;;  %v1167_v24 = vld [vmem:[%s1462_s12 + $0x48] sm:$0xf] }
  0xaa   : > { %463 = vmatpush.bf16.msra.mxu2 %v451_v26 }
  0xad   : > { %1136 = vmatmul.msk.bf16.vlgmr.msra.gmra.mxu2 %vm405_vm1, %v1135_v27 }
  0xb0   : > { %v501_v29 = vpop.permute.xlu1 %500  ;;  %v401_v30 = vpop.permute.xlu0 %400 }
  0xb1   : > { %v403_v31 = vsel %vm402_vm4, %v399_v22, %v401_v30  ;;  %v503_v32 = vsel %vm502_vm5, %v499_v25, %v501_v29  ;;  %v657_v38 = vpop.permute.xlu2 %656  ;;  %vm892_vm4 = vcmask 891904   ;;  %v1169_v25 = vld [vmem:[%s1462_s12 + $0x4c] sm:$0xf]  ;;  %vm840_vm5 = vcmask 908288   ;;  %v1165_v29 = vld [vmem:[%s1462_s12 + $0x44] sm:$0xf] }
  0xb2   : > { %416 = vmatpush.bf16.msra.mxu0 %v403_v31 }
  0xb5   : > { %1129 = vmatmul.msk.bf16.vlgmr.msra.gmra.mxu0 %vm405_vm1, %v1120_v33  ;;  %v1171_v33 = vld [vmem:[%s1462_s12 + $0x50] sm:$0xf] }
  0xb6   : > { %515 = vmatpush.bf16.msrb.mxu0 %v503_v32 }
  0xb8   : > { %v577_v34 = vpop.permute.xlu1 %576  ;;  %v553_v35 = vpop.permute.xlu0 %552 }
  0xb9   : > { %v555_v36 = vsel %vm554_vm6, %v551_v13, %v553_v35  ;;  %v581_v37 = vsel %vm580_vm7, %v577_v34, %v579_v23  ;;  %v629_v46 = vpop.permute.xlu2 %628  ;;  %v938_v13 = vld [vmem:[%s348_s25] sm:$0xff]  ;;  %vm918_vm6 = vcmask 883712  }
  0xba   : > { %567 = vmatpush.bf16.msrb.mxu2 %v555_v36  ;;  %593 = vmatpush.bf16.msrb.mxu3 %v581_v37 }
  0xbb   : > { %941 = vperm.xlu1 %1256, %v938_v13  }
  0xbd   : > { %1144 = vmatmul.msk.bf16.vlgmr.msrb.gmra.mxu2 %vm405_vm1, %v1143_v39  ;;  %1146 = vmatmul.msk.bf16.vlgmr.msrb.gmra.mxu3 %vm405_vm1, %v1145_v40 }
  0xc0   : > { %v527_v41 = vpop.permute.xlu1 %526  ;;  %v525_v42 = vpop.permute.xlu0 %524 }
  0xc1   : > { %v529_v43 = vsel %vm528_vm8, %v525_v42, %v527_v41  ;;  %v709_v52 = vpop.permute.xlu2 %708 }
  0xc2   : > { %541 = vmatpush.bf16.msrb.mxu1 %v529_v43 }
  0xc5   : > { %1140 = vmatmul.msk.bf16.vlgmr.msrb.gmra.mxu0 %vm405_vm1, %v1139_v44  ;;  %1142 = vmatmul.msk.bf16.vlgmr.msrb.gmra.mxu1 %vm405_vm1, %v1141_v45 }
  0xc8   : > { %v655_v47 = vpop.permute.xlu1 %654  ;;  %v605_v48 = vpop.permute.xlu0 %604 }
  0xc9   : > { %v659_v49 = vsel %vm658_vm9, %v655_v47, %v657_v38  ;;  %v607_v50 = vsel %vm606_vm10, %v603_v28, %v605_v48  ;;  %v785_v58 = vpop.permute.xlu2 %784 }
  0xca   : > { %619 = vmatpush.bf16.msra.mxu0 %v607_v50  ;;  %671 = vmatpush.bf16.msra.mxu2 %v659_v49 }
  0xcd   : > { %1152 = vmatmul.msk.bf16.vlgmr.msra.gmra.mxu2 %vm405_vm1, %v1151_v51  ;;  %v440_v34 = vpop.f32.mrf.mxu1 }
  0xd0   : > { %v683_v53 = vpop.permute.xlu1 %682  ;;  %v681_v54 = vpop.permute.xlu0 %680 }
  0xd1   : > { %v685_v55 = vsel %vm684_vm11, %v681_v54, %v683_v53  ;;  %v735_v4 = vpop.permute.xlu2 %734 }
  0xd2   : > { %697 = vmatpush.bf16.msra.mxu3 %v685_v55 }
  0xd5   : > { %1148 = vmatmul.msk.bf16.vlgmr.msra.gmra.mxu0 %vm405_vm1, %v1147_v56  ;;  %1154 = vmatmul.msk.bf16.vlgmr.msra.gmra.mxu3 %vm405_vm1, %v1153_v57  ;;  %v442_v35 = vpop.f32.mrf.mxu1 }
  0xd8   : > { %v707_v59 = vpop.permute.xlu1 %706  ;;  %v631_v60 = vpop.permute.xlu0 %630 }
  0xd9   : > { %v711_v61 = vsel %vm710_vm12, %v707_v59, %v709_v52  ;;  %v633_v62 = vsel %vm632_vm13, %v629_v46, %v631_v60  ;;  %v863_v12 = vpop.permute.xlu2 %862 }
  0xda   : > { %645 = vmatpush.bf16.msra.mxu1 %v633_v62  ;;  %723 = vmatpush.bf16.msrb.mxu0 %v711_v61 }
  0xdd   : > { %1150 = vmatmul.msk.bf16.vlgmr.msra.gmra.mxu1 %vm405_vm1, %v1149_v63 }
  0xe0   : > { %v761_v0 = vpop.permute.xlu1 %760  ;;  %v759_v1 = vpop.permute.xlu0 %758 }
  0xe1   : > { %v763_v2 = vsel %vm762_vm14, %v759_v1, %v761_v0  ;;  %v891_v19 = vpop.permute.xlu2 %890 }
  0xe2   : > { %775 = vmatpush.bf16.msrb.mxu2 %v763_v2 }
  0xe5   : > { %1156 = vmatmul.msk.bf16.vlgmr.msrb.gmra.mxu0 %vm405_vm1, %v1155_v3  ;;  %1160 = vmatmul.msk.bf16.vlgmr.msrb.gmra.mxu2 %vm405_vm1, %v1159_v5 }
  0xe8   : > { %v733_v6 = vpop.permute.xlu1 %732  ;;  %v787_v7 = vpop.permute.xlu0 %786 }
  0xe9   : > { %v737_v8 = vsel %vm736_vm15, %v733_v6, %v735_v4  ;;  %v789_v9 = vsel %vm788_vm0, %v785_v58, %v787_v7  ;;  %v915_v30 = vpop.permute.xlu2 %914 }
  0xea   : > { %749 = vmatpush.bf16.msrb.mxu1 %v737_v8  ;;  %801 = vmatpush.bf16.msrb.mxu3 %v789_v9 }
  0xed   : > { %1158 = vmatmul.msk.bf16.vlgmr.msrb.gmra.mxu1 %vm405_vm1, %v1157_v10  ;;  %1162 = vmatmul.msk.bf16.vlgmr.msrb.gmra.mxu3 %vm405_vm1, %v1161_v11 }
  0xf0   : > { %v813_v15 = vpop.permute.xlu1 %812  ;;  %v811_v16 = vpop.permute.xlu0 %810 }
  0xf1   : > { %v815_v17 = vsel %vm814_vm2, %v811_v16, %v813_v15 }
  0xf2   : > { %827 = vmatpush.bf16.msra.mxu0 %v815_v17 }
  0xf5   : > { %1164 = vmatmul.msk.bf16.vlgmr.msra.gmra.mxu0 %vm405_vm1, %v1163_v18 }
  0xf8   : > { %v889_v20 = vpop.permute.xlu1 %888  ;;  %v865_v21 = vpop.permute.xlu0 %864 }
  0xf9   : > { %v867_v22 = vsel %vm866_vm3, %v863_v12, %v865_v21  ;;  %v893_v23 = vsel %vm892_vm4, %v889_v20, %v891_v19 }
  0xfa   : > { %879 = vmatpush.bf16.msra.mxu2 %v867_v22  ;;  %905 = vmatpush.bf16.msra.mxu3 %v893_v23 }
  0xfd   : > { %1168 = vmatmul.msk.bf16.vlgmr.msra.gmra.mxu2 %vm405_vm1, %v1167_v24  ;;  %1170 = vmatmul.msk.bf16.vlgmr.msra.gmra.mxu3 %vm405_vm1, %v1169_v25 }
 0x100   : > { %v839_v26 = vpop.permute.xlu1 %838  ;;  %v837_v27 = vpop.permute.xlu0 %836 }
 0x101   : > { %v841_v28 = vsel %vm840_vm5, %v837_v27, %v839_v26 }
 0x102   : > { %853 = vmatpush.bf16.msra.mxu1 %v841_v28 }
 0x105   : > { %1166 = vmatmul.msk.bf16.vlgmr.msra.gmra.mxu1 %vm405_vm1, %v1165_v29 }
 0x108   : > { %v917_v31 = vpop.permute.xlu0 %916 }
 0x109   : > { %v919_v32 = vsel %vm918_vm6, %v915_v30, %v917_v31 }
 0x10a   : > { %931 = vmatpush.bf16.msrb.mxu0 %v919_v32 }
 0x10d   : > { %1172 = vmatmul.msk.bf16.vlgmr.msrb.gmra.mxu0 %vm405_vm1, %v1171_v33 }
 0x121   : > { %v491_v36 = vpop.f32.mrf.mxu3 }
 0x129   : > { %v493_v37 = vpop.f32.mrf.mxu3 }
 0x12d   : > { %v942_v28 = vpop.permute.xlu1 %941 }
 0x130   : > { %v465_v38 = vpop.f32.mrf.mxu2 }
 0x132   : > { %v418_v39 = vpop.f32.mrf.mxu0 }
 0x133   : > { %v441_v40 = vadd.f32 %v440_v34, %v418_v39 }
 0x135   : > { %v469_v41 = vadd.f32 %v465_v38, %v441_v40 }
 0x137   : > { %v495_v42 = vadd.f32 %v491_v36, %v469_v41 }
 0x138   : > { %v467_v43 = vpop.f32.mrf.mxu2 }
 0x13a   : > { %v420_v44 = vpop.f32.mrf.mxu0 }
 0x140   : > { %v569_v45 = vpop.f32.mrf.mxu2  ;;  %v595_v46 = vpop.f32.mrf.mxu3 }
 0x142   : > { %v517_v47 = vpop.f32.mrf.mxu0  ;;  %v543_v48 = vpop.f32.mrf.mxu1 }
 0x143   : > { %v521_v59 = vadd.f32 %v517_v47, %v495_v42 }
 0x145   : > { %v547_v60 = vadd.f32 %v543_v48, %v521_v59 }
 0x147   : > { %v573_v0 = vadd.f32 %v569_v45, %v547_v60 }
 0x148   : > { %v571_v49 = vpop.f32.mrf.mxu2  ;;  %v597_v50 = vpop.f32.mrf.mxu3 }
 0x149   : > { %v599_v1 = vadd.f32 %v595_v46, %v573_v0 }
 0x14a   : > { %v519_v51 = vpop.f32.mrf.mxu0  ;;  %v545_v52 = vpop.f32.mrf.mxu1 }
 0x150   : > { %v673_v53 = vpop.f32.mrf.mxu2 }
 0x152   : > { %v621_v54 = vpop.f32.mrf.mxu0 }
 0x153   : > { %v625_v3 = vadd.f32 %v621_v54, %v599_v1 }
 0x158   : > { %v699_v55 = vpop.f32.mrf.mxu3  ;;  %v675_v56 = vpop.f32.mrf.mxu2 }
 0x15a   : > { %v623_v57 = vpop.f32.mrf.mxu0  ;;  %v647_v58 = vpop.f32.mrf.mxu1 }
 0x15b   : > { %v651_v6 = vadd.f32 %v647_v58, %v625_v3 }
 0x15d   : > { %v677_v7 = vadd.f32 %v673_v53, %v651_v6 }
 0x15f   : > { %v703_v12 = vadd.f32 %v699_v55, %v677_v7 }
 0x160   : > { %v701_v61 = vpop.f32.mrf.mxu3 }
 0x162   : > { %v649_v62 = vpop.f32.mrf.mxu1  ;;  %v725_v63 = vpop.f32.mrf.mxu0 }
 0x163   : > { %v729_v13 = vadd.f32 %v725_v63, %v703_v12 }
 0x168   : > { %v777_v2 = vpop.f32.mrf.mxu2 }
 0x16a   : > { %v727_v4 = vpop.f32.mrf.mxu0  ;;  %v751_v5 = vpop.f32.mrf.mxu1 }
 0x16b   : > { %v755_v14 = vadd.f32 %v751_v5, %v729_v13 }
 0x16d   : > { %v781_v17 = vadd.f32 %v777_v2, %v755_v14 }
 0x170   : > { %v803_v8 = vpop.f32.mrf.mxu3  ;;  %v779_v9 = vpop.f32.mrf.mxu2 }
 0x171   : > { %v807_v18 = vadd.f32 %v803_v8, %v781_v17 }
 0x172   : > { %v829_v10 = vpop.f32.mrf.mxu0  ;;  %v753_v11 = vpop.f32.mrf.mxu1 }
 0x173   : > { %v833_v21 = vadd.f32 %v829_v10, %v807_v18 }
 0x178   : > { %v805_v15 = vpop.f32.mrf.mxu3 }
 0x17a   : > { %v831_v16 = vpop.f32.mrf.mxu0 }
 0x180   : > { %v881_v19 = vpop.f32.mrf.mxu2  ;;  %v907_v20 = vpop.f32.mrf.mxu3 }
 0x182   : > { %v855_v22 = vpop.f32.mrf.mxu1 }
 0x183   : > { %v859_v23 = vadd.f32 %v855_v22, %v833_v21 }
 0x185   : > { %v885_v24 = vadd.f32 %v881_v19, %v859_v23 }
 0x187   : > { %v911_v27 = vadd.f32 %v907_v20, %v885_v24 }
 0x188   : > { %v883_v25 = vpop.f32.mrf.mxu2  ;;  %v909_v26 = vpop.f32.mrf.mxu3 }
 0x18a   : > { %v933_v29 = vpop.f32.mrf.mxu0  ;;  %v857_v30 = vpop.f32.mrf.mxu1 }
 0x18b   : > { %v937_v31 = vadd.f32 %v933_v29, %v911_v27 }
 0x18d   : > { %v944_v32 = vadd.f32 %v942_v28, %v937_v31 }
 0x18f   : > { %vm945_vm1 = vcmp.ge.f32.partialorder %v944_v32, 0.0  ;;  %v946_v33 = vmul.f32 0.1, %v944_v32 }
 0x191   : > { %v947_v34 = vsel %vm945_vm1, %v944_v32, %v946_v33 }
 0x192   : > { %948 = vst [vmem:[%s372_s5] sm:$0xff] %v947_v34  ;;  %v935_v35 = vpop.f32.mrf.mxu0 }
 0x193 PF: > { %s14_s21 = sadd.s32 1, %s1312_s21   ;;  %s1541_s15 = smov %s1292_s16 }
 0x194   : > { %p11_p12 = scmp.ge.s32.totalorder %s14_s21, 6   ;;  %s1542_s16 = smov %s1411_s28 }
 0x195   : > { %s1543_s17 = smov %s1304_s19  ;;  %s1544_s18 = smov %s1308_s20 }
 0x196   : > { %s1545_s19 = smov %s1548_s22  ;;  %s1546_s20 = smov %s1552_s23 }
 0x197   :  { %13 = sbr.rel (!%p11_p12) target bundleno = 4 (0x4), region = 141 }

// kernel: _lambda_.15
= control target key start
LH: loop header
LB: loop body
LE: loop exit
PB: predicated region body
PF: predicated region fallthrough
CT: control target
= control target key end

     0   :  { %s852_s0 = inlined_call_operand.vmem [shape: bf16[1,3,1,16], index: 0, kind: input, shape index: {}]   ;;  %s853_s1 = inlined_call_operand.<no memory space> [shape: f32[1,1,1], index: 1, kind: input, shape index: {}]   ;;  %s854_s2 = inlined_call_operand.vmem [shape: bf16[2,1,16,130], index: 2, kind: input, shape index: {}]   ;;  %s855_s3 = inlined_call_operand.vmem [shape: bf16[2,1,1,16,2], index: 3, kind: input, shape index: {}]   ;;  %s856_s4 = inlined_call_operand.vmem [shape: f32[2,1,128], index: 4, kind: output, shape index: {}]  }
   0x1   :  { %v9_v0 = vstv %s853_s1 }
   0x2   :  { %10 = vst [vmem:[#allocation3] sm:$0x1] %v9_v0 }
   0x3   :  { %s767_s17 = smov 0   ;;  %s769_s18 = smov 0  }
   0x4   :  { %s771_s19 = smov 0   ;;  %s773_s20 = smov 0  }
   0x5   :  { %s775_s21 = smov 0  }
   0x6 LB: > { %s31_s1 = sadd.s32 1, %s730_s20  ;;  %p105_p1 = scmp.ne.s32.totalorder %s722_s18, %s718_s17  ;;  %s734_s21 = sphi %s775_s21, %s16_s21   ;;  %s730_s20 = sphi %s773_s20, %s860_s20   ;;  %s726_s19 = sphi %s771_s19, %s859_s19   ;;  %s722_s18 = sphi %s769_s18, %s858_s18   ;;  %s718_s17 = sphi %s767_s17, %s857_s17  }
   0x7   : > { %p33_p0 = scmp.ge.s32.totalorder %s31_s1, 2  ;;  %p106_p2 = scmp.eq.s32.totalorder %s734_s21, 0 }
   0x8   : > { %s98_s23 = sadd.s32 1, %s722_s18  ;;  %p619_p5 = scmp.ge.s32.totalorder %s734_s21, 2 }
   0x9   : > { %s862_s1 = smov (%p33_p0, %s31_s1), 0  ;;  %p107_p3 = por %p106_p2, %p105_p1 }
   0xa   : > { %s91_s22 = ssub.s32 %s730_s20, %s862_s1  ;;  %204 = sbr.rel (%p619_p5) target bundleno = 21 (0x15), region = 24 }
   0xb   : > { %p96_p4 = scmp.eq.s32.totalorder %s91_s22, 0 }
   0xd   : > { %s802_s24 = scalar_select %p96_p4, %s722_s18, %s98_s23  }
   0xf   : > { %207 = sbr.rel (!%p107_p3) target bundleno = 21 (0x15), region = 28  ;;  %s209_s25 = sand.u32 (%p107_p3), 1, %s722_s18  }
  0x10   : > { %s646_s26 = sshll.u32 (%p107_p3), %s730_s20, 4  ;;  %s620_s27 = sshll.u32 (%p107_p3), %s209_s25, 3 }
  0x11   : > { %s217_s30 = scalar_lea.vmem (%p107_p3), %s854_s2, %s646_s26  ;;  %s211_s5 = scalar_lea.vmem (%p107_p3), [#allocation4], %s620_s27 }
  0x12   : > { %v234_v1 = vld [vmem:[%s217_s30] sm:$0xf] (%p107_p3)  ;;  %v236_v2 = vld [vmem:[%s217_s30 + $0x8] sm:$0xf] (%p107_p3) }
  0x13   : > { %235 = vst [vmem:[%s211_s5] sm:$0xf] (%p107_p3), %v234_v1 }
  0x14   : > { %237 = vst [vmem:[%s211_s5 + $0x4] sm:$0xf] %v236_v2 }
  0x15 PF: > { %p623_p6 = scmp.ge.s32.totalorder %s734_s21, 1  ;;  %p280_p7 = scmp.lt.s32.totalorder %s734_s21, 3 }
  0x17   : > { %p281_p8 = pnand %p623_p6, %p280_p7 }
  0x18   : > { %s287_s6 = sand.u32 (!%p281_p8), 1, %s718_s17   ;;  %p343_p9 = scmp.lt.s32.totalorder (!%p281_p8), %s726_s19, 1 }
  0x19   : > { %284 = sbr.rel (%p281_p8) target bundleno = 309 (0x135), region = 73  ;;  %s624_s7 = sshll.u32 (!%p281_p8), %s287_s6, 3 }
  0x1a   : > { %s289_s8 = scalar_lea.vmem (!%p281_p8), [#allocation4], %s624_s7  ;;  %s736_s13 = smov (!%p281_p8), 127  }
  0x1b   : > { %s737_s14 = smov (!%p281_p8), 126  }
  0x1e   : > { %v366_v3 = vld [vmem:[%s289_s8] sm:$0xf]  ;;  %v367_v4 = vld [vmem:[%s289_s8 + $0x4] sm:$0xf]  ;;  %s864_s19 = smov (!%p343_p9, %s726_s19), 1  ;;  %vm372_vm0 = vcmask 11264  }
  0x1f   : > { %368 = vst [vmem:[#allocation2] sm:$0xf] %v366_v3  ;;  %s647_s9 = sshll.u32 %s864_s19, 3  ;;  %v375_v16 = vld [vmem:[%s852_s0] sm:$0x1]  ;;  %vm397_vm1 = vcmask 130048   ;;  %s364_s28 = scalar_lea.vmem %s856_s4, %s864_s19 }
  0x20   : > { %369 = vst [vmem:[#allocation2 + $0x8] sm:$0xf] %v367_v4  ;;  %s355_s12 = scalar_lea.vmem %s855_s3, %s647_s9  ;;  %v462_v17 = vld [vmem:[#allocation3] sm:$0x1]  ;;  %v738_v18 = vmov 0   ;;  %vm394_vm2 = vcmask 1039360  }
  0x21   : > { %v370_v5 = vld [vmem:[%s355_s12] sm:$0xf]  ;;  %v371_v6 = vld [vmem:[%s355_s12 + $0x4] sm:$0xf]  ;;  %694 = vset.pattern.permute.xlu2 %v738_v18  ;;  %695 = vset.pattern.permute.xlu0 %v738_v18  ;;  %vm442_vm3 = vcmask 1031168  }
  0x22   : > { %373 = vst.msk [vmem:[#allocation2 + $0x4] sm:$0xf] %vm372_vm0, %v370_v5  ;;  %465 = vperm.xlu2 %694, %v462_v17   ;;  %v627_v25 = vld [vmem:[%s852_s0 + $0x1] sm:$0x1]  ;;  %v642_v26 = vld [vmem:[%s852_s0 + $0x2] sm:$0x1] }
  0x23   : > { %374 = vst.msk [vmem:[#allocation2 + $0xc] sm:$0xf] %vm372_vm0, %v371_v6 }
  0x26   : > { %v630_v7 = vld [vmem:[#allocation2] sm:$0xf] }
  0x27   : > { %v650_v8 = vld [vmem:[#allocation2 + $0x4] sm:$0xf0]  ;;  %v639_v13 = vld [vmem:[#allocation2] sm:$0xf] }
  0x28   : > { %v631_v9 = vor.u32 %v650_v8, %v630_v7  ;;  %v648_v14 = vld [vmem:[#allocation2 + $0x4] sm:$0xf0] }
  0x29   : > { %v649_v10 = vld [vmem:[#allocation2 + $0x4] sm:$0xf]  ;;  %v640_v15 = vor.u32 %v648_v14, %v639_v13 }
  0x2a   : > { %390 = vrot.lane.b32.xlu1 %v631_v9, %s736_s13  ;;  %438 = vrot.lane.b32.xlu0 %v631_v9, %s737_s14  ;;  %v632_v11 = vld [vmem:[#allocation2 + $0x8] sm:$0xf0] }
  0x2b   : > { %v635_v12 = vor.u32 %v649_v10, %v632_v11  ;;  %430 = vmatpush.bf16.msra.mxu1 %v640_v15 }
  0x2e   : > { %641 = vmatmul.msk.bf16.vlgmr.msra.gmra.mxu1 %vm397_vm1, %v375_v16 }
  0x32   : > { %392 = vrot.lane.b32.xlu1 %v635_v12, %s736_s13  ;;  %440 = vrot.lane.b32.xlu0 %v635_v12, %s737_s14 }
  0x7c   : > { %v466_v30 = vpop.permute.xlu2 %465 }
  0x7d   : > { %v468_v32 = vperm.slane %v466_v30, 0 }
  0x9c   : > { %v391_v19 = vpop.permute.xlu1 %390  ;;  %v439_v20 = vpop.permute.xlu0 %438 }
  0xa4   : > { %v393_v21 = vpop.permute.xlu1 %392  ;;  %v441_v22 = vpop.permute.xlu0 %440 }
  0xa5   : > { %v395_v23 = vsel %vm394_vm2, %v391_v19, %v393_v21  ;;  %v443_v24 = vsel %vm442_vm3, %v439_v20, %v441_v22 }
  0xa6   : > { %408 = vmatpush.bf16.msra.mxu0 %v395_v23  ;;  %455 = vmatpush.bf16.msra.mxu2 %v443_v24 }
  0xa9   : > { %636 = vmatmul.msk.bf16.vlgmr.msra.gmra.mxu0 %vm397_vm1, %v627_v25  ;;  %643 = vmatmul.msk.bf16.vlgmr.msra.gmra.mxu2 %vm397_vm1, %v642_v26 }
  0xab   : > { %v432_v27 = vpop.f32.mrf.mxu1 }
  0xb3   : > { %v434_v28 = vpop.f32.mrf.mxu1 }
 0x126   : > { %v410_v29 = vpop.f32.mrf.mxu0 }
 0x127   : > { %v433_v31 = vadd.f32 %v432_v27, %v410_v29 }
 0x12c   : > { %v457_v33 = vpop.f32.mrf.mxu2 }
 0x12d   : > { %v461_v34 = vadd.f32 %v457_v33, %v433_v31 }
 0x12e   : > { %v412_v35 = vpop.f32.mrf.mxu0 }
 0x12f   : > { %v469_v36 = vadd.f32 %v468_v32, %v461_v34 }
 0x131   : > { %470 = vst [vmem:[%s364_s28] sm:$0x1] %v469_v36 }
 0x134   : > { %v459_v37 = vpop.f32.mrf.mxu2 }
 0x135 PF: > { %s16_s21 = sadd.s32 1, %s734_s21   ;;  %s857_s17 = smov %s722_s18 }
 0x136   : > { %p13_p10 = scmp.ge.s32.totalorder %s16_s21, 4   ;;  %s858_s18 = smov %s802_s24 }
 0x137   : > { %s859_s19 = smov %s730_s20  ;;  %s860_s20 = smov %s862_s1 }
 0x138   :  { %15 = sbr.rel (!%p13_p10) target bundleno = 6 (0x6), region = 123 }

</bundles_post_ra>
